<compile_context>
chip_gen: v7x
topology: tpu7x:2x2x1
jax: 0.10.0
libtpu: 0.0.40
codegen_flags: <defaults>
</compile_context>

<pallas_src>
import numpy as np
import jax
import jax.numpy as jnp
from jax.experimental import pallas as pl
from jax.experimental.pallas import tpu as pltpu

OP_ZERO, OP_SKIP, OP_CONV = 0, 1, 2
NUM_OPS = 3


def _pick_batch_block(N, H, target_rows=256, min_steps=2):
    """Largest batch block Nb (divisor of N) with Nb*H <= target_rows, preferring to keep at
    least `min_steps` grid steps so the batch still splits across v7x's two TensorCores."""
    divisors = [d for d in range(1, N + 1) if N % d == 0]
    cands = [d for d in divisors if N // d >= min_steps] or divisors
    fitting = [d for d in cands if d * H <= target_rows]
    return max(fitting) if fitting else min(cands)


def _vmem_limit_bytes(Pu, Nb, Hp, H, WC, E, I):
    """VMEM budget from actual buffer sizes (x/out double-buffered; weights fetched once but
    budgeted 2x as worst case) + slack for in-kernel temporaries."""
    bf16, f32 = 2, 4
    x_blk = Pu * Nb * Hp * WC * bf16
    w_blk = E * 3 * WC * WC * bf16
    b_blk = E * max(WC, 128) * f32
    o_blk = I * Nb * H * WC * f32
    M = Nb * H
    scratch = (I + 6) * M * WC * f32          # accumulators + dy-slice / reshape temporaries
    total = 2 * (x_blk + o_blk + w_blk + b_blk) + scratch
    return int(min(max(int(total * 1.5) + (2 << 20), 8 << 20), 56 << 20))


def _make_fused_kernel(op_codes, part_slot, conv_slot, I, P, H, W, C, Nb):
    """Fused kernel over all next-parts; op codes / slot maps are compile-time static.
    # TODO(synk): for large I*P, move the next-part index onto a grid axis instead of fully
    #             unrolling (vreg pressure / code size); fine at the default 2x3 edge count.
    """
    WC = W * C
    M = Nb * H    # (batch, height) collapsed into the MXU M dimension

    def kernel(x_ref, w_ref, b_ref, beta_ref, o_ref):
        # x_ref:    (Pu, Nb, H+2, W*C)  bf16, H zero-padded, lane-dense (W folded into lanes)
        # w_ref:    (E, 3, W*C, W*C)    bf16 width-banded 3x3 weights (softmax(beta) pre-folded)
        # b_ref:    (E, W*C)            f32 bias tiled over W (softmax(beta) pre-folded)
        # beta_ref: (I*P,)   [SMEM]     f32 softmax(beta); used only by skip edges
        # o_ref:    (I, Nb, H, W*C)     f32
        for i in range(I):
            acc = jnp.zeros((M, WC), jnp.float32)
            for j in range(P):
                code = op_codes[i][j]
                if code == OP_ZERO:
                    continue                    # 'Zero' edge contributes nothing (never shipped)
                pj = part_slot[j]
                if code == OP_SKIP:
                    xs = x_ref[pj, :, 1:H + 1, :].reshape(M, WC)        # no lane offset
                    acc = acc + beta_ref[i * P + j] * xs.astype(jnp.float32)
                else:  # OP_CONV: 3 large MXU matmuls (one per dy), bias, ReLU
                    e = conv_slot[(i, j)]
                    conv = jnp.zeros((M, WC), jnp.float32)
                    for dy in range(3):
                        xd = x_ref[pj, :, dy:dy + H, :].reshape(M, WC)  # (Nb*H, W*C) bf16
                        conv = conv + jnp.dot(xd, w_ref[e, dy],
                                              preferred_element_type=jnp.float32)
                    acc = acc + jnp.maximum(conv + b_ref[e:e + 1, :], 0.0)
            o_ref[i, :, :, :] = acc.reshape(Nb, H, WC).astype(o_ref.dtype)

    return kernel


class DerivedPartGroupingArch:
    """JAX/Pallas equivalent of Derived_Part_Grouping_Arch (forward pass only)."""

    def __init__(self, key, pre_parts_num, next_parts_num, channel):
        self.pre_parts_num = pre_parts_num
        self.next_parts_num = next_parts_num
        self.channel = channel
        self.operators = ("Zero", "skip_connect", "conv_3x3")

        k_alpha, k_beta, k_w, k_b = jax.random.split(key, 4)
        # Architecture parameters.  alphas get a one-hot bump so the derived op codes cover
        # every operator type across edges (mirrors alphas[i][j].argmax() in PyTorch __init__).
        alphas = 0.01 * jax.random.normal(
            k_alpha, (next_parts_num, pre_parts_num, NUM_OPS), dtype=jnp.float32)
        bump = np.zeros((next_parts_num, pre_parts_num, NUM_OPS), np.float32)
        for i in range(next_parts_num):
            for j in range(pre_parts_num):
                bump[i, j, (i + j) % NUM_OPS] = 1.0
        self.alphas = alphas + jnp.asarray(bump)
        self.betas = jax.random.normal(
            k_beta, (next_parts_num, pre_parts_num), dtype=jnp.float32)

        # Derived (static) op selection.
        self.op_codes = np.asarray(jnp.argmax(self.alphas, axis=-1))

        # Conv weights for every edge (unused for Zero / skip_connect edges).
        C = channel
        self.conv_w = 0.1 * jax.random.normal(
            k_w, (next_parts_num, pre_parts_num, 9, C, C), dtype=jnp.float32)
        self.conv_b = 0.1 * jax.random.normal(
            k_b, (next_parts_num, pre_parts_num, C), dtype=jnp.float32)

        self._prepped = {}   # cache keyed by (H, W, Nb)

    # ------------------------------------------------------------------ host-side prep
    def _prepare(self, H, W, Nb):
        key = (H, W, Nb)
        if key in self._prepped:
            return self._prepped[key]
        C = self.channel
        I, P = self.next_parts_num, self.pre_parts_num
        codes = self.op_codes

        # Pre-parts that feed at least one non-Zero edge (only these are DMA'd).
        used_parts = sorted({j for i in range(I) for j in range(P) if codes[i, j] != OP_ZERO})
        if not used_parts:
            used_parts = [0]
        part_slot = {j: s for s, j in enumerate(used_parts)}

        # Conv edges (only these get weights).
        conv_edges = [(i, j) for i in range(I) for j in range(P) if codes[i, j] == OP_CONV]
        conv_slot = {e: s for s, e in enumerate(conv_edges)}
        E = max(1, len(conv_edges))

        beta_w = np.asarray(jax.nn.softmax(self.betas, axis=-1), np.float32)   # (I, P)

        # Width-banded weights against the UNPADDED width (out-of-range dx columns dropped):
        #   B[dy][(w+dx-1)*C + cin, w*C + cout] = Wt[dy, dx, cin, cout]
        # K = W*C (lane/MXU aligned); softmax(beta) is folded in (beta > 0 so
        # beta*ReLU(y + b) == ReLU(beta*y + beta*b)).
        conv_w = np.asarray(self.conv_w, np.float32)
        conv_b = np.asarray(self.conv_b, np.float32)
        big_w = np.zeros((E, 3, W * C, W * C), np.float32)
        big_b = np.zeros((E, W * C), np.float32)
        w_out = np.arange(W)
        for s, (i, j) in enumerate(conv_edges):
            Wt = conv_w[i, j].reshape(3, 3, C, C)          # (dy, dx, cin, cout)
            B = np.zeros((3, W, C, W, C), np.float32)
            for dy in range(3):
                for dx in range(3):
                    w_in = w_out + dx - 1
                    valid = (w_in >= 0) & (w_in < W)
                    B[dy, w_in[valid], :, w_out[valid], :] = Wt[dy, dx]
            big_w[s] = beta_w[i, j] * B.reshape(3, W * C, W * C)
            big_b[s] = beta_w[i, j] * np.tile(conv_b[i, j], W)

        kernel = _make_fused_kernel(
            [[int(codes[i, j]) for j in range(P)] for i in range(I)],
            part_slot, conv_slot, I, P, H, W, C, Nb)

        prep = dict(used_parts=used_parts, kernel=kernel, E=E,
                    big_w=jnp.asarray(big_w, jnp.bfloat16),
                    big_b=jnp.asarray(big_b, jnp.float32),
                    beta_flat=jnp.asarray(beta_w.reshape(-1), jnp.float32))
        self._prepped[key] = prep
        return prep

    # ------------------------------------------------------------------ forward
    def __call__(self, inputs):
        assert len(inputs) == self.pre_parts_num
        N, C, H, W = inputs[0].shape
        assert C == self.channel
        I = self.next_parts_num
        Hp, WC = H + 2, W * C
        Nb = _pick_batch_block(N, H)
        prep = self._prepare(H, W, Nb)
        used = prep["used_parts"]
        Pu, E = len(used), prep["E"]

        # NCHW -> channel-last, pad H only, fold W into the lane dimension, cast to bf16.
        # TODO(synk): these wrapper-side relayouts disappear if the surrounding model feeds
        #             NHWC / lane-folded activations directly.
        xs = jnp.transpose(jnp.stack([inputs[j] for j in used], axis=0), (0, 1, 3, 4, 2))
        x_pad = jnp.pad(xs, ((0, 0), (0, 0), (1, 1), (0, 0), (0, 0)))   # (Pu, N, Hp, W, C)
        x_fold = x_pad.reshape(Pu, N, Hp, WC).astype(jnp.bfloat16)

        out = pl.pallas_call(
            prep["kernel"],
            out_shape=jax.ShapeDtypeStruct((I, N, H, WC), jnp.float32),
            grid=(N // Nb,),
            in_specs=[
                pl.BlockSpec((Pu, Nb, Hp, WC), lambda n: (0, n, 0, 0)),
                # Grid-invariant index maps: the pipeliner fetches these once (block index never
                # changes across steps), so the weights/bias are not re-DMA'd per grid step.
                pl.BlockSpec((E, 3, WC, WC), lambda n: (0, 0, 0, 0)),
                pl.BlockSpec((E, WC), lambda n: (0, 0)),
                pl.BlockSpec(memory_space=pltpu.MemorySpace.SMEM),
            ],
            out_specs=pl.BlockSpec((I, Nb, H, WC), lambda n: (0, n, 0, 0)),
            compiler_params=pltpu.CompilerParams(
                dimension_semantics=("parallel",),
                vmem_limit_bytes=_vmem_limit_bytes(Pu, Nb, Hp, H, WC, E, I)),
        )(x_fold, prep["big_w"], prep["big_b"], prep["beta_flat"])

        out = out.reshape(I, N, H, W, C)
        return [jnp.transpose(out[i], (0, 3, 1, 2)) for i in range(I)]   # back to NCHW


def reference_forward(inputs, model):
    """Pure-JAX (XLA, f32) reference with the module's semantics, for verification."""
    beta_w = jax.nn.softmax(model.betas, axis=-1)
    outputs = []
    for i in range(model.next_parts_num):
        acc = jnp.zeros_like(jnp.transpose(inputs[0], (0, 2, 3, 1)))
        for j in range(model.pre_parts_num):
            code = int(model.op_codes[i, j])
            x = jnp.transpose(inputs[j], (0, 2, 3, 1))  # NHWC
            if code == OP_ZERO:
                op_out = jnp.zeros_like(x)
            elif code == OP_SKIP:
                op_out = x
            else:
                w = model.conv_w[i, j].reshape(3, 3, model.channel, model.channel)
                y = jax.lax.conv_general_dilated(
                    x, w, window_strides=(1, 1), padding="SAME",
                    dimension_numbers=("NHWC", "HWIO", "NHWC"))
                op_out = jnp.maximum(y + model.conv_b[i, j], 0.0)
            acc = acc + beta_w[i, j] * op_out
        outputs.append(jnp.transpose(acc, (0, 3, 1, 2)))
    return outputs


if __name__ == "__main__":
    key = jax.random.PRNGKey(0)
    k_model, k_in = jax.random.split(key)

    N, C, H, W = 4, 32, 16, 16
    pre_parts_num, next_parts_num = 3, 2

    model = DerivedPartGroupingArch(k_model, pre_parts_num, next_parts_num, C)

    in_keys = jax.random.split(k_in, pre_parts_num)
    inputs = [jax.random.normal(k, (N, C, H, W), dtype=jnp.float32) for k in in_keys]

    outs = model(inputs)
    outs = [jax.block_until_ready(o) for o in outs]

    # Kernel uses bf16 activations/weights with f32 accumulation; compare against the f32
    # reference with a bf16-appropriate tolerance.
    refs = reference_forward(inputs, model)
    for o, r in zip(outs, refs):
        np.testing.assert_allclose(np.asarray(o), np.asarray(r), rtol=2e-2, atol=2e-2)

    print("KERNEL_OK")
</pallas_src>

<mosaic_0001>
module attributes {stable_mosaic.version = 11 : i64} {
  func.func @kernel(%arg0: i32, %arg1: memref<3x2x18x512xbf16, #tpu.memory_space<vmem>>, %arg2: memref<2x3x512x512xbf16, #tpu.memory_space<vmem>>, %arg3: memref<2x512xf32, #tpu.memory_space<vmem>>, %arg4: memref<6xf32, #tpu.memory_space<smem>>, %arg5: memref<2x2x16x512xf32, #tpu.memory_space<vmem>>) attributes {dimension_semantics = [#tpu.dimension_semantics<parallel>], iteration_bounds = array<i64: 2>, scalar_prefetch = 0 : i64, scratch_operands = 0 : i64, tpu.core_type = #tpu.core_type<tc>, window_params = [{transform_indices = @transform_0, window_bounds = array<i64: 3, 2, 18, 512>}, {pipeline_mode = #tpu.pipeline_mode<synchronous>, transform_indices = @transform_1, window_bounds = array<i64: 2, 3, 512, 512>}, {pipeline_mode = #tpu.pipeline_mode<synchronous>, transform_indices = @transform_2, window_bounds = array<i64: 2, 512>}, {transform_indices = @transform_3, window_bounds = array<i64: 6>}, {transform_indices = @transform_4, window_bounds = array<i64: 2, 2, 16, 512>}]} {
    %cst = arith.constant 0.000000e+00 : f32
    %0 = vector.broadcast %cst : f32 to vector<32x512xf32>
    %c1 = arith.constant 1 : index
    %c0 = arith.constant 0 : index
    %c1_0 = arith.constant 1 : index
    %c0_1 = arith.constant 0 : index
    %1 = vector.load %arg1[%c1, %c0, %c1_0, %c0_1] : memref<3x2x18x512xbf16, #tpu.memory_space<vmem>>, vector<1x2x16x512xbf16>
    %2 = vector.shape_cast %1 : vector<1x2x16x512xbf16> to vector<2x16x512xbf16>
    %3 = vector.shape_cast %2 : vector<2x16x512xbf16> to vector<32x512xbf16>
    %c1_2 = arith.constant 1 : index
    %4 = memref.load %arg4[%c1_2] : memref<6xf32, #tpu.memory_space<smem>>
    %5 = arith.extf %3 : vector<32x512xbf16> to vector<32x512xf32>
    %6 = vector.broadcast %4 : f32 to vector<32x512xf32>
    %7 = arith.mulf %6, %5 : vector<32x512xf32>
    %8 = arith.addf %0, %7 : vector<32x512xf32>
    %cst_3 = arith.constant 0.000000e+00 : f32
    %9 = vector.broadcast %cst_3 : f32 to vector<32x512xf32>
    %c2 = arith.constant 2 : index
    %c0_4 = arith.constant 0 : index
    %c0_5 = arith.constant 0 : index
    %c0_6 = arith.constant 0 : index
    %10 = vector.load %arg1[%c2, %c0_4, %c0_5, %c0_6] : memref<3x2x18x512xbf16, #tpu.memory_space<vmem>>, vector<1x2x16x512xbf16>
    %11 = vector.shape_cast %10 : vector<1x2x16x512xbf16> to vector<2x16x512xbf16>
    %12 = vector.shape_cast %11 : vector<2x16x512xbf16> to vector<32x512xbf16>
    %c0_7 = arith.constant 0 : index
    %c0_8 = arith.constant 0 : index
    %c0_9 = arith.constant 0 : index
    %c0_10 = arith.constant 0 : index
    %13 = vector.load %arg2[%c0_7, %c0_8, %c0_9, %c0_10] : memref<2x3x512x512xbf16, #tpu.memory_space<vmem>>, vector<1x1x512x512xbf16>
    %14 = vector.shape_cast %13 : vector<1x1x512x512xbf16> to vector<512x512xbf16>
    %cst_11 = arith.constant dense<0.000000e+00> : vector<32x512xf32>
    %15 = tpu.matmul %12, %14, %cst_11 {dimension_numbers = #tpu.dot_dimension_numbers<[1], [0], [0], [1], [0, 0, 1, 1], [], []>} : vector<32x512xbf16>, vector<512x512xbf16>, vector<32x512xf32> -> vector<32x512xf32>
    %16 = arith.addf %9, %15 : vector<32x512xf32>
    %c2_12 = arith.constant 2 : index
    %c0_13 = arith.constant 0 : index
    %c1_14 = arith.constant 1 : index
    %c0_15 = arith.constant 0 : index
    %17 = vector.load %arg1[%c2_12, %c0_13, %c1_14, %c0_15] : memref<3x2x18x512xbf16, #tpu.memory_space<vmem>>, vector<1x2x16x512xbf16>
    %18 = vector.shape_cast %17 : vector<1x2x16x512xbf16> to vector<2x16x512xbf16>
    %19 = vector.shape_cast %18 : vector<2x16x512xbf16> to vector<32x512xbf16>
    %c0_16 = arith.constant 0 : index
    %c1_17 = arith.constant 1 : index
    %c0_18 = arith.constant 0 : index
    %c0_19 = arith.constant 0 : index
    %20 = vector.load %arg2[%c0_16, %c1_17, %c0_18, %c0_19] : memref<2x3x512x512xbf16, #tpu.memory_space<vmem>>, vector<1x1x512x512xbf16>
    %21 = vector.shape_cast %20 : vector<1x1x512x512xbf16> to vector<512x512xbf16>
    %cst_20 = arith.constant dense<0.000000e+00> : vector<32x512xf32>
    %22 = tpu.matmul %19, %21, %cst_20 {dimension_numbers = #tpu.dot_dimension_numbers<[1], [0], [0], [1], [0, 0, 1, 1], [], []>} : vector<32x512xbf16>, vector<512x512xbf16>, vector<32x512xf32> -> vector<32x512xf32>
    %23 = arith.addf %16, %22 : vector<32x512xf32>
    %c2_21 = arith.constant 2 : index
    %c0_22 = arith.constant 0 : index
    %c2_23 = arith.constant 2 : index
    %c0_24 = arith.constant 0 : index
    %24 = vector.load %arg1[%c2_21, %c0_22, %c2_23, %c0_24] : memref<3x2x18x512xbf16, #tpu.memory_space<vmem>>, vector<1x2x16x512xbf16>
    %25 = vector.shape_cast %24 : vector<1x2x16x512xbf16> to vector<2x16x512xbf16>
    %26 = vector.shape_cast %25 : vector<2x16x512xbf16> to vector<32x512xbf16>
    %c0_25 = arith.constant 0 : index
    %c2_26 = arith.constant 2 : index
    %c0_27 = arith.constant 0 : index
    %c0_28 = arith.constant 0 : index
    %27 = vector.load %arg2[%c0_25, %c2_26, %c0_27, %c0_28] : memref<2x3x512x512xbf16, #tpu.memory_space<vmem>>, vector<1x1x512x512xbf16>
    %28 = vector.shape_cast %27 : vector<1x1x512x512xbf16> to vector<512x512xbf16>
    %cst_29 = arith.constant dense<0.000000e+00> : vector<32x512xf32>
    %29 = tpu.matmul %26, %28, %cst_29 {dimension_numbers = #tpu.dot_dimension_numbers<[1], [0], [0], [1], [0, 0, 1, 1], [], []>} : vector<32x512xbf16>, vector<512x512xbf16>, vector<32x512xf32> -> vector<32x512xf32>
    %30 = arith.addf %23, %29 : vector<32x512xf32>
    %c0_30 = arith.constant 0 : index
    %c0_31 = arith.constant 0 : index
    %31 = vector.load %arg3[%c0_30, %c0_31] : memref<2x512xf32, #tpu.memory_space<vmem>>, vector<1x512xf32>
    %32 = vector.broadcast %31 : vector<1x512xf32> to vector<32x512xf32>
    %33 = arith.addf %30, %32 : vector<32x512xf32>
    %cst_32 = arith.constant 0.000000e+00 : f32
    %34 = vector.broadcast %cst_32 : f32 to vector<32x512xf32>
    %35 = arith.maximumf %33, %34 : vector<32x512xf32>
    %36 = arith.addf %8, %35 : vector<32x512xf32>
    %37 = vector.shape_cast %36 : vector<32x512xf32> to vector<2x16x512xf32>
    %c0_33 = arith.constant 0 : index
    %c0_34 = arith.constant 0 : index
    %c0_35 = arith.constant 0 : index
    %c0_36 = arith.constant 0 : index
    %38 = vector.load %arg5[%c0_33, %c0_34, %c0_35, %c0_36] : memref<2x2x16x512xf32, #tpu.memory_space<vmem>>, vector<1x2x16x512xf32>
    %39 = vector.shape_cast %38 : vector<1x2x16x512xf32> to vector<2x16x512xf32>
    %40 = vector.shape_cast %37 : vector<2x16x512xf32> to vector<1x2x16x512xf32>
    tpu.vector_store %arg5[%c0_33, %c0_34, %c0_35, %c0_36], %40 {strides = array<i32>} : memref<2x2x16x512xf32, #tpu.memory_space<vmem>>, vector<1x2x16x512xf32>,
    %cst_37 = arith.constant 0.000000e+00 : f32
    %41 = vector.broadcast %cst_37 : f32 to vector<32x512xf32>
    %c0_38 = arith.constant 0 : index
    %c0_39 = arith.constant 0 : index
    %c1_40 = arith.constant 1 : index
    %c0_41 = arith.constant 0 : index
    %42 = vector.load %arg1[%c0_38, %c0_39, %c1_40, %c0_41] : memref<3x2x18x512xbf16, #tpu.memory_space<vmem>>, vector<1x2x16x512xbf16>
    %43 = vector.shape_cast %42 : vector<1x2x16x512xbf16> to vector<2x16x512xbf16>
    %44 = vector.shape_cast %43 : vector<2x16x512xbf16> to vector<32x512xbf16>
    %c3 = arith.constant 3 : index
    %45 = memref.load %arg4[%c3] : memref<6xf32, #tpu.memory_space<smem>>
    %46 = arith.extf %44 : vector<32x512xbf16> to vector<32x512xf32>
    %47 = vector.broadcast %45 : f32 to vector<32x512xf32>
    %48 = arith.mulf %47, %46 : vector<32x512xf32>
    %49 = arith.addf %41, %48 : vector<32x512xf32>
    %cst_42 = arith.constant 0.000000e+00 : f32
    %50 = vector.broadcast %cst_42 : f32 to vector<32x512xf32>
    %c1_43 = arith.constant 1 : index
    %c0_44 = arith.constant 0 : index
    %c0_45 = arith.constant 0 : index
    %c0_46 = arith.constant 0 : index
    %51 = vector.load %arg1[%c1_43, %c0_44, %c0_45, %c0_46] : memref<3x2x18x512xbf16, #tpu.memory_space<vmem>>, vector<1x2x16x512xbf16>
    %52 = vector.shape_cast %51 : vector<1x2x16x512xbf16> to vector<2x16x512xbf16>
    %53 = vector.shape_cast %52 : vector<2x16x512xbf16> to vector<32x512xbf16>
    %c1_47 = arith.constant 1 : index
    %c0_48 = arith.constant 0 : index
    %c0_49 = arith.constant 0 : index
    %c0_50 = arith.constant 0 : index
    %54 = vector.load %arg2[%c1_47, %c0_48, %c0_49, %c0_50] : memref<2x3x512x512xbf16, #tpu.memory_space<vmem>>, vector<1x1x512x512xbf16>
    %55 = vector.shape_cast %54 : vector<1x1x512x512xbf16> to vector<512x512xbf16>
    %cst_51 = arith.constant dense<0.000000e+00> : vector<32x512xf32>
    %56 = tpu.matmul %53, %55, %cst_51 {dimension_numbers = #tpu.dot_dimension_numbers<[1], [0], [0], [1], [0, 0, 1, 1], [], []>} : vector<32x512xbf16>, vector<512x512xbf16>, vector<32x512xf32> -> vector<32x512xf32>
    %57 = arith.addf %50, %56 : vector<32x512xf32>
    %c1_52 = arith.constant 1 : index
    %c0_53 = arith.constant 0 : index
    %c1_54 = arith.constant 1 : index
    %c0_55 = arith.constant 0 : index
    %58 = vector.load %arg1[%c1_52, %c0_53, %c1_54, %c0_55] : memref<3x2x18x512xbf16, #tpu.memory_space<vmem>>, vector<1x2x16x512xbf16>
    %59 = vector.shape_cast %58 : vector<1x2x16x512xbf16> to vector<2x16x512xbf16>
    %60 = vector.shape_cast %59 : vector<2x16x512xbf16> to vector<32x512xbf16>
    %c1_56 = arith.constant 1 : index
    %c1_57 = arith.constant 1 : index
    %c0_58 = arith.constant 0 : index
    %c0_59 = arith.constant 0 : index
    %61 = vector.load %arg2[%c1_56, %c1_57, %c0_58, %c0_59] : memref<2x3x512x512xbf16, #tpu.memory_space<vmem>>, vector<1x1x512x512xbf16>
    %62 = vector.shape_cast %61 : vector<1x1x512x512xbf16> to vector<512x512xbf16>
    %cst_60 = arith.constant dense<0.000000e+00> : vector<32x512xf32>
    %63 = tpu.matmul %60, %62, %cst_60 {dimension_numbers = #tpu.dot_dimension_numbers<[1], [0], [0], [1], [0, 0, 1, 1], [], []>} : vector<32x512xbf16>, vector<512x512xbf16>, vector<32x512xf32> -> vector<32x512xf32>
    %64 = arith.addf %57, %63 : vector<32x512xf32>
    %c1_61 = arith.constant 1 : index
    %c0_62 = arith.constant 0 : index
    %c2_63 = arith.constant 2 : index
    %c0_64 = arith.constant 0 : index
    %65 = vector.load %arg1[%c1_61, %c0_62, %c2_63, %c0_64] : memref<3x2x18x512xbf16, #tpu.memory_space<vmem>>, vector<1x2x16x512xbf16>
    %66 = vector.shape_cast %65 : vector<1x2x16x512xbf16> to vector<2x16x512xbf16>
    %67 = vector.shape_cast %66 : vector<2x16x512xbf16> to vector<32x512xbf16>
    %c1_65 = arith.constant 1 : index
    %c2_66 = arith.constant 2 : index
    %c0_67 = arith.constant 0 : index
    %c0_68 = arith.constant 0 : index
    %68 = vector.load %arg2[%c1_65, %c2_66, %c0_67, %c0_68] : memref<2x3x512x512xbf16, #tpu.memory_space<vmem>>, vector<1x1x512x512xbf16>
    %69 = vector.shape_cast %68 : vector<1x1x512x512xbf16> to vector<512x512xbf16>
    %cst_69 = arith.constant dense<0.000000e+00> : vector<32x512xf32>
    %70 = tpu.matmul %67, %69, %cst_69 {dimension_numbers = #tpu.dot_dimension_numbers<[1], [0], [0], [1], [0, 0, 1, 1], [], []>} : vector<32x512xbf16>, vector<512x512xbf16>, vector<32x512xf32> -> vector<32x512xf32>
    %71 = arith.addf %64, %70 : vector<32x512xf32>
    %c1_70 = arith.constant 1 : index
    %c0_71 = arith.constant 0 : index
    %72 = vector.load %arg3[%c1_70, %c0_71] : memref<2x512xf32, #tpu.memory_space<vmem>>, vector<1x512xf32>
    %73 = vector.broadcast %72 : vector<1x512xf32> to vector<32x512xf32>
    %74 = arith.addf %71, %73 : vector<32x512xf32>
    %cst_72 = arith.constant 0.000000e+00 : f32
    %75 = vector.broadcast %cst_72 : f32 to vector<32x512xf32>
    %76 = arith.maximumf %74, %75 : vector<32x512xf32>
    %77 = arith.addf %49, %76 : vector<32x512xf32>
    %78 = vector.shape_cast %77 : vector<32x512xf32> to vector<2x16x512xf32>
    %c1_73 = arith.constant 1 : index
    %c0_74 = arith.constant 0 : index
    %c0_75 = arith.constant 0 : index
    %c0_76 = arith.constant 0 : index
    %79 = vector.load %arg5[%c1_73, %c0_74, %c0_75, %c0_76] : memref<2x2x16x512xf32, #tpu.memory_space<vmem>>, vector<1x2x16x512xf32>
    %80 = vector.shape_cast %79 : vector<1x2x16x512xf32> to vector<2x16x512xf32>
    %81 = vector.shape_cast %78 : vector<2x16x512xf32> to vector<1x2x16x512xf32>
    tpu.vector_store %arg5[%c1_73, %c0_74, %c0_75, %c0_76], %81 {strides = array<i32>} : memref<2x2x16x512xf32, #tpu.memory_space<vmem>>, vector<1x2x16x512xf32>,
    return
  }
  func.func @transform_0(%arg0: i32) -> (i32, i32, i32, i32) {
    %c0_i32 = arith.constant 0 : i32
    %c0_i32_0 = arith.constant 0 : i32
    %c0_i32_1 = arith.constant 0 : i32
    %c0_i32_2 = arith.constant 0 : i32
    return %c0_i32, %arg0, %c0_i32_0, %c0_i32_1 : i32, i32, i32, i32
  }
  func.func @transform_1(%arg0: i32) -> (i32, i32, i32, i32) {
    %c0_i32 = arith.constant 0 : i32
    %c0_i32_0 = arith.constant 0 : i32
    %c0_i32_1 = arith.constant 0 : i32
    %c0_i32_2 = arith.constant 0 : i32
    %c0_i32_3 = arith.constant 0 : i32
    return %c0_i32, %c0_i32_0, %c0_i32_1, %c0_i32_2 : i32, i32, i32, i32
  }
  func.func @transform_2(%arg0: i32) -> (i32, i32) {
    %c0_i32 = arith.constant 0 : i32
    %c0_i32_0 = arith.constant 0 : i32
    %c0_i32_1 = arith.constant 0 : i32
    return %c0_i32, %c0_i32_0 : i32, i32
  }
  func.func @transform_3(%arg0: i32) -> i32 {
    %c0_i32 = arith.constant 0 : i32
    %c0_i32_0 = arith.constant 0 : i32
    return %c0_i32 : i32
  }
  func.func @transform_4(%arg0: i32) -> (i32, i32, i32, i32) {
    %c0_i32 = arith.constant 0 : i32
    %c0_i32_0 = arith.constant 0 : i32
    %c0_i32_1 = arith.constant 0 : i32
    %c0_i32_2 = arith.constant 0 : i32
    return %c0_i32, %arg0, %c0_i32_0, %c0_i32_1 : i32, i32, i32, i32
  }
}

</mosaic_0001>

<bundles_post_ra>
// kernel: tpu_custom_call.1
= control target key start
LH: loop header
LB: loop body
LE: loop exit
PB: predicated region body
PF: predicated region fallthrough
CT: control target
= control target key end

     0   :  { %9 = vsyncpa [#allocation4], 0  ;;  %s10707_s0 = inlined_call_operand.vmem [shape: bf16[3,4,18,512], index: 0, kind: input, shape index: {}]   ;;  %s10708_s1 = inlined_call_operand.hbm [shape: bf16[2,3,512,512], index: 1, kind: input, shape index: {}]   ;;  %s10709_s2 = inlined_call_operand.hbm [shape: f32[2,512], index: 2, kind: input, shape index: {}]   ;;  %s10710_s3 = inlined_call_operand.hbm [shape: f32[6], index: 3, kind: input, shape index: {}]   ;;  %s10711_s4 = inlined_call_operand.hbm [shape: f32[2,4,16,512], index: 4, kind: output, shape index: {}]  }
   0x1   :  { %10 = vsyncpa [#allocation8], 0 }
   0x2   :  { %11 = vsyncpa [#allocation6], 0 }
   0x3   :  { %12 = vsyncpa [#allocation5], 0 }
   0x4   :  { %14 = vsyncpa [#allocation5 + $0x1], 0  ;;  %s9910_s15 = smov 0   ;;  %s9912_s16 = smov 0  }
   0x5   :  { %s9914_s17 = smov 0   ;;  %s9916_s18 = smov 0  }
   0x6 LB: > { %s9931_s19 = sadd.s32 4294967295, %s9871_s18   ;;  %s7410_s20 = sadd.s32 4294967294, %s9871_s18   ;;  %s9871_s18 = sphi %s9916_s18, %s10738_s18   ;;  %s9867_s17 = sphi %s9914_s17, %s10737_s17   ;;  %s9863_s16 = sphi %s9912_s16, %s10736_s16   ;;  %s9859_s15 = sphi %s9910_s15, %s10735_s15  }
   0x7   : > { %s9935_s21 = sadd.s32 1, %s9871_s18   ;;  %s27_s22 = sadd.s32 1, %s9867_s17 }
   0x8   : > { %s24_s23 = ssub.s32 %s9871_s18, %s9935_s21  ;;  %p34_p0 = scmp.ne.s32.totalorder %s9867_s17, %s9863_s16 }
   0x9   : > { %p25_p1 = scmp.eq.s32.totalorder %s24_s23, 0  ;;  %p35_p2 = scmp.eq.s32.totalorder %s9871_s18, 0 }
   0xa   : > { %p127_p3 = scmp.eq.s32.totalorder %s9931_s19, 1  ;;  %p132_p4 = scmp.ne.s32.totalorder %s9863_s16, %s9859_s15 }
   0xb   : > { %s9947_s24 = scalar_select %p25_p1, %s9867_s17, %s27_s22  }
   0xc   : > { %p9949_p5 = por %p35_p2, %p34_p0  ;;  %p9953_p6 = por %p127_p3, %p34_p0 }
   0xd   : > { %p133_p7 = scmp.eq.s32.totalorder %s7410_s20, 1  ;;  %p7411_p8 = scmp.ge.s32.totalorder %s9871_s18, 1 }
   0xe   : > { %s10715_s25 = scalar_select %p9949_p5, 1, 0 }
   0xf   : > { %s10716_s26 = scalar_select %p9953_p6, 1, 0 }
  0x10   : > { %p140_p9 = scmp.lt.s32.totalorder %s9871_s18, 3  ;;  %p9959_p10 = por %p133_p7, %p132_p4 }
  0x11   : > { %p10712_p11 = scmp.eq.s32.totalorder %s9931_s19, 0  ;;  %s9873_s29 = smov [#allocation3]  }
  0x12   : > { %s10717_s27 = scalar_select %p9959_p10, 1, 0 }
  0x13   : > { %p9964_p12 = pnand %p7411_p8, %p140_p9  ;;  %s152_s30 = sshll.u32 %s9873_s29, 4  ;;  %s153_s30 = int_to_ptr.vmem [resolvable:$true] %s152_s30 }
  0x14   : > { %s9874_s6 = smov [#allocation7]   ;;  %s9756_s10 = scalar_lea.hbm %s10708_s1, 98304 }
  0x15   : > { %s10718_s28 = scalar_select %p9964_p12, 1, 0 }
  0x16   : > { %p8501_p13 = pneg %p9964_p12  ;;  %s166_s7 = sshll.u32 %s9874_s6, 4  ;;  %s9976_s7 = int_to_ptr.vmem [resolvable:$true] %s166_s7 }
  0x17   : > { %p9757_p1 = scmp.ne.s32.totalorder %s10708_s1, %s9756_s10  ;;  %p9763_p7 = scmp.lt.u32.totalorder %s9756_s10, %s10708_s1 }
  0x18   : > { %p9972_p0 = pnand %p10712_p11, %p8501_p13 }
  0x1a   : > { %p9986_p2 = pneg %p9972_p0 }
  0x1c   : > { %p9759_p3 = pnand %p9986_p2, %p9757_p1 }
  0x1e   : > { %p9760_p4 = pneg %p9759_p3 }
  0x20   : > { %p9765_p8 = pnand %p9763_p7, %p9760_p4 }
  0x22   : > { %9768 = shalt.err (!%p9765_p8)
}
  0x23   : > { %s9769_s22 = scalar_lea.vmem %s153_s30, 98304  ;;  %p9777_p10 = scmp.lt.s32.totalorder %s153_s30, %s153_s30 }
  0x24   : > { %p9770_p9 = scmp.ne.s32.totalorder %s153_s30, %s9769_s22  ;;  %p9778_p6 = scmp.lt.s32.totalorder %s9769_s22, %s9769_s22 }
  0x26   : > { %p9772_p13 = pnand %p9770_p9, %p9986_p2  ;;  %p9779_p12 = por %p9778_p6, %p9777_p10 }
  0x28   : > { %p9773_p11 = pneg %p9772_p13 }
  0x2a   : > { %p9780_p5 = pnand %p9779_p12, %p9773_p11 }
  0x2c   : > { %9783 = shalt.err (!%p9780_p5)
}
  0x2d   : > { %s9875_s23 = smov 256   ;;  %s9876_s29 = smov 16  }
  0x2e   : > { %8504 = dma.hbm_to_vmem [thread:$0]  (!%p9972_p0), %s10708_s1, 98304, %s153_s30, [#allocation4], %s9875_s23, %s9875_s23, %s9876_s29  }
  0x2f   : > { %s9784_s11 = scalar_lea.hbm %s10709_s2, 128 }
  0x30   : > { %p9785_p1 = scmp.ne.s32.totalorder %s10709_s2, %s9784_s11  ;;  %p9791_p10 = scmp.lt.u32.totalorder %s9784_s11, %s10709_s2 }
  0x32   : > { %p9787_p6 = pnand %p9785_p1, %p9986_p2 }
  0x34   : > { %p9788_p5 = pneg %p9787_p6 }
  0x36   : > { %p9793_p11 = pnand %p9791_p10, %p9788_p5 }
  0x38   : > { %9796 = shalt.err (!%p9793_p11)
}
  0x39   : > { %s9797_s30 = scalar_lea.vmem %s9976_s7, 128  ;;  %p9805_p7 = scmp.lt.s32.totalorder %s9976_s7, %s9976_s7 }
  0x3a   : > { %p9798_p12 = scmp.ne.s32.totalorder %s9976_s7, %s9797_s30  ;;  %p9806_p8 = scmp.lt.s32.totalorder %s9797_s30, %s9797_s30 }
  0x3c   : > { %p9800_p3 = pnand %p9798_p12, %p9986_p2  ;;  %p9807_p9 = por %p9806_p8, %p9805_p7 }
  0x3e   : > { %p9801_p4 = pneg %p9800_p3 }
  0x40   : > { %p9808_p13 = pnand %p9807_p9, %p9801_p4 }
  0x42   : > { %9811 = shalt.err (!%p9808_p13)
}
  0x43   : > { %8507 = dma.hbm_to_vmem [thread:$0]  (!%p9972_p0), %s10709_s2, 128, %s9976_s7, [#allocation8]  }
  0x44   : > { %s9812_s9 = scalar_lea.hbm %s10710_s3, 16 }
  0x45   : > { %p9813_p1 = scmp.ne.s32.totalorder %s10710_s3, %s9812_s9  ;;  %p9819_p10 = scmp.lt.u32.totalorder %s9812_s9, %s10710_s3 }
  0x47   : > { %p9815_p6 = pnand %p9813_p1, %p9986_p2 }
  0x49   : > { %p9816_p5 = pneg %p9815_p6 }
  0x4b   : > { %p9821_p11 = pnand %p9819_p10, %p9816_p5 }
  0x4d   : > { %9824 = shalt.err (!%p9821_p11)
}
  0x4e   : > { %s9877_s20 = smov [#allocation9]   ;;  %p7415_p12 = scmp.ge.s32.totalorder %s9871_s18, 2 }
  0x4f   : > { %8510 = dma.hbm_to_smem (!%p9972_p0), %s10710_s3, 16, %s9877_s20, [#allocation6]  }
  0x50   : > { %182 = sbr.rel (%p7415_p12) target bundleno = 110 (0x6e), region = 28  ;;  %p10721_p2 = scmp.ne.s32.totalorder (!%p7415_p12), %s10715_s25, 0 }
  0x57   : > { %185 = sbr.rel (!%p10721_p2) target bundleno = 110 (0x6e), region = 32  ;;  %s187_s13 = sand.u32 (%p10721_p2), 1, %s9867_s17  }
  0x58   : > { %s8479_s30 = smul.u32 (%p10721_p2), 96, %s9871_s18 }
  0x59   : > { %s8478_s23 = smul.u32 (%p10721_p2), 288, %s187_s13 }
  0x5a   : > { %s10051_s5 = scalar_lea.vmem (%p10721_p2), %s10707_s0, %s8479_s30 }
  0x5b   : > { %v206_v0 = vld [vmem:[%s10051_s5] sm:$0xff] (%p10721_p2)  ;;  %v208_v1 = vld [vmem:[%s10051_s5 + $0x8] sm:$0xff] (%p10721_p2)  ;;  %v210_v2 = vld [vmem:[%s10051_s5 + $0x10] sm:$0xff] (%p10721_p2)  ;;  %s10056_s25 = scalar_lea.vmem (%p10721_p2), [#allocation2], %s8478_s23 }
  0x5c   : > { %207 = vst [vmem:[%s10056_s25] sm:$0xff] (%p10721_p2), %v206_v0  ;;  %209 = vst [vmem:[%s10056_s25 + $0x8] sm:$0xff] (%p10721_p2), %v208_v1  ;;  %v212_v3 = vld [vmem:[%s10051_s5 + $0x18] sm:$0xff] (%p10721_p2)  ;;  %v214_v4 = vld [vmem:[%s10051_s5 + $0x20] sm:$0xff] (%p10721_p2) }
  0x5d   : > { %211 = vst [vmem:[%s10056_s25 + $0x10] sm:$0xff] (%p10721_p2), %v210_v2  ;;  %v216_v5 = vld [vmem:[%s10051_s5 + $0x28] sm:$0xff] (%p10721_p2)  ;;  %213 = vst [vmem:[%s10056_s25 + $0x18] sm:$0xff] (%p10721_p2), %v212_v3  ;;  %v218_v6 = vld [vmem:[%s10051_s5 + $0x30] sm:$0xff] (%p10721_p2) }
  0x5e   : > { %215 = vst [vmem:[%s10056_s25 + $0x20] sm:$0xff] %v214_v4  ;;  %217 = vst [vmem:[%s10056_s25 + $0x28] sm:$0xff] %v216_v5  ;;  %v220_v7 = vld [vmem:[%s10051_s5 + $0x38] sm:$0xff]  ;;  %v222_v8 = vld [vmem:[%s10051_s5 + $0x40] sm:$0xff] }
  0x5f   : > { %219 = vst [vmem:[%s10056_s25 + $0x30] sm:$0xff] %v218_v6  ;;  %221 = vst [vmem:[%s10056_s25 + $0x38] sm:$0xff] %v220_v7  ;;  %v224_v9 = vld [vmem:[%s10051_s5 + $0x48] sm:$0xff]  ;;  %v226_v10 = vld [vmem:[%s10051_s5 + $0x50] sm:$0xff] }
  0x60   : > { %223 = vst [vmem:[%s10056_s25 + $0x40] sm:$0xff] %v222_v8  ;;  %v228_v11 = vld [vmem:[%s10051_s5 + $0x58] sm:$0xff]  ;;  %225 = vst [vmem:[%s10056_s25 + $0x48] sm:$0xff] %v224_v9  ;;  %v230_v12 = vld [vmem:[%s10051_s5 + $0xc0] sm:$0xff] }
  0x61   : > { %227 = vst [vmem:[%s10056_s25 + $0x50] sm:$0xff] %v226_v10  ;;  %229 = vst [vmem:[%s10056_s25 + $0x58] sm:$0xff] %v228_v11  ;;  %v232_v13 = vld [vmem:[%s10051_s5 + $0xc8] sm:$0xff]  ;;  %v234_v14 = vld [vmem:[%s10051_s5 + $0xd0] sm:$0xff] }
  0x62   : > { %231 = vst [vmem:[%s10056_s25 + $0x60] sm:$0xff] %v230_v12  ;;  %233 = vst [vmem:[%s10056_s25 + $0x68] sm:$0xff] %v232_v13  ;;  %v236_v15 = vld [vmem:[%s10051_s5 + $0xd8] sm:$0xff]  ;;  %v238_v16 = vld [vmem:[%s10051_s5 + $0xe0] sm:$0xff] }
  0x63   : > { %235 = vst [vmem:[%s10056_s25 + $0x70] sm:$0xff] %v234_v14  ;;  %v240_v17 = vld [vmem:[%s10051_s5 + $0xe8] sm:$0xff]  ;;  %237 = vst [vmem:[%s10056_s25 + $0x78] sm:$0xff] %v236_v15  ;;  %v242_v18 = vld [vmem:[%s10051_s5 + $0xf0] sm:$0xff] }
  0x64   : > { %239 = vst [vmem:[%s10056_s25 + $0x80] sm:$0xff] %v238_v16  ;;  %241 = vst [vmem:[%s10056_s25 + $0x88] sm:$0xff] %v240_v17  ;;  %v244_v19 = vld [vmem:[%s10051_s5 + $0xf8] sm:$0xff]  ;;  %v246_v20 = vld [vmem:[%s10051_s5 + $0x100] sm:$0xff] }
  0x65   : > { %243 = vst [vmem:[%s10056_s25 + $0x90] sm:$0xff] %v242_v18  ;;  %245 = vst [vmem:[%s10056_s25 + $0x98] sm:$0xff] %v244_v19  ;;  %v248_v21 = vld [vmem:[%s10051_s5 + $0x108] sm:$0xff]  ;;  %v250_v22 = vld [vmem:[%s10051_s5 + $0x110] sm:$0xff] }
  0x66   : > { %247 = vst [vmem:[%s10056_s25 + $0xa0] sm:$0xff] %v246_v20  ;;  %v252_v23 = vld [vmem:[%s10051_s5 + $0x118] sm:$0xff]  ;;  %249 = vst [vmem:[%s10056_s25 + $0xa8] sm:$0xff] %v248_v21  ;;  %v254_v24 = vld [vmem:[%s10051_s5 + $0x180] sm:$0xff] }
  0x67   : > { %251 = vst [vmem:[%s10056_s25 + $0xb0] sm:$0xff] %v250_v22  ;;  %253 = vst [vmem:[%s10056_s25 + $0xb8] sm:$0xff] %v252_v23  ;;  %v256_v25 = vld [vmem:[%s10051_s5 + $0x188] sm:$0xff]  ;;  %v258_v26 = vld [vmem:[%s10051_s5 + $0x190] sm:$0xff] }
  0x68   : > { %255 = vst [vmem:[%s10056_s25 + $0xc0] sm:$0xff] %v254_v24  ;;  %257 = vst [vmem:[%s10056_s25 + $0xc8] sm:$0xff] %v256_v25  ;;  %v260_v27 = vld [vmem:[%s10051_s5 + $0x198] sm:$0xff]  ;;  %v262_v28 = vld [vmem:[%s10051_s5 + $0x1a0] sm:$0xff] }
  0x69   : > { %259 = vst [vmem:[%s10056_s25 + $0xd0] sm:$0xff] %v258_v26  ;;  %v264_v29 = vld [vmem:[%s10051_s5 + $0x1a8] sm:$0xff]  ;;  %261 = vst [vmem:[%s10056_s25 + $0xd8] sm:$0xff] %v260_v27  ;;  %v266_v30 = vld [vmem:[%s10051_s5 + $0x1b0] sm:$0xff] }
  0x6a   : > { %263 = vst [vmem:[%s10056_s25 + $0xe0] sm:$0xff] %v262_v28  ;;  %265 = vst [vmem:[%s10056_s25 + $0xe8] sm:$0xff] %v264_v29  ;;  %v268_v31 = vld [vmem:[%s10051_s5 + $0x1b8] sm:$0xff]  ;;  %v270_v32 = vld [vmem:[%s10051_s5 + $0x1c0] sm:$0xff] }
  0x6b   : > { %267 = vst [vmem:[%s10056_s25 + $0xf0] sm:$0xff] %v266_v30  ;;  %269 = vst [vmem:[%s10056_s25 + $0xf8] sm:$0xff] %v268_v31  ;;  %v272_v33 = vld [vmem:[%s10051_s5 + $0x1c8] sm:$0xff]  ;;  %v274_v34 = vld [vmem:[%s10051_s5 + $0x1d0] sm:$0xff] }
  0x6c   : > { %271 = vst [vmem:[%s10056_s25 + $0x100] sm:$0xff] %v270_v32  ;;  %v276_v35 = vld [vmem:[%s10051_s5 + $0x1d8] sm:$0xff]  ;;  %273 = vst [vmem:[%s10056_s25 + $0x108] sm:$0xff] %v272_v33 }
  0x6d   : > { %275 = vst [vmem:[%s10056_s25 + $0x110] sm:$0xff] %v274_v34  ;;  %277 = vst [vmem:[%s10056_s25 + $0x118] sm:$0xff] %v276_v35 }
  0x6e PF: > { %p10722_p0 = scmp.ne.s32.totalorder %s10718_s28, 0 }
  0x6f   : > { %s10130_s8 = sand.u32 (!%p10722_p0), 1, %s9863_s16   ;;  %p10723_p3 = scmp.eq.s32.totalorder (!%p10722_p0), %s9931_s19, 0 }
  0x70   : > { %286 = sbr.rel (%p10722_p0) target bundleno = 1140 (0x474), region = 55 }
  0x71   : > { %s8480_s9 = smul.u32 (!%p10722_p0), 288, %s10130_s8 }
  0x73   : > { %s10133_s10 = scalar_lea.vmem (!%p10722_p0), [#allocation2], %s8480_s9 }
  0x77   : > { %9842 = dma.done.wait (%p10723_p3), [#allocation4], 98304   ;;  %p10724_p4 = pmov %p10723_p3 }
  0x78   : > { %p10725_p7 = pmov %p10723_p3 }
  0x79   : > { %9844 = vsyncadd (%p10724_p4), [#allocation4], 4294868992 }
  0x7a   : > { %9846 = dma.done.wait (%p10725_p7), [#allocation8], 128   ;;  %p10726_p8 = pmov %p10723_p3 }
  0x7b   : > { %p10727_p9 = pmov %p10723_p3 }
  0x7c   : > { %9848 = vsyncadd (%p10726_p8), [#allocation8], 4294967168 }
  0x7d   : > { %9850 = dma.done.wait (%p10727_p9), [#allocation6], 16   ;;  %p10728_p13 = pmov %p10723_p3 }
  0x7f   : > { %9852 = vsyncadd (%p10728_p13), [#allocation6], 4294967280 }
  0x80   : > { %307 = sfence }
  0x81   : > { %v8566_v36 = vld [vmem:[#allocation3 + $0x404] ss:$16 sps:$4 sm:$0xff]   ;;  %v8568_v37 = vld [vmem:[#allocation3 + $0x40c] ss:$16 sps:$4 sm:$0xff]   ;;  %v8570_v38 = vld [vmem:[#allocation3 + $0x400] ss:$16 sps:$4 sm:$0xff]  }
  0x82   : > { %1537 = vmatprep.subr.bf16.mxu0 %v8566_v36  ;;  %v8571_v39 = vld [vmem:[#allocation3 + $0x408] ss:$16 sps:$4 sm:$0xff]   ;;  %1643 = vmatprep.subr.bf16.mxu1 %v8568_v37  ;;  %v8572_v40 = vld [vmem:[#allocation3 + $0x424] ss:$16 sps:$4 sm:$0xff]   ;;  %v8574_v41 = vld [vmem:[#allocation3 + $0x42c] ss:$16 sps:$4 sm:$0xff]  }
  0x83   : > { %1538 = vmatpush1.bf16.msra.mxu0 %v8570_v38  ;;  %1644 = vmatpush1.bf16.msra.mxu1 %v8571_v39  ;;  %v8576_v42 = vld [vmem:[#allocation3 + $0x420] ss:$16 sps:$4 sm:$0xff]   ;;  %v8577_v43 = vld [vmem:[#allocation3 + $0x428] ss:$16 sps:$4 sm:$0xff]   ;;  %v8578_v44 = vld [vmem:[#allocation3 + $0x444] ss:$16 sps:$4 sm:$0xff]  }
  0x84   : > { %1539 = vmatprep.subr.bf16.mxu0 %v8572_v40  ;;  %1645 = vmatprep.subr.bf16.mxu1 %v8574_v41  ;;  %v8580_v45 = vld [vmem:[#allocation3 + $0x44c] ss:$16 sps:$4 sm:$0xff]   ;;  %v8582_v46 = vld [vmem:[#allocation3 + $0x440] ss:$16 sps:$4 sm:$0xff]   ;;  %v8583_v47 = vld [vmem:[#allocation3 + $0x448] ss:$16 sps:$4 sm:$0xff]  }
  0x85   : > { %v8584_v48 = vld [vmem:[#allocation3 + $0x464] ss:$16 sps:$4 sm:$0xff]   ;;  %v8586_v49 = vld [vmem:[#allocation3 + $0x46c] ss:$16 sps:$4 sm:$0xff]   ;;  %v8588_v50 = vld [vmem:[#allocation3 + $0x460] ss:$16 sps:$4 sm:$0xff]  }
  0x86   : > { %v8589_v51 = vld [vmem:[#allocation3 + $0x468] ss:$16 sps:$4 sm:$0xff]   ;;  %v8590_v52 = vld [vmem:[#allocation3 + $0x484] ss:$16 sps:$4 sm:$0xff]   ;;  %v8592_v53 = vld [vmem:[#allocation3 + $0x48c] ss:$16 sps:$4 sm:$0xff]  }
  0x87   : > { %1540 = vmatpush1.bf16.msra.mxu0 %v8576_v42  ;;  %1646 = vmatpush1.bf16.msra.mxu1 %v8577_v43  ;;  %v8594_v54 = vld [vmem:[#allocation3 + $0x480] ss:$16 sps:$4 sm:$0xff]   ;;  %v8595_v55 = vld [vmem:[#allocation3 + $0x488] ss:$16 sps:$4 sm:$0xff]   ;;  %v8596_v56 = vld [vmem:[#allocation3 + $0x4a4] ss:$16 sps:$4 sm:$0xff]  }
  0x88   : > { %1541 = vmatprep.subr.bf16.mxu0 %v8578_v44  ;;  %1647 = vmatprep.subr.bf16.mxu1 %v8580_v45  ;;  %v8598_v57 = vld [vmem:[#allocation3 + $0x4ac] ss:$16 sps:$4 sm:$0xff]   ;;  %v8600_v58 = vld [vmem:[#allocation3 + $0x4a0] ss:$16 sps:$4 sm:$0xff]   ;;  %v8601_v59 = vld [vmem:[#allocation3 + $0x4a8] ss:$16 sps:$4 sm:$0xff]  }
  0x89   : > { %v8602_v60 = vld [vmem:[#allocation3 + $0x4c4] ss:$16 sps:$4 sm:$0xff]   ;;  %v8604_v61 = vld [vmem:[#allocation3 + $0x4cc] ss:$16 sps:$4 sm:$0xff]   ;;  %v8606_v62 = vld [vmem:[#allocation3 + $0x4c0] ss:$16 sps:$4 sm:$0xff]  }
  0x8a   : > { %v8607_v63 = vld [vmem:[#allocation3 + $0x4c8] ss:$16 sps:$4 sm:$0xff]   ;;  %v8608_v0 = vld [vmem:[#allocation3 + $0x4e4] ss:$16 sps:$4 sm:$0xff]   ;;  %v8610_v1 = vld [vmem:[#allocation3 + $0x4ec] ss:$16 sps:$4 sm:$0xff]  }
  0x8b   : > { %1542 = vmatpush1.bf16.msra.mxu0 %v8582_v46  ;;  %1648 = vmatpush1.bf16.msra.mxu1 %v8583_v47  ;;  %v8612_v2 = vld [vmem:[#allocation3 + $0x4e0] ss:$16 sps:$4 sm:$0xff]   ;;  %v8613_v3 = vld [vmem:[#allocation3 + $0x4e8] ss:$16 sps:$4 sm:$0xff]   ;;  %v8614_v4 = vld [vmem:[#allocation3 + $0x504] ss:$16 sps:$4 sm:$0xff]  }
  0x8c   : > { %1543 = vmatprep.subr.bf16.mxu0 %v8584_v48  ;;  %1649 = vmatprep.subr.bf16.mxu1 %v8586_v49  ;;  %v8616_v5 = vld [vmem:[#allocation3 + $0x50c] ss:$16 sps:$4 sm:$0xff]   ;;  %v8618_v6 = vld [vmem:[#allocation3 + $0x500] ss:$16 sps:$4 sm:$0xff]   ;;  %v8619_v7 = vld [vmem:[#allocation3 + $0x508] ss:$16 sps:$4 sm:$0xff]  }
  0x8d   : > { %v8620_v8 = vld [vmem:[#allocation3 + $0x524] ss:$16 sps:$4 sm:$0xff]   ;;  %v8622_v9 = vld [vmem:[#allocation3 + $0x52c] ss:$16 sps:$4 sm:$0xff]   ;;  %v8624_v10 = vld [vmem:[#allocation3 + $0x520] ss:$16 sps:$4 sm:$0xff]  }
  0x8e   : > { %v8625_v11 = vld [vmem:[#allocation3 + $0x528] ss:$16 sps:$4 sm:$0xff]   ;;  %v8626_v12 = vld [vmem:[#allocation3 + $0x544] ss:$16 sps:$4 sm:$0xff]   ;;  %v8628_v13 = vld [vmem:[#allocation3 + $0x54c] ss:$16 sps:$4 sm:$0xff]  }
  0x8f   : > { %1544 = vmatpush1.bf16.msra.mxu0 %v8588_v50  ;;  %1650 = vmatpush1.bf16.msra.mxu1 %v8589_v51  ;;  %v8630_v14 = vld [vmem:[#allocation3 + $0x540] ss:$16 sps:$4 sm:$0xff]   ;;  %v8631_v15 = vld [vmem:[#allocation3 + $0x548] ss:$16 sps:$4 sm:$0xff]   ;;  %v8632_v16 = vld [vmem:[#allocation3 + $0x564] ss:$16 sps:$4 sm:$0xff]  }
  0x90   : > { %1545 = vmatprep.subr.bf16.mxu0 %v8590_v52  ;;  %1651 = vmatprep.subr.bf16.mxu1 %v8592_v53  ;;  %v8634_v17 = vld [vmem:[#allocation3 + $0x56c] ss:$16 sps:$4 sm:$0xff]   ;;  %v8636_v18 = vld [vmem:[#allocation3 + $0x560] ss:$16 sps:$4 sm:$0xff]   ;;  %v8637_v19 = vld [vmem:[#allocation3 + $0x568] ss:$16 sps:$4 sm:$0xff]  }
  0x91   : > { %vm342_vm0 = vsmask.f32 3328  ;;  %vm343_vm1 = vsmask.f32 7440  ;;  %v10148_v20 = vld [vmem:[%s10133_s10 + $0xc0] sm:$0xff]  ;;  %v10151_v21 = vld [vmem:[%s10133_s10 + $0xd0] sm:$0xff] }
  0x92   : > { %v7445_v22 = vld [vmem:[%s10133_s10 + $0xe0] sm:$0x11]  ;;  %v641_v23 = vshrl.u32 %v10148_v20, 16  ;;  %v644_v24 = vshll.u32 %v10148_v20, 16  ;;  %v650_v25 = vshll.u32 %v10151_v21, 16  ;;  %v668_v26 = vshrl.u32 %v10151_v21, 16  ;;  %vm10160_vm2 = vmor %vm342_vm0, %vm343_vm1 }
  0x93   : > { %1546 = vmatpush1.bf16.msra.mxu0 %v8594_v54  ;;  %1652 = vmatpush1.bf16.msra.mxu1 %v8595_v55  ;;  %v8638_v27 = vld [vmem:[#allocation3 + $0x584] ss:$16 sps:$4 sm:$0xff]   ;;  %v8640_v28 = vld [vmem:[#allocation3 + $0x58c] ss:$16 sps:$4 sm:$0xff]   ;;  %v674_v29 = vshll.u32 %v7445_v22, 16  ;;  %vm2653_vm3 = vcmask 1042432  }
  0x94   : > { %1547 = vmatprep.subr.bf16.mxu0 %v8596_v56  ;;  %1653 = vmatprep.subr.bf16.mxu1 %v8598_v57  ;;  %v643_v30 = vrot.slane %v641_v23, 4  ;;  %v646_v31 = vrot.slane %v644_v24, 5  ;;  %v652_v32 = vrot.slane %v650_v25, 5  ;;  %v670_v33 = vrot.slane %v668_v26, 4  ;;  %v8642_v34 = vld [vmem:[#allocation3 + $0x580] ss:$16 sps:$4 sm:$0xff]  }
  0x95   : > { %v8643_v35 = vld [vmem:[#allocation3 + $0x588] ss:$16 sps:$4 sm:$0xff]   ;;  %v8644_v36 = vld [vmem:[#allocation3 + $0x5a4] ss:$16 sps:$4 sm:$0xff]   ;;  %v676_v39 = vrot.slane %v674_v29, 5  ;;  %vm2654_vm4 = vcmask 1046532  }
  0x96   : > { %v647_v37 = vor.u32 %v646_v31, %v643_v30  ;;  %v671_v38 = vor.u32 %v670_v33, %v652_v32  ;;  %v8646_v40 = vld [vmem:[#allocation3 + $0x5ac] ss:$16 sps:$4 sm:$0xff]   ;;  %v8648_v44 = vld [vmem:[#allocation3 + $0x5a0] ss:$16 sps:$4 sm:$0xff]   ;;  %v8649_v45 = vld [vmem:[#allocation3 + $0x5a8] ss:$16 sps:$4 sm:$0xff]  }
  0x97   : > { %1548 = vmatpush1.bf16.msra.mxu0 %v8600_v58  ;;  %1654 = vmatpush1.bf16.msra.mxu1 %v8601_v59  ;;  %v8650_v48 = vld [vmem:[#allocation3 + $0x5c4] ss:$16 sps:$4 sm:$0xff]   ;;  %v8652_v49 = vld [vmem:[#allocation3 + $0x5cc] ss:$16 sps:$4 sm:$0xff]   ;;  %v8654_v51 = vld [vmem:[#allocation3 + $0x5c0] ss:$16 sps:$4 sm:$0xff]  }
  0x98   : > { %1549 = vmatprep.subr.bf16.mxu0 %v8602_v60  ;;  %1655 = vmatprep.subr.bf16.mxu1 %v8604_v61  ;;  %v648_v42 = vrot.slane %v647_v37, 4  ;;  %v672_v43 = vrot.slane %v671_v38, 4  ;;  %v8655_v52 = vld [vmem:[#allocation3 + $0x5c8] ss:$16 sps:$4 sm:$0xff]   ;;  %v8656_v53 = vld [vmem:[#allocation3 + $0x5e4] ss:$16 sps:$4 sm:$0xff]   ;;  %vm10240_vm5 = vmor %vm2653_vm3, %vm2654_vm4 }
  0x99   : > { %v8658_v54 = vld [vmem:[#allocation3 + $0x5ec] ss:$16 sps:$4 sm:$0xff]   ;;  %v8660_v55 = vld [vmem:[#allocation3 + $0x5e0] ss:$16 sps:$4 sm:$0xff]   ;;  %v8661_v56 = vld [vmem:[#allocation3 + $0x5e8] ss:$16 sps:$4 sm:$0xff]  }
  0x9a   : > { %v653_v46 = vsel %vm10160_vm2, %v648_v42, %v652_v32  ;;  %v677_v47 = vsel %vm10160_vm2, %v672_v43, %v676_v39  ;;  %v8664_v57 = vld [vmem:[#allocation3 + $0x604] ss:$16 sps:$4 sm:$0xff]   ;;  %v8667_v58 = vld [vmem:[#allocation3 + $0x60c] ss:$16 sps:$4 sm:$0xff]   ;;  %v8662_v60 = vld [vmem:[#allocation3 + $0x600] ss:$16 sps:$4 sm:$0xff]  }
  0x9b   : > { %1550 = vmatpush1.bf16.msra.mxu0 %v8606_v62  ;;  %1656 = vmatpush1.bf16.msra.mxu1 %v8607_v63  ;;  %v7450_v50 = vcombine.high %v653_v46, %v677_v47  ;;  %v7449_v59 = vcombine.low %v653_v46, %v677_v47  ;;  %v8665_v61 = vld [vmem:[#allocation3 + $0x608] ss:$16 sps:$4 sm:$0xff]   ;;  %v8670_v62 = vld [vmem:[#allocation3 + $0x624] ss:$16 sps:$4 sm:$0xff]   ;;  %v8673_v63 = vld [vmem:[#allocation3 + $0x62c] ss:$16 sps:$4 sm:$0xff]  }
  0x9c   : > { %1551 = vmatprep.subr.bf16.mxu0 %v8608_v0  ;;  %1657 = vmatprep.subr.bf16.mxu1 %v8610_v1  ;;  %v8668_v0 = vld [vmem:[#allocation3 + $0x620] ss:$16 sps:$4 sm:$0xff]   ;;  %v8671_v1 = vld [vmem:[#allocation3 + $0x628] ss:$16 sps:$4 sm:$0xff]   ;;  %v8706_v39 = vld [vmem:[#allocation3 + $0x6e4] ss:$16 sps:$4 sm:$0xff]  }
  0x9d   : > { %1569 = vmatprep.mubr.bf16.mxu0 %v7450_v50  ;;  %1675 = vmatprep.mubr.bf16.mxu1 %v7450_v50  ;;  %v7447_v22 = vld [vmem:[%s10133_s10 + $0x110] sm:$0x11]  ;;  %v7446_v46 = vld [vmem:[%s10133_s10 + $0xe8] sm:$0x11]  ;;  %s10393_s28 = sld [smem:[#allocation9 + $0x1]]  ;;  %s7423_s11 = sshll.u32 %s10130_s8, 8 }
  0x9e   : > { %v722_v29 = vshll.u32 %v7447_v22, 16  ;;  %v8730_v22 = vld [vmem:[#allocation3 + $0x764] ss:$16 sps:$4 sm:$0xff]   ;;  %s10478_s12 = scalar_lea.vmem [#allocation10], %s7423_s11  ;;  %s7865_s14 = sld [smem:[#allocation9 + $0x3]] }
  0x9f   : > { %1552 = vmatpush1.bf16.msra.mxu0 %v8612_v2  ;;  %1658 = vmatpush1.bf16.msra.mxu1 %v8613_v3  ;;  %v8676_v2 = vld [vmem:[#allocation3 + $0x644] ss:$16 sps:$4 sm:$0xff]   ;;  %v8679_v3 = vld [vmem:[#allocation3 + $0x64c] ss:$16 sps:$4 sm:$0xff]   ;;  %s7265_s20 = scalar_lea.sflag [#allocation5], %s10130_s8 }
  0xa0   : > { %1553 = vmatprep.subr.bf16.mxu0 %v8614_v4  ;;  %1659 = vmatprep.subr.bf16.mxu1 %v8616_v5  ;;  %v8674_v4 = vld [vmem:[#allocation3 + $0x640] ss:$16 sps:$4 sm:$0xff]   ;;  %v8677_v5 = vld [vmem:[#allocation3 + $0x648] ss:$16 sps:$4 sm:$0xff]   ;;  %v724_v38 = vrot.slane %v722_v29, 5 }
  0xa1   : > { %v8737_v29 = vld [vmem:[#allocation3 + $0x788] ss:$16 sps:$4 sm:$0xff]  }
  0xa3   : > { %1554 = vmatpush1.bf16.msra.mxu0 %v8618_v6  ;;  %1660 = vmatpush1.bf16.msra.mxu1 %v8619_v7  ;;  %v8682_v6 = vld [vmem:[#allocation3 + $0x664] ss:$16 sps:$4 sm:$0xff]   ;;  %v8685_v7 = vld [vmem:[#allocation3 + $0x66c] ss:$16 sps:$4 sm:$0xff]  }
  0xa4   : > { %1555 = vmatprep.subr.bf16.mxu0 %v8620_v8  ;;  %1661 = vmatprep.subr.bf16.mxu1 %v8622_v9  ;;  %v8680_v8 = vld [vmem:[#allocation3 + $0x660] ss:$16 sps:$4 sm:$0xff]   ;;  %v8683_v9 = vld [vmem:[#allocation3 + $0x668] ss:$16 sps:$4 sm:$0xff]  }
  0xa7   : > { %1556 = vmatpush1.bf16.msra.mxu0 %v8624_v10  ;;  %1662 = vmatpush1.bf16.msra.mxu1 %v8625_v11  ;;  %v8688_v10 = vld [vmem:[#allocation3 + $0x684] ss:$16 sps:$4 sm:$0xff]   ;;  %v8691_v11 = vld [vmem:[#allocation3 + $0x68c] ss:$16 sps:$4 sm:$0xff]  }
  0xa8   : > { %1557 = vmatprep.subr.bf16.mxu0 %v8626_v12  ;;  %1663 = vmatprep.subr.bf16.mxu1 %v8628_v13  ;;  %v8686_v12 = vld [vmem:[#allocation3 + $0x680] ss:$16 sps:$4 sm:$0xff]   ;;  %v8689_v13 = vld [vmem:[#allocation3 + $0x688] ss:$16 sps:$4 sm:$0xff]  }
  0xab   : > { %1558 = vmatpush1.bf16.msra.mxu0 %v8630_v14  ;;  %1664 = vmatpush1.bf16.msra.mxu1 %v8631_v15  ;;  %v8694_v14 = vld [vmem:[#allocation3 + $0x6a4] ss:$16 sps:$4 sm:$0xff]   ;;  %v8697_v15 = vld [vmem:[#allocation3 + $0x6ac] ss:$16 sps:$4 sm:$0xff]  }
  0xac   : > { %1559 = vmatprep.subr.bf16.mxu0 %v8632_v16  ;;  %1665 = vmatprep.subr.bf16.mxu1 %v8634_v17  ;;  %v8692_v16 = vld [vmem:[#allocation3 + $0x6a0] ss:$16 sps:$4 sm:$0xff]   ;;  %v8695_v17 = vld [vmem:[#allocation3 + $0x6a8] ss:$16 sps:$4 sm:$0xff]  }
  0xaf   : > { %1560 = vmatpush1.bf16.msra.mxu0 %v8636_v18  ;;  %1666 = vmatpush1.bf16.msra.mxu1 %v8637_v19  ;;  %v10169_v18 = vld [vmem:[%s10133_s10 + $0xf0] sm:$0xff]  ;;  %v10172_v19 = vld [vmem:[%s10133_s10 + $0x100] sm:$0xff] }
  0xb0   : > { %1561 = vmatprep.subr.bf16.mxu0 %v8638_v27  ;;  %1667 = vmatprep.subr.bf16.mxu1 %v8640_v28  ;;  %v689_v23 = vshrl.u32 %v10169_v18, 16  ;;  %v692_v24 = vshll.u32 %v10169_v18, 16  ;;  %v698_v25 = vshll.u32 %v10172_v19, 16  ;;  %v716_v26 = vshrl.u32 %v10172_v19, 16  ;;  %v8700_v27 = vld [vmem:[#allocation3 + $0x6c4] ss:$16 sps:$4 sm:$0xff]  }
  0xb1   : > { %v8703_v28 = vld [vmem:[#allocation3 + $0x6cc] ss:$16 sps:$4 sm:$0xff]  }
  0xb2   : > { %v691_v30 = vrot.slane %v689_v23, 4  ;;  %v694_v31 = vrot.slane %v692_v24, 5  ;;  %v700_v32 = vrot.slane %v698_v25, 5  ;;  %v718_v33 = vrot.slane %v716_v26, 4  ;;  %v8733_v23 = vld [vmem:[#allocation3 + $0x76c] ss:$16 sps:$4 sm:$0xff]  }
  0xb3   : > { %1562 = vmatpush1.bf16.msra.mxu0 %v8642_v34  ;;  %1668 = vmatpush1.bf16.msra.mxu1 %v8643_v35  ;;  %v8698_v34 = vld [vmem:[#allocation3 + $0x6c0] ss:$16 sps:$4 sm:$0xff]   ;;  %v8701_v35 = vld [vmem:[#allocation3 + $0x6c8] ss:$16 sps:$4 sm:$0xff]   ;;  %v8736_v26 = vld [vmem:[#allocation3 + $0x784] ss:$16 sps:$4 sm:$0xff]  }
  0xb4   : > { %1563 = vmatprep.subr.bf16.mxu0 %v8644_v36  ;;  %1669 = vmatprep.subr.bf16.mxu1 %v8646_v40  ;;  %v695_v36 = vor.u32 %v694_v31, %v691_v30  ;;  %v719_v37 = vor.u32 %v718_v33, %v700_v32  ;;  %v8709_v40 = vld [vmem:[#allocation3 + $0x6ec] ss:$16 sps:$4 sm:$0xff]   ;;  %v8728_v24 = vld [vmem:[#allocation3 + $0x760] ss:$16 sps:$4 sm:$0xff]   ;;  %v8731_v25 = vld [vmem:[#allocation3 + $0x768] ss:$16 sps:$4 sm:$0xff]  }
  0xb5   : > { %v8742_v30 = vld [vmem:[#allocation3 + $0x7a4] ss:$16 sps:$4 sm:$0xff]   ;;  %v8745_v31 = vld [vmem:[#allocation3 + $0x7ac] ss:$16 sps:$4 sm:$0xff]   ;;  %v8743_v33 = vld [vmem:[#allocation3 + $0x7a8] ss:$16 sps:$4 sm:$0xff]  }
  0xb6   : > { %v696_v42 = vrot.slane %v695_v36, 4  ;;  %v720_v43 = vrot.slane %v719_v37, 4  ;;  %v8746_v36 = vld [vmem:[#allocation3 + $0x7c0] ss:$16 sps:$4 sm:$0xff]   ;;  %v8749_v37 = vld [vmem:[#allocation3 + $0x7c8] ss:$16 sps:$4 sm:$0xff]  }
  0xb7   : > { %1564 = vmatpush1.bf16.msra.mxu0 %v8648_v44  ;;  %1670 = vmatpush1.bf16.msra.mxu1 %v8649_v45  ;;  %v10180_v44 = vld [vmem:[%s10133_s10 + $0xc8] sm:$0xff]  ;;  %v10183_v45 = vld [vmem:[%s10133_s10 + $0xd8] sm:$0xff] }
  0xb8   : > { %1565 = vmatprep.subr.bf16.mxu0 %v8650_v48  ;;  %1671 = vmatprep.subr.bf16.mxu1 %v8652_v49  ;;  %v655_v47 = vshrl.u32 %v10180_v44, 16  ;;  %v658_v48 = vshll.u32 %v10180_v44, 16  ;;  %v664_v49 = vshll.u32 %v10183_v45, 16  ;;  %v678_v50 = vshrl.u32 %v10183_v45, 16 }
  0xbb   : > { %1566 = vmatpush1.bf16.msra.mxu0 %v8654_v51  ;;  %1672 = vmatpush1.bf16.msra.mxu1 %v8655_v52  ;;  %v8704_v51 = vld [vmem:[#allocation3 + $0x6e0] ss:$16 sps:$4 sm:$0xff]   ;;  %v8707_v52 = vld [vmem:[#allocation3 + $0x6e8] ss:$16 sps:$4 sm:$0xff]  }
  0xbc   : > { %1567 = vmatprep.subr.bf16.mxu0 %v8656_v53  ;;  %1673 = vmatprep.subr.bf16.mxu1 %v8658_v54  ;;  %v701_v53 = vsel %vm10160_vm2, %v696_v42, %v700_v32  ;;  %v725_v54 = vsel %vm10160_vm2, %v720_v43, %v724_v38  ;;  %v8740_v32 = vld [vmem:[#allocation3 + $0x7a0] ss:$16 sps:$4 sm:$0xff]   ;;  %v8754_v38 = vld [vmem:[#allocation3 + $0x7e4] ss:$16 sps:$4 sm:$0xff]   ;;  %v8755_v42 = vld [vmem:[#allocation3 + $0x7e8] ss:$16 sps:$4 sm:$0xff]  }
  0xbd   : > { %v8760_v43 = vld [vmem:[#allocation3 + $0x4] ss:$16 sps:$4 sm:$0xff]  }
  0xbf   : > { %1568 = vmatpush1.bf16.msra.mxu0 %v8660_v55  ;;  %1674 = vmatpush1.bf16.msra.mxu1 %v8661_v56  ;;  %v684_v55 = vshll.u32 %v7446_v46, 16  ;;  %v8712_v56 = vld [vmem:[#allocation3 + $0x704] ss:$16 sps:$4 sm:$0xff]   ;;  %v8763_v46 = vld [vmem:[#allocation3 + $0xc] ss:$16 sps:$4 sm:$0xff]  }
  0xc0   : > { %1590 = vmatprep.subr.bf16.mxu0 %v8664_v57  ;;  %1696 = vmatprep.subr.bf16.mxu1 %v8667_v58  ;;  %v7454_v57 = vcombine.high %v701_v53, %v725_v54  ;;  %v7453_v58 = vcombine.low %v701_v53, %v725_v54  ;;  %v10206_v53 = vld [vmem:[%s10133_s10 + $0x108] sm:$0xff]  ;;  %v7448_v54 = vld [vmem:[%s10133_s10 + $0x118] sm:$0x11] }
  0xc2   : > { %1570 = vmatmul.mubr.bf16.vlgmr.msra.gmra.mrb[0].mxu0 %v7449_v59  ;;  %1676 = vmatmul.mubr.bf16.vlgmr.msra.gmra.mrb[0].mxu1 %v7449_v59  ;;  %v657_v59 = vrot.slane %v655_v47, 4  ;;  %v8758_v47 = vld [vmem:[#allocation3] ss:$16 sps:$4 sm:$0xff]  }
  0xc3   : > { %1591 = vmatpush1.bf16.msra.mxu0 %v8662_v60  ;;  %1697 = vmatpush1.bf16.msra.mxu1 %v8665_v61  ;;  %v660_v60 = vrot.slane %v658_v48, 5  ;;  %v8715_v61 = vld [vmem:[#allocation3 + $0x70c] ss:$16 sps:$4 sm:$0xff]   ;;  %v8761_v48 = vld [vmem:[#allocation3 + $0x8] ss:$16 sps:$4 sm:$0xff]  }
  0xc4   : > { %1592 = vmatprep.subr.bf16.mxu0 %v8670_v62  ;;  %1698 = vmatprep.subr.bf16.mxu1 %v8673_v63  ;;  %v666_v62 = vrot.slane %v664_v49, 5  ;;  %v680_v63 = vrot.slane %v678_v50, 4  ;;  %v8766_v50 = vld [vmem:[#allocation3 + $0x24] ss:$16 sps:$4 sm:$0xff]  }
  0xc5   : > { %1579 = vmatprep.mubr.bf16.mxu0 %v7454_v57  ;;  %1685 = vmatprep.mubr.bf16.mxu1 %v7454_v57  ;;  %v712_v57 = vshll.u32 %v10206_v53, 16 }
  0xc7   : > { %1593 = vmatpush1.bf16.msra.mxu0 %v8668_v0  ;;  %1699 = vmatpush1.bf16.msra.mxu1 %v8671_v1  ;;  %v661_v0 = vor.u32 %v660_v60, %v657_v59  ;;  %v8710_v1 = vld [vmem:[#allocation3 + $0x700] ss:$16 sps:$4 sm:$0xff]   ;;  %v732_v59 = vshll.u32 %v7448_v54, 16  ;;  %v8821_v54 = vld [vmem:[#allocation3 + $0x148] ss:$16 sps:$4 sm:$0xff]  }
  0xc8   : > { %1594 = vmatprep.subr.bf16.mxu0 %v8676_v2  ;;  %1700 = vmatprep.subr.bf16.mxu1 %v8679_v3  ;;  %v8713_v2 = vld [vmem:[#allocation3 + $0x708] ss:$16 sps:$4 sm:$0xff]   ;;  %v681_v3 = vor.u32 %v680_v63, %v666_v62 }
  0xca   : > { %1580 = vmatmul.mubr.bf16.gmra.mrb[4].mxu0 %v7453_v58  ;;  %1686 = vmatmul.mubr.bf16.gmra.mrb[4].mxu1 %v7453_v58  ;;  %v726_v58 = vshrl.u32 %v10206_v53, 16 }
  0xcb   : > { %1595 = vmatpush1.bf16.msra.mxu0 %v8674_v4  ;;  %1701 = vmatpush1.bf16.msra.mxu1 %v8677_v5  ;;  %v686_v4 = vrot.slane %v684_v55, 5  ;;  %v8718_v5 = vld [vmem:[#allocation3 + $0x724] ss:$16 sps:$4 sm:$0xff]  }
  0xcc   : > { %1596 = vmatprep.subr.bf16.mxu0 %v8682_v6  ;;  %1702 = vmatprep.subr.bf16.mxu1 %v8685_v7  ;;  %v662_v6 = vrot.slane %v661_v0, 4  ;;  %v8721_v7 = vld [vmem:[#allocation3 + $0x72c] ss:$16 sps:$4 sm:$0xff]   ;;  %v728_v63 = vrot.slane %v726_v58, 4  ;;  %v8764_v0 = vld [vmem:[#allocation3 + $0x20] ss:$16 sps:$4 sm:$0xff]  }
  0xcd   : > { %v8827_v58 = vld [vmem:[#allocation3 + $0x168] ss:$16 sps:$4 sm:$0xff]  }
  0xcf   : > { %1597 = vmatpush1.bf16.msra.mxu0 %v8680_v8  ;;  %1703 = vmatpush1.bf16.msra.mxu1 %v8683_v9  ;;  %v682_v8 = vrot.slane %v681_v3, 4  ;;  %v10196_v9 = vsel %vm10160_vm2, %v662_v6, %v666_v62  ;;  %v714_v62 = vrot.slane %v712_v57, 5  ;;  %v8775_v3 = vld [vmem:[#allocation3 + $0x4c] ss:$16 sps:$4 sm:$0xff]   ;;  %v734_v6 = vrot.slane %v732_v59, 5 }
  0xd0   : > { %1598 = vmatprep.subr.bf16.mxu0 %v8688_v10  ;;  %1704 = vmatprep.subr.bf16.mxu1 %v8691_v11  ;;  %v8716_v10 = vld [vmem:[#allocation3 + $0x720] ss:$16 sps:$4 sm:$0xff]   ;;  %v8719_v11 = vld [vmem:[#allocation3 + $0x728] ss:$16 sps:$4 sm:$0xff]   ;;  %v8832_v59 = vld [vmem:[#allocation3 + $0x184] ss:$16 sps:$4 sm:$0xff]  }
  0xd1   : > { %v8824_v57 = vld [vmem:[#allocation3 + $0x160] ss:$16 sps:$4 sm:$0xff]  }
  0xd3   : > { %1599 = vmatpush1.bf16.msra.mxu0 %v8686_v12  ;;  %1705 = vmatpush1.bf16.msra.mxu1 %v8689_v13  ;;  %v687_v12 = vsel %vm10160_vm2, %v682_v8, %v686_v4  ;;  %v8724_v13 = vld [vmem:[#allocation3 + $0x744] ss:$16 sps:$4 sm:$0xff]  }
  0xd4   : > { %1600 = vmatprep.subr.bf16.mxu0 %v8694_v14  ;;  %1706 = vmatprep.subr.bf16.mxu1 %v8697_v15  ;;  %v7452_v14 = vcombine.high %v10196_v9, %v687_v12  ;;  %v8727_v15 = vld [vmem:[#allocation3 + $0x74c] ss:$16 sps:$4 sm:$0xff]   ;;  %v7451_v49 = vcombine.low %v10196_v9, %v687_v12 }
  0xd5   : > { %v8781_v12 = vld [vmem:[#allocation3 + $0x6c] ss:$16 sps:$4 sm:$0xff]  }
  0xd6   : > { %1622 = vmatprep.mubr.bf16.mxu0 %v7452_v14  ;;  %1728 = vmatprep.mubr.bf16.mxu1 %v7452_v14 }
  0xd7   : > { %1601 = vmatpush1.bf16.msra.mxu0 %v8692_v16  ;;  %1707 = vmatpush1.bf16.msra.mxu1 %v8695_v17  ;;  %v8722_v16 = vld [vmem:[#allocation3 + $0x740] ss:$16 sps:$4 sm:$0xff]   ;;  %v8725_v17 = vld [vmem:[#allocation3 + $0x748] ss:$16 sps:$4 sm:$0xff]  }
  0xd8   : > { %1602 = vmatprep.subr.bf16.mxu0 %v8700_v27  ;;  %1708 = vmatprep.subr.bf16.mxu1 %v8703_v28  ;;  %v8739_v27 = vld [vmem:[#allocation3 + $0x78c] ss:$16 sps:$4 sm:$0xff]   ;;  %v8734_v28 = vld [vmem:[#allocation3 + $0x780] ss:$16 sps:$4 sm:$0xff]  }
  0xdb   : > { %1603 = vmatpush1.bf16.msra.mxu0 %v8698_v34  ;;  %1709 = vmatpush1.bf16.msra.mxu1 %v8701_v35  ;;  %v8748_v34 = vld [vmem:[#allocation3 + $0x7c4] ss:$16 sps:$4 sm:$0xff]   ;;  %v8751_v35 = vld [vmem:[#allocation3 + $0x7cc] ss:$16 sps:$4 sm:$0xff]  }
  0xdc   : > { %1604 = vmatprep.subr.bf16.mxu0 %v8706_v39  ;;  %1710 = vmatprep.subr.bf16.mxu1 %v8709_v40  ;;  %v8757_v39 = vld [vmem:[#allocation3 + $0x7ec] ss:$16 sps:$4 sm:$0xff]   ;;  %v8752_v40 = vld [vmem:[#allocation3 + $0x7e0] ss:$16 sps:$4 sm:$0xff]  }
  0xdf   : > { %1605 = vmatpush1.bf16.msra.mxu0 %v8704_v51  ;;  %1711 = vmatpush1.bf16.msra.mxu1 %v8707_v52  ;;  %v8769_v51 = vld [vmem:[#allocation3 + $0x2c] ss:$16 sps:$4 sm:$0xff]  }
  0xe0   : > { %1606 = vmatprep.subr.bf16.mxu0 %v8712_v56  ;;  %1712 = vmatprep.subr.bf16.mxu1 %v8715_v61  ;;  %v10203_v52 = vld [vmem:[%s10133_s10 + $0xf8] sm:$0xff] }
  0xe1   : > { %v703_v55 = vshrl.u32 %v10203_v52, 16  ;;  %v706_v56 = vshll.u32 %v10203_v52, 16 }
  0xe3   : > { %1607 = vmatpush1.bf16.msra.mxu0 %v8710_v1  ;;  %1713 = vmatpush1.bf16.msra.mxu1 %v8713_v2  ;;  %v705_v60 = vrot.slane %v703_v55, 4  ;;  %v708_v61 = vrot.slane %v706_v56, 5  ;;  %v8767_v1 = vld [vmem:[#allocation3 + $0x28] ss:$16 sps:$4 sm:$0xff]   ;;  %v8772_v2 = vld [vmem:[#allocation3 + $0x44] ss:$16 sps:$4 sm:$0xff]  }
  0xe4   : > { %1608 = vmatprep.subr.bf16.mxu0 %v8718_v5  ;;  %1714 = vmatprep.subr.bf16.mxu1 %v8721_v7  ;;  %v729_v5 = vor.u32 %v728_v63, %v714_v62  ;;  %v8770_v7 = vld [vmem:[#allocation3 + $0x40] ss:$16 sps:$4 sm:$0xff]   ;;  %v8826_v55 = vld [vmem:[#allocation3 + $0x164] ss:$16 sps:$4 sm:$0xff]   ;;  %v8829_v56 = vld [vmem:[#allocation3 + $0x16c] ss:$16 sps:$4 sm:$0xff]  }
  0xe5   : > { %v709_v4 = vor.u32 %v708_v61, %v705_v60  ;;  %v8835_v60 = vld [vmem:[#allocation3 + $0x18c] ss:$16 sps:$4 sm:$0xff]   ;;  %v8830_v61 = vld [vmem:[#allocation3 + $0x180] ss:$16 sps:$4 sm:$0xff]   ;;  %v8838_v63 = vld [vmem:[#allocation3 + $0x1a4] ss:$16 sps:$4 sm:$0xff]  }
  0xe6   : > { %v730_v9 = vrot.slane %v729_v5, 4  ;;  %v8842_v5 = vld [vmem:[#allocation3 + $0x1c0] ss:$16 sps:$4 sm:$0xff]  }
  0xe7   : > { %1609 = vmatpush1.bf16.msra.mxu0 %v8716_v10  ;;  %1715 = vmatpush1.bf16.msra.mxu1 %v8719_v11  ;;  %v710_v8 = vrot.slane %v709_v4, 4  ;;  %v8773_v10 = vld [vmem:[#allocation3 + $0x48] ss:$16 sps:$4 sm:$0xff]   ;;  %v8778_v11 = vld [vmem:[#allocation3 + $0x64] ss:$16 sps:$4 sm:$0xff]  }
  0xe8   : > { %1610 = vmatprep.subr.bf16.mxu0 %v8724_v13  ;;  %1716 = vmatprep.subr.bf16.mxu1 %v8727_v15  ;;  %v735_v14 = vsel %vm10160_vm2, %v730_v9, %v734_v6  ;;  %v8847_v4 = vld [vmem:[#allocation3 + $0x1cc] ss:$16 sps:$4 sm:$0xff]   ;;  %v8845_v6 = vld [vmem:[#allocation3 + $0x1c8] ss:$16 sps:$4 sm:$0xff]   ;;  %v8848_v9 = vld [vmem:[#allocation3 + $0x1e0] ss:$16 sps:$4 sm:$0xff]  }
  0xe9   : > { %v715_v13 = vsel %vm10160_vm2, %v710_v8, %v714_v62  ;;  %v8833_v62 = vld [vmem:[#allocation3 + $0x188] ss:$16 sps:$4 sm:$0xff]   ;;  %v8853_v8 = vld [vmem:[#allocation3 + $0x1ec] ss:$16 sps:$4 sm:$0xff]  }
  0xea   : > { %v7456_v15 = vcombine.high %v715_v13, %v735_v14 }
  0xeb   : > { %1611 = vmatpush1.bf16.msra.mxu0 %v8722_v16  ;;  %1717 = vmatpush1.bf16.msra.mxu1 %v8725_v17  ;;  %v8776_v16 = vld [vmem:[#allocation3 + $0x60] ss:$16 sps:$4 sm:$0xff]   ;;  %v7455_v17 = vcombine.low %v715_v13, %v735_v14 }
  0xec   : > { %1612 = vmatprep.subr.bf16.mxu0 %v8730_v22  ;;  %1718 = vmatprep.subr.bf16.mxu1 %v8733_v23  ;;  %v8779_v22 = vld [vmem:[#allocation3 + $0x68] ss:$16 sps:$4 sm:$0xff]   ;;  %v8784_v23 = vld [vmem:[#allocation3 + $0x84] ss:$16 sps:$4 sm:$0xff]   ;;  %v8855_v13 = vld [vmem:[#allocation3 + $0x200] ss:$16 sps:$4 sm:$0xff]  }
  0xed   : > { %v9734_v14 = vld [vmem:[%s10133_s10 + $0xc0] sm:$0xff] }
  0xef   : > { %1613 = vmatpush1.bf16.msra.mxu0 %v8728_v24  ;;  %1719 = vmatpush1.bf16.msra.mxu1 %v8731_v25  ;;  %v8787_v24 = vld [vmem:[#allocation3 + $0x8c] ss:$16 sps:$4 sm:$0xff]   ;;  %v7586_v25 = vcombine.high %v10148_v20, %v10151_v21  ;;  %v8794_v21 = vld [vmem:[#allocation3 + $0xc0] ss:$16 sps:$4 sm:$0xff]  }
  0xf0   : > { %1614 = vmatprep.subr.bf16.mxu0 %v8736_v26  ;;  %1720 = vmatprep.subr.bf16.mxu1 %v8739_v27  ;;  %v8782_v26 = vld [vmem:[#allocation3 + $0x80] ss:$16 sps:$4 sm:$0xff]   ;;  %v8785_v27 = vld [vmem:[#allocation3 + $0x88] ss:$16 sps:$4 sm:$0xff]   ;;  %v8799_v20 = vld [vmem:[#allocation3 + $0xcc] ss:$16 sps:$4 sm:$0xff]  }
  0xf3   : > { %1615 = vmatpush1.bf16.msra.mxu0 %v8734_v28  ;;  %1721 = vmatpush1.bf16.msra.mxu1 %v8737_v29  ;;  %v8790_v28 = vld [vmem:[#allocation3 + $0xa4] ss:$16 sps:$4 sm:$0xff]   ;;  %v8793_v29 = vld [vmem:[#allocation3 + $0xac] ss:$16 sps:$4 sm:$0xff]  }
  0xf4   : > { %1616 = vmatprep.subr.bf16.mxu0 %v8742_v30  ;;  %1722 = vmatprep.subr.bf16.mxu1 %v8745_v31  ;;  %v8788_v30 = vld [vmem:[#allocation3 + $0xa0] ss:$16 sps:$4 sm:$0xff]   ;;  %v8791_v31 = vld [vmem:[#allocation3 + $0xa8] ss:$16 sps:$4 sm:$0xff]  }
  0xf7   : > { %1617 = vmatpush1.bf16.msra.mxu0 %v8740_v32  ;;  %1723 = vmatpush1.bf16.msra.mxu1 %v8743_v33  ;;  %v8796_v32 = vld [vmem:[#allocation3 + $0xc4] ss:$16 sps:$4 sm:$0xff]   ;;  %v8797_v33 = vld [vmem:[#allocation3 + $0xc8] ss:$16 sps:$4 sm:$0xff]  }
  0xf8   : > { %1618 = vmatprep.subr.bf16.mxu0 %v8748_v34  ;;  %1724 = vmatprep.subr.bf16.mxu1 %v8751_v35  ;;  %v8802_v34 = vld [vmem:[#allocation3 + $0xe4] ss:$16 sps:$4 sm:$0xff]   ;;  %v8805_v35 = vld [vmem:[#allocation3 + $0xec] ss:$16 sps:$4 sm:$0xff]  }
  0xfb   : > { %1619 = vmatpush1.bf16.msra.mxu0 %v8746_v36  ;;  %1725 = vmatpush1.bf16.msra.mxu1 %v8749_v37  ;;  %v8800_v36 = vld [vmem:[#allocation3 + $0xe0] ss:$16 sps:$4 sm:$0xff]   ;;  %v8803_v37 = vld [vmem:[#allocation3 + $0xe8] ss:$16 sps:$4 sm:$0xff]  }
  0xfc   : > { %1620 = vmatprep.subr.bf16.mxu0 %v8754_v38  ;;  %1726 = vmatprep.subr.bf16.mxu1 %v8757_v39  ;;  %v8808_v38 = vld [vmem:[#allocation3 + $0x104] ss:$16 sps:$4 sm:$0xff]   ;;  %v8811_v39 = vld [vmem:[#allocation3 + $0x10c] ss:$16 sps:$4 sm:$0xff]  }
  0xff   : > { %1621 = vmatpush1.bf16.msra.mxu0 %v8752_v40  ;;  %1727 = vmatpush1.bf16.msra.mxu1 %v8755_v42  ;;  %v8806_v40 = vld [vmem:[#allocation3 + $0x100] ss:$16 sps:$4 sm:$0xff]   ;;  %v8809_v42 = vld [vmem:[#allocation3 + $0x108] ss:$16 sps:$4 sm:$0xff]  }
 0x100   : > { %2429 = vmatprep.subr.bf16.mxu0 %v8760_v43  ;;  %2535 = vmatprep.subr.bf16.mxu1 %v8763_v46  ;;  %v8814_v43 = vld [vmem:[#allocation3 + $0x124] ss:$16 sps:$4 sm:$0xff]   ;;  %v8817_v46 = vld [vmem:[#allocation3 + $0x12c] ss:$16 sps:$4 sm:$0xff]  }
 0x102   : > { %1623 = vmatmul.mubr.bf16.vlgmr.msra.gmra.mrb[0].mxu0 %v7451_v49  ;;  %1729 = vmatmul.mubr.bf16.vlgmr.msra.gmra.mrb[0].mxu1 %v7451_v49  ;;  %v8820_v49 = vld [vmem:[#allocation3 + $0x144] ss:$16 sps:$4 sm:$0xff]  }
 0x103   : > { %2430 = vmatpush1.bf16.msra.mxu0 %v8758_v47  ;;  %2536 = vmatpush1.bf16.msra.mxu1 %v8761_v48  ;;  %v8812_v47 = vld [vmem:[#allocation3 + $0x120] ss:$16 sps:$4 sm:$0xff]   ;;  %v8815_v48 = vld [vmem:[#allocation3 + $0x128] ss:$16 sps:$4 sm:$0xff]  }
 0x104   : > { %2431 = vmatprep.subr.bf16.mxu0 %v8766_v50  ;;  %2537 = vmatprep.subr.bf16.mxu1 %v8769_v51  ;;  %v8823_v50 = vld [vmem:[#allocation3 + $0x14c] ss:$16 sps:$4 sm:$0xff]   ;;  %v8818_v51 = vld [vmem:[#allocation3 + $0x140] ss:$16 sps:$4 sm:$0xff]  }
 0x105   : > { %1632 = vmatprep.mubr.bf16.mxu0 %v7456_v15  ;;  %1738 = vmatprep.mubr.bf16.mxu1 %v7456_v15  ;;  %v10221_v15 = vld [vmem:[%s10133_s10 + $0xd0] sm:$0xff] }
 0x107   : > { %2432 = vmatpush1.bf16.msra.mxu0 %v8764_v0  ;;  %2538 = vmatpush1.bf16.msra.mxu1 %v8767_v1  ;;  %v8841_v0 = vld [vmem:[#allocation3 + $0x1ac] ss:$16 sps:$4 sm:$0xff]   ;;  %v8836_v1 = vld [vmem:[#allocation3 + $0x1a0] ss:$16 sps:$4 sm:$0xff]  }
 0x108   : > { %2433 = vmatprep.subr.bf16.mxu0 %v8772_v2  ;;  %2539 = vmatprep.subr.bf16.mxu1 %v8775_v3  ;;  %v8839_v2 = vld [vmem:[#allocation3 + $0x1a8] ss:$16 sps:$4 sm:$0xff]   ;;  %v8844_v3 = vld [vmem:[#allocation3 + $0x1c4] ss:$16 sps:$4 sm:$0xff]  }
 0x10a   : > { %1633 = vmatmul.mubr.bf16.gmra.mrb[4].mxu0 %v7455_v17  ;;  %1739 = vmatmul.mubr.bf16.gmra.mrb[4].mxu1 %v7455_v17  ;;  %v8858_v17 = vld [vmem:[#allocation3 + $0x208] ss:$16 sps:$4 sm:$0xff]  }
 0x10b   : > { %2434 = vmatpush1.bf16.msra.mxu0 %v8770_v7  ;;  %2540 = vmatpush1.bf16.msra.mxu1 %v8773_v10  ;;  %v8850_v7 = vld [vmem:[#allocation3 + $0x1e4] ss:$16 sps:$4 sm:$0xff]   ;;  %v8851_v10 = vld [vmem:[#allocation3 + $0x1e8] ss:$16 sps:$4 sm:$0xff]  }
 0x10c   : > { %2435 = vmatprep.subr.bf16.mxu0 %v8778_v11  ;;  %2541 = vmatprep.subr.bf16.mxu1 %v8781_v12  ;;  %v8857_v11 = vld [vmem:[#allocation3 + $0x204] ss:$16 sps:$4 sm:$0xff]   ;;  %v8860_v12 = vld [vmem:[#allocation3 + $0x20c] ss:$16 sps:$4 sm:$0xff]  }
 0x10d   : > { %2461 = vmatprep.mubr.bf16.mxu0 %v7586_v25  ;;  %2567 = vmatprep.mubr.bf16.mxu1 %v7586_v25  ;;  %v8862_v25 = vld [vmem:[#allocation3 + $0x220] ss:$16 sps:$4 sm:$0xff]  }
 0x10f   : > { %2436 = vmatpush1.bf16.msra.mxu0 %v8776_v16  ;;  %2542 = vmatpush1.bf16.msra.mxu1 %v8779_v22  ;;  %v7585_v16 = vcombine.low %v9734_v14, %v10221_v15  ;;  %v8864_v22 = vld [vmem:[#allocation3 + $0x224] ss:$16 sps:$4 sm:$0xff]   ;;  %v8941_v14 = vld [vmem:[#allocation3 + $0x3c0] ss:$16 sps:$4 sm:$0xff]  }
 0x110   : > { %2437 = vmatprep.subr.bf16.mxu0 %v8784_v23  ;;  %2543 = vmatprep.subr.bf16.mxu1 %v8787_v24  ;;  %v8867_v23 = vld [vmem:[#allocation3 + $0x22c] ss:$16 sps:$4 sm:$0xff]   ;;  %v7590_v24 = vcombine.high %v10169_v18, %v10172_v19 }
 0x113   : > { %2438 = vmatpush1.bf16.msra.mxu0 %v8782_v26  ;;  %2544 = vmatpush1.bf16.msra.mxu1 %v8785_v27  ;;  %v8865_v26 = vld [vmem:[#allocation3 + $0x228] ss:$16 sps:$4 sm:$0xff]   ;;  %v8870_v27 = vld [vmem:[#allocation3 + $0x244] ss:$16 sps:$4 sm:$0xff]  }
 0x114   : > { %2439 = vmatprep.subr.bf16.mxu0 %v8790_v28  ;;  %2545 = vmatprep.subr.bf16.mxu1 %v8793_v29  ;;  %v8873_v28 = vld [vmem:[#allocation3 + $0x24c] ss:$16 sps:$4 sm:$0xff]   ;;  %v8868_v29 = vld [vmem:[#allocation3 + $0x240] ss:$16 sps:$4 sm:$0xff]  }
 0x117   : > { %2440 = vmatpush1.bf16.msra.mxu0 %v8788_v30  ;;  %2546 = vmatpush1.bf16.msra.mxu1 %v8791_v31  ;;  %v7589_v30 = vcombine.low %v10169_v18, %v10172_v19  ;;  %v8871_v31 = vld [vmem:[#allocation3 + $0x248] ss:$16 sps:$4 sm:$0xff]   ;;  %v8885_v18 = vld [vmem:[#allocation3 + $0x28c] ss:$16 sps:$4 sm:$0xff]   ;;  %v8880_v19 = vld [vmem:[#allocation3 + $0x280] ss:$16 sps:$4 sm:$0xff]  }
 0x118   : > { %2441 = vmatprep.subr.bf16.mxu0 %v8796_v32  ;;  %2547 = vmatprep.subr.bf16.mxu1 %v8799_v20  ;;  %v8876_v32 = vld [vmem:[#allocation3 + $0x264] ss:$16 sps:$4 sm:$0xff]   ;;  %v8879_v20 = vld [vmem:[#allocation3 + $0x26c] ss:$16 sps:$4 sm:$0xff]  }
 0x11b   : > { %2442 = vmatpush1.bf16.msra.mxu0 %v8794_v21  ;;  %2548 = vmatpush1.bf16.msra.mxu1 %v8797_v33  ;;  %v7588_v21 = vcombine.high %v10180_v44, %v10183_v45  ;;  %v8874_v33 = vld [vmem:[#allocation3 + $0x260] ss:$16 sps:$4 sm:$0xff]   ;;  %v8891_v44 = vld [vmem:[#allocation3 + $0x2ac] ss:$16 sps:$4 sm:$0xff]  }
 0x11c   : > { %2443 = vmatprep.subr.bf16.mxu0 %v8802_v34  ;;  %2549 = vmatprep.subr.bf16.mxu1 %v8805_v35  ;;  %v8877_v34 = vld [vmem:[#allocation3 + $0x268] ss:$16 sps:$4 sm:$0xff]   ;;  %v8882_v35 = vld [vmem:[#allocation3 + $0x284] ss:$16 sps:$4 sm:$0xff]   ;;  %v8886_v45 = vld [vmem:[#allocation3 + $0x2a0] ss:$16 sps:$4 sm:$0xff]  }
 0x11f   : > { %2444 = vmatpush1.bf16.msra.mxu0 %v8800_v36  ;;  %2550 = vmatpush1.bf16.msra.mxu1 %v8803_v37  ;;  %v8883_v36 = vld [vmem:[#allocation3 + $0x288] ss:$16 sps:$4 sm:$0xff]   ;;  %v8888_v37 = vld [vmem:[#allocation3 + $0x2a4] ss:$16 sps:$4 sm:$0xff]  }
 0x120   : > { %2445 = vmatprep.subr.bf16.mxu0 %v8808_v38  ;;  %2551 = vmatprep.subr.bf16.mxu1 %v8811_v39  ;;  %v8889_v38 = vld [vmem:[#allocation3 + $0x2a8] ss:$16 sps:$4 sm:$0xff]   ;;  %v8894_v39 = vld [vmem:[#allocation3 + $0x2c4] ss:$16 sps:$4 sm:$0xff]  }
 0x123   : > { %2446 = vmatpush1.bf16.msra.mxu0 %v8806_v40  ;;  %2552 = vmatpush1.bf16.msra.mxu1 %v8809_v42  ;;  %v8897_v40 = vld [vmem:[#allocation3 + $0x2cc] ss:$16 sps:$4 sm:$0xff]   ;;  %v8892_v42 = vld [vmem:[#allocation3 + $0x2c0] ss:$16 sps:$4 sm:$0xff]  }
 0x124   : > { %2447 = vmatprep.subr.bf16.mxu0 %v8814_v43  ;;  %2553 = vmatprep.subr.bf16.mxu1 %v8817_v46  ;;  %v8895_v43 = vld [vmem:[#allocation3 + $0x2c8] ss:$16 sps:$4 sm:$0xff]   ;;  %v8900_v46 = vld [vmem:[#allocation3 + $0x2e4] ss:$16 sps:$4 sm:$0xff]  }
 0x127   : > { %2448 = vmatpush1.bf16.msra.mxu0 %v8812_v47  ;;  %2554 = vmatpush1.bf16.msra.mxu1 %v8815_v48  ;;  %v8903_v47 = vld [vmem:[#allocation3 + $0x2ec] ss:$16 sps:$4 sm:$0xff]   ;;  %v8898_v48 = vld [vmem:[#allocation3 + $0x2e0] ss:$16 sps:$4 sm:$0xff]  }
 0x128   : > { %2449 = vmatprep.subr.bf16.mxu0 %v8820_v49  ;;  %2555 = vmatprep.subr.bf16.mxu1 %v8823_v50  ;;  %v8901_v49 = vld [vmem:[#allocation3 + $0x2e8] ss:$16 sps:$4 sm:$0xff]   ;;  %v8906_v50 = vld [vmem:[#allocation3 + $0x304] ss:$16 sps:$4 sm:$0xff]  }
 0x12b   : > { %2450 = vmatpush1.bf16.msra.mxu0 %v8818_v51  ;;  %2556 = vmatpush1.bf16.msra.mxu1 %v8821_v54  ;;  %v8909_v51 = vld [vmem:[#allocation3 + $0x30c] ss:$16 sps:$4 sm:$0xff]   ;;  %v8904_v54 = vld [vmem:[#allocation3 + $0x300] ss:$16 sps:$4 sm:$0xff]  }
 0x12c   : > { %2451 = vmatprep.subr.bf16.mxu0 %v8826_v55  ;;  %2557 = vmatprep.subr.bf16.mxu1 %v8829_v56  ;;  %v8907_v55 = vld [vmem:[#allocation3 + $0x308] ss:$16 sps:$4 sm:$0xff]   ;;  %v8912_v56 = vld [vmem:[#allocation3 + $0x324] ss:$16 sps:$4 sm:$0xff]  }
 0x12f   : > { %2452 = vmatpush1.bf16.msra.mxu0 %v8824_v57  ;;  %2558 = vmatpush1.bf16.msra.mxu1 %v8827_v58  ;;  %v8915_v57 = vld [vmem:[#allocation3 + $0x32c] ss:$16 sps:$4 sm:$0xff]   ;;  %v8910_v58 = vld [vmem:[#allocation3 + $0x320] ss:$16 sps:$4 sm:$0xff]  }
 0x130   : > { %2453 = vmatprep.subr.bf16.mxu0 %v8832_v59  ;;  %2559 = vmatprep.subr.bf16.mxu1 %v8835_v60  ;;  %v8913_v59 = vld [vmem:[#allocation3 + $0x328] ss:$16 sps:$4 sm:$0xff]   ;;  %v8918_v60 = vld [vmem:[#allocation3 + $0x344] ss:$16 sps:$4 sm:$0xff]  }
 0x133   : > { %2454 = vmatpush1.bf16.msra.mxu0 %v8830_v61  ;;  %2560 = vmatpush1.bf16.msra.mxu1 %v8833_v62  ;;  %v8921_v61 = vld [vmem:[#allocation3 + $0x34c] ss:$16 sps:$4 sm:$0xff]   ;;  %v8916_v62 = vld [vmem:[#allocation3 + $0x340] ss:$16 sps:$4 sm:$0xff]  }
 0x134   : > { %2455 = vmatprep.subr.bf16.mxu0 %v8838_v63  ;;  %2561 = vmatprep.subr.bf16.mxu1 %v8841_v0  ;;  %v8919_v63 = vld [vmem:[#allocation3 + $0x348] ss:$16 sps:$4 sm:$0xff]   ;;  %v8924_v0 = vld [vmem:[#allocation3 + $0x364] ss:$16 sps:$4 sm:$0xff]  }
 0x137   : > { %2456 = vmatpush1.bf16.msra.mxu0 %v8836_v1  ;;  %2562 = vmatpush1.bf16.msra.mxu1 %v8839_v2  ;;  %v8927_v1 = vld [vmem:[#allocation3 + $0x36c] ss:$16 sps:$4 sm:$0xff]   ;;  %v8922_v2 = vld [vmem:[#allocation3 + $0x360] ss:$16 sps:$4 sm:$0xff]  }
 0x138   : > { %2457 = vmatprep.subr.bf16.mxu0 %v8844_v3  ;;  %2563 = vmatprep.subr.bf16.mxu1 %v8847_v4  ;;  %v8925_v3 = vld [vmem:[#allocation3 + $0x368] ss:$16 sps:$4 sm:$0xff]   ;;  %v8930_v4 = vld [vmem:[#allocation3 + $0x384] ss:$16 sps:$4 sm:$0xff]  }
 0x13b   : > { %2458 = vmatpush1.bf16.msra.mxu0 %v8842_v5  ;;  %2564 = vmatpush1.bf16.msra.mxu1 %v8845_v6  ;;  %v8933_v5 = vld [vmem:[#allocation3 + $0x38c] ss:$16 sps:$4 sm:$0xff]   ;;  %v8928_v6 = vld [vmem:[#allocation3 + $0x380] ss:$16 sps:$4 sm:$0xff]  }
 0x13c   : > { %2459 = vmatprep.subr.bf16.mxu0 %v8850_v7  ;;  %2565 = vmatprep.subr.bf16.mxu1 %v8853_v8  ;;  %v8931_v7 = vld [vmem:[#allocation3 + $0x388] ss:$16 sps:$4 sm:$0xff]   ;;  %v8936_v8 = vld [vmem:[#allocation3 + $0x3a4] ss:$16 sps:$4 sm:$0xff]  }
 0x13f   : > { %2460 = vmatpush1.bf16.msra.mxu0 %v8848_v9  ;;  %2566 = vmatpush1.bf16.msra.mxu1 %v8851_v10  ;;  %v8939_v9 = vld [vmem:[#allocation3 + $0x3ac] ss:$16 sps:$4 sm:$0xff]   ;;  %v8934_v10 = vld [vmem:[#allocation3 + $0x3a0] ss:$16 sps:$4 sm:$0xff]  }
 0x140   : > { %2482 = vmatprep.subr.bf16.mxu0 %v8857_v11  ;;  %2588 = vmatprep.subr.bf16.mxu1 %v8860_v12  ;;  %v8937_v11 = vld [vmem:[#allocation3 + $0x3a8] ss:$16 sps:$4 sm:$0xff]   ;;  %v8943_v12 = vld [vmem:[#allocation3 + $0x3c4] ss:$16 sps:$4 sm:$0xff]  }
 0x142   : > { %2462 = vmatmul.mubr.bf16.vlgmr.msra.gmra.mrb[0].mxu0 %v7585_v16  ;;  %2568 = vmatmul.mubr.bf16.vlgmr.msra.gmra.mrb[0].mxu1 %v7585_v16  ;;  %v8944_v16 = vld [vmem:[#allocation3 + $0x3c8] ss:$16 sps:$4 sm:$0xff]  }
 0x143   : > { %2483 = vmatpush1.bf16.msra.mxu0 %v8855_v13  ;;  %2589 = vmatpush1.bf16.msra.mxu1 %v8858_v17  ;;  %v8946_v13 = vld [vmem:[#allocation3 + $0x3cc] ss:$16 sps:$4 sm:$0xff]   ;;  %v8950_v17 = vld [vmem:[#allocation3 + $0x3e4] ss:$16 sps:$4 sm:$0xff]  }
 0x144   : > { %2484 = vmatprep.subr.bf16.mxu0 %v8864_v22  ;;  %2590 = vmatprep.subr.bf16.mxu1 %v8867_v23  ;;  %v8953_v22 = vld [vmem:[#allocation3 + $0x3ec] ss:$16 sps:$4 sm:$0xff]   ;;  %v8948_v23 = vld [vmem:[#allocation3 + $0x3e0] ss:$16 sps:$4 sm:$0xff]  }
 0x145   : > { %2471 = vmatprep.mubr.bf16.mxu0 %v7590_v24  ;;  %2577 = vmatprep.mubr.bf16.mxu1 %v7590_v24  ;;  %v8951_v24 = vld [vmem:[#allocation3 + $0x3e8] ss:$16 sps:$4 sm:$0xff]  }
 0x147   : > { %2485 = vmatpush1.bf16.msra.mxu0 %v8862_v25  ;;  %2591 = vmatpush1.bf16.msra.mxu1 %v8865_v26  ;;  %v8957_v25 = vld [vmem:[#allocation3 + $0x804] ss:$16 sps:$4 sm:$0xff]   ;;  %v8960_v26 = vld [vmem:[#allocation3 + $0x80c] ss:$16 sps:$4 sm:$0xff]  }
 0x148   : > { %2486 = vmatprep.subr.bf16.mxu0 %v8870_v27  ;;  %2592 = vmatprep.subr.bf16.mxu1 %v8873_v28  ;;  %v8955_v27 = vld [vmem:[#allocation3 + $0x800] ss:$16 sps:$4 sm:$0xff]   ;;  %v8958_v28 = vld [vmem:[#allocation3 + $0x808] ss:$16 sps:$4 sm:$0xff]  }
 0x14a   : > { %2472 = vmatmul.mubr.bf16.gmra.mrb[4].mxu0 %v7589_v30  ;;  %2578 = vmatmul.mubr.bf16.gmra.mrb[4].mxu1 %v7589_v30  ;;  %v10232_v30 = vld [vmem:[%s10133_s10 + $0xd8] sm:$0xff] }
 0x14b   : > { %2487 = vmatpush1.bf16.msra.mxu0 %v8868_v29  ;;  %2593 = vmatpush1.bf16.msra.mxu1 %v8871_v31  ;;  %v9736_v29 = vld [vmem:[%s10133_s10 + $0xc8] sm:$0xff] }
 0x14c   : > { %2488 = vmatprep.subr.bf16.mxu0 %v8876_v32  ;;  %2594 = vmatprep.subr.bf16.mxu1 %v8879_v20  ;;  %v7587_v31 = vcombine.low %v9736_v29, %v10232_v30  ;;  %v2658_v32 = vrot.slane %v10221_v15, 5  ;;  %v8964_v20 = vld [vmem:[#allocation3 + $0x824] ss:$16 sps:$4 sm:$0xff]   ;;  %v9028_v29 = vld [vmem:[#allocation3 + $0x980] ss:$16 sps:$4 sm:$0xff]  }
 0x14d   : > { %2514 = vmatprep.mubr.bf16.mxu0 %v7588_v21  ;;  %2620 = vmatprep.mubr.bf16.mxu1 %v7588_v21  ;;  %v7721_v21 = vld [vmem:[%s10133_s10 + $0xc0] sm:$0xee] }
 0x14e   : > { %v8970_v15 = vld [vmem:[#allocation3 + $0x844] ss:$16 sps:$4 sm:$0xff]  }
 0x14f   : > { %2489 = vmatpush1.bf16.msra.mxu0 %v8874_v33  ;;  %2595 = vmatpush1.bf16.msra.mxu1 %v8877_v34  ;;  %v8967_v33 = vld [vmem:[#allocation3 + $0x82c] ss:$16 sps:$4 sm:$0xff]   ;;  %v8962_v34 = vld [vmem:[#allocation3 + $0x820] ss:$16 sps:$4 sm:$0xff]  }
 0x150   : > { %2490 = vmatprep.subr.bf16.mxu0 %v8882_v35  ;;  %2596 = vmatprep.subr.bf16.mxu1 %v8885_v18  ;;  %v8965_v35 = vld [vmem:[#allocation3 + $0x828] ss:$16 sps:$4 sm:$0xff]   ;;  %v7592_v18 = vcombine.high %v10203_v52, %v10206_v53  ;;  %v8968_v52 = vld [vmem:[#allocation3 + $0x840] ss:$16 sps:$4 sm:$0xff]  }
 0x151   : > { %v9739_v53 = vld [vmem:[%s10133_s10 + $0xf8] sm:$0xff] }
 0x153   : > { %2491 = vmatpush1.bf16.msra.mxu0 %v8880_v19  ;;  %2597 = vmatpush1.bf16.msra.mxu1 %v8883_v36  ;;  %v7725_v19 = vrot.slane %v7721_v21, 9  ;;  %v2664_v36 = vrot.slane %v2658_v32, 4  ;;  %v9034_v21 = vld [vmem:[#allocation3 + $0x9a0] ss:$16 sps:$4 sm:$0xff]  }
 0x154   : > { %2492 = vmatprep.subr.bf16.mxu0 %v8888_v37  ;;  %2598 = vmatprep.subr.bf16.mxu1 %v8891_v44  ;;  %v9738_v37 = vld [vmem:[%s10133_s10 + $0xe0] sm:$0x11] }
 0x155   : > { %v2665_v44 = vrot.slane %v9738_v37, 5  ;;  %v7723_v37 = vld [vmem:[%s10133_s10 + $0xf0] sm:$0xee] }
 0x157   : > { %2493 = vmatpush1.bf16.msra.mxu0 %v8886_v45  ;;  %2599 = vmatpush1.bf16.msra.mxu1 %v8889_v38  ;;  %v8973_v38 = vld [vmem:[#allocation3 + $0x84c] ss:$16 sps:$4 sm:$0xff]  }
 0x158   : > { %2494 = vmatprep.subr.bf16.mxu0 %v8894_v39  ;;  %2600 = vmatprep.subr.bf16.mxu1 %v8897_v40  ;;  %v10246_v39 = vld [vmem:[%s10133_s10 + $0x108] sm:$0xff] }
 0x159   : > { %v7591_v40 = vcombine.low %v9739_v53, %v10246_v39 }
 0x15b   : > { %2495 = vmatpush1.bf16.msra.mxu0 %v8892_v42  ;;  %2601 = vmatpush1.bf16.msra.mxu1 %v8895_v43  ;;  %v10251_v42 = vsel %vm10240_vm5, %v7725_v19, %v2658_v32  ;;  %v10255_v43 = vsel %vm10240_vm5, %v2664_v36, %v2665_v44  ;;  %v9036_v32 = vld [vmem:[#allocation3 + $0x9a4] ss:$16 sps:$4 sm:$0xff]   ;;  %v9041_v19 = vld [vmem:[#allocation3 + $0x9c0] ss:$16 sps:$4 sm:$0xff]   ;;  %v9044_v36 = vld [vmem:[#allocation3 + $0x9c8] ss:$16 sps:$4 sm:$0xff]  }
 0x15c   : > { %2496 = vmatprep.subr.bf16.mxu0 %v8900_v46  ;;  %2602 = vmatprep.subr.bf16.mxu1 %v8903_v47  ;;  %v8971_v46 = vld [vmem:[#allocation3 + $0x848] ss:$16 sps:$4 sm:$0xff]   ;;  %v8976_v47 = vld [vmem:[#allocation3 + $0x864] ss:$16 sps:$4 sm:$0xff]  }
 0x15d   : > { %v9050_v44 = vld [vmem:[#allocation3 + $0x9e4] ss:$16 sps:$4 sm:$0xff]  }
 0x15f   : > { %2497 = vmatpush1.bf16.msra.mxu0 %v8898_v48  ;;  %2603 = vmatpush1.bf16.msra.mxu1 %v8901_v49  ;;  %v8979_v48 = vld [vmem:[#allocation3 + $0x86c] ss:$16 sps:$4 sm:$0xff]   ;;  %v7730_v49 = vcombine.high %v10251_v42, %v10255_v43 }
 0x160   : > { %2498 = vmatprep.subr.bf16.mxu0 %v8906_v50  ;;  %2604 = vmatprep.subr.bf16.mxu1 %v8909_v51  ;;  %v8974_v50 = vld [vmem:[#allocation3 + $0x860] ss:$16 sps:$4 sm:$0xff]   ;;  %v8977_v51 = vld [vmem:[#allocation3 + $0x868] ss:$16 sps:$4 sm:$0xff]  }
 0x163   : > { %2499 = vmatpush1.bf16.msra.mxu0 %v8904_v54  ;;  %2605 = vmatpush1.bf16.msra.mxu1 %v8907_v55  ;;  %v8982_v54 = vld [vmem:[#allocation3 + $0x884] ss:$16 sps:$4 sm:$0xff]   ;;  %v8985_v55 = vld [vmem:[#allocation3 + $0x88c] ss:$16 sps:$4 sm:$0xff]  }
 0x164   : > { %2500 = vmatprep.subr.bf16.mxu0 %v8912_v56  ;;  %2606 = vmatprep.subr.bf16.mxu1 %v8915_v57  ;;  %v8980_v56 = vld [vmem:[#allocation3 + $0x880] ss:$16 sps:$4 sm:$0xff]   ;;  %v8983_v57 = vld [vmem:[#allocation3 + $0x888] ss:$16 sps:$4 sm:$0xff]  }
 0x167   : > { %2501 = vmatpush1.bf16.msra.mxu0 %v8910_v58  ;;  %2607 = vmatpush1.bf16.msra.mxu1 %v8913_v59  ;;  %v8988_v58 = vld [vmem:[#allocation3 + $0x8a4] ss:$16 sps:$4 sm:$0xff]   ;;  %v8991_v59 = vld [vmem:[#allocation3 + $0x8ac] ss:$16 sps:$4 sm:$0xff]  }
 0x168   : > { %2502 = vmatprep.subr.bf16.mxu0 %v8918_v60  ;;  %2608 = vmatprep.subr.bf16.mxu1 %v8921_v61  ;;  %v8986_v60 = vld [vmem:[#allocation3 + $0x8a0] ss:$16 sps:$4 sm:$0xff]   ;;  %v8989_v61 = vld [vmem:[#allocation3 + $0x8a8] ss:$16 sps:$4 sm:$0xff]  }
 0x16b   : > { %2503 = vmatpush1.bf16.msra.mxu0 %v8916_v62  ;;  %2609 = vmatpush1.bf16.msra.mxu1 %v8919_v63  ;;  %v8994_v62 = vld [vmem:[#allocation3 + $0x8c4] ss:$16 sps:$4 sm:$0xff]   ;;  %v8997_v63 = vld [vmem:[#allocation3 + $0x8cc] ss:$16 sps:$4 sm:$0xff]  }
 0x16c   : > { %2504 = vmatprep.subr.bf16.mxu0 %v8924_v0  ;;  %2610 = vmatprep.subr.bf16.mxu1 %v8927_v1  ;;  %v8992_v0 = vld [vmem:[#allocation3 + $0x8c0] ss:$16 sps:$4 sm:$0xff]   ;;  %v8995_v1 = vld [vmem:[#allocation3 + $0x8c8] ss:$16 sps:$4 sm:$0xff]  }
 0x16f   : > { %2505 = vmatpush1.bf16.msra.mxu0 %v8922_v2  ;;  %2611 = vmatpush1.bf16.msra.mxu1 %v8925_v3  ;;  %v9000_v2 = vld [vmem:[#allocation3 + $0x8e4] ss:$16 sps:$4 sm:$0xff]   ;;  %v9003_v3 = vld [vmem:[#allocation3 + $0x8ec] ss:$16 sps:$4 sm:$0xff]  }
 0x170   : > { %2506 = vmatprep.subr.bf16.mxu0 %v8930_v4  ;;  %2612 = vmatprep.subr.bf16.mxu1 %v8933_v5  ;;  %v8998_v4 = vld [vmem:[#allocation3 + $0x8e0] ss:$16 sps:$4 sm:$0xff]   ;;  %v9001_v5 = vld [vmem:[#allocation3 + $0x8e8] ss:$16 sps:$4 sm:$0xff]  }
 0x173   : > { %2507 = vmatpush1.bf16.msra.mxu0 %v8928_v6  ;;  %2613 = vmatpush1.bf16.msra.mxu1 %v8931_v7  ;;  %v9006_v6 = vld [vmem:[#allocation3 + $0x904] ss:$16 sps:$4 sm:$0xff]   ;;  %v9009_v7 = vld [vmem:[#allocation3 + $0x90c] ss:$16 sps:$4 sm:$0xff]  }
 0x174   : > { %2508 = vmatprep.subr.bf16.mxu0 %v8936_v8  ;;  %2614 = vmatprep.subr.bf16.mxu1 %v8939_v9  ;;  %v9004_v8 = vld [vmem:[#allocation3 + $0x900] ss:$16 sps:$4 sm:$0xff]   ;;  %v9007_v9 = vld [vmem:[#allocation3 + $0x908] ss:$16 sps:$4 sm:$0xff]  }
 0x177   : > { %2509 = vmatpush1.bf16.msra.mxu0 %v8934_v10  ;;  %2615 = vmatpush1.bf16.msra.mxu1 %v8937_v11  ;;  %v9012_v10 = vld [vmem:[#allocation3 + $0x924] ss:$16 sps:$4 sm:$0xff]   ;;  %v9015_v11 = vld [vmem:[#allocation3 + $0x92c] ss:$16 sps:$4 sm:$0xff]  }
 0x178   : > { %2510 = vmatprep.subr.bf16.mxu0 %v8943_v12  ;;  %2616 = vmatprep.subr.bf16.mxu1 %v8946_v13  ;;  %v9010_v12 = vld [vmem:[#allocation3 + $0x920] ss:$16 sps:$4 sm:$0xff]   ;;  %v9013_v13 = vld [vmem:[#allocation3 + $0x928] ss:$16 sps:$4 sm:$0xff]  }
 0x17b   : > { %2511 = vmatpush1.bf16.msra.mxu0 %v8941_v14  ;;  %2617 = vmatpush1.bf16.msra.mxu1 %v8944_v16  ;;  %v9018_v14 = vld [vmem:[#allocation3 + $0x944] ss:$16 sps:$4 sm:$0xff]   ;;  %v9021_v16 = vld [vmem:[#allocation3 + $0x94c] ss:$16 sps:$4 sm:$0xff]  }
 0x17c   : > { %2512 = vmatprep.subr.bf16.mxu0 %v8950_v17  ;;  %2618 = vmatprep.subr.bf16.mxu1 %v8953_v22  ;;  %v9016_v17 = vld [vmem:[#allocation3 + $0x940] ss:$16 sps:$4 sm:$0xff]   ;;  %v9019_v22 = vld [vmem:[#allocation3 + $0x948] ss:$16 sps:$4 sm:$0xff]  }
 0x17f   : > { %2513 = vmatpush1.bf16.msra.mxu0 %v8948_v23  ;;  %2619 = vmatpush1.bf16.msra.mxu1 %v8951_v24  ;;  %v9024_v23 = vld [vmem:[#allocation3 + $0x964] ss:$16 sps:$4 sm:$0xff]   ;;  %v9027_v24 = vld [vmem:[#allocation3 + $0x96c] ss:$16 sps:$4 sm:$0xff]  }
 0x180   : > { %3485 = vmatprep.subr.bf16.mxu0 %v8957_v25  ;;  %3591 = vmatprep.subr.bf16.mxu1 %v8960_v26  ;;  %v9022_v25 = vld [vmem:[#allocation3 + $0x960] ss:$16 sps:$4 sm:$0xff]   ;;  %v9025_v26 = vld [vmem:[#allocation3 + $0x968] ss:$16 sps:$4 sm:$0xff]  }
 0x182   : > { %2515 = vmatmul.mubr.bf16.vlgmr.msra.gmra.mrb[0].mxu0 %v7587_v31  ;;  %2621 = vmatmul.mubr.bf16.vlgmr.msra.gmra.mrb[0].mxu1 %v7587_v31  ;;  %v9031_v31 = vld [vmem:[#allocation3 + $0x988] ss:$16 sps:$4 sm:$0xff]  }
 0x183   : > { %3486 = vmatpush1.bf16.msra.mxu0 %v8955_v27  ;;  %3592 = vmatpush1.bf16.msra.mxu1 %v8958_v28  ;;  %v9030_v27 = vld [vmem:[#allocation3 + $0x984] ss:$16 sps:$4 sm:$0xff]   ;;  %v9033_v28 = vld [vmem:[#allocation3 + $0x98c] ss:$16 sps:$4 sm:$0xff]  }
 0x184   : > { %3487 = vmatprep.subr.bf16.mxu0 %v8964_v20  ;;  %3593 = vmatprep.subr.bf16.mxu1 %v8967_v33  ;;  %v9039_v20 = vld [vmem:[#allocation3 + $0x9ac] ss:$16 sps:$4 sm:$0xff]   ;;  %v9037_v33 = vld [vmem:[#allocation3 + $0x9a8] ss:$16 sps:$4 sm:$0xff]  }
 0x185   : > { %2524 = vmatprep.mubr.bf16.mxu0 %v7592_v18  ;;  %2630 = vmatprep.mubr.bf16.mxu1 %v7592_v18  ;;  %v9741_v18 = vld [vmem:[%s10133_s10 + $0x100] sm:$0xff] }
 0x187   : > { %3488 = vmatpush1.bf16.msra.mxu0 %v8962_v34  ;;  %3594 = vmatpush1.bf16.msra.mxu1 %v8965_v35  ;;  %v9043_v34 = vld [vmem:[#allocation3 + $0x9c4] ss:$16 sps:$4 sm:$0xff]   ;;  %v9046_v35 = vld [vmem:[#allocation3 + $0x9cc] ss:$16 sps:$4 sm:$0xff]  }
 0x188   : > { %3489 = vmatprep.subr.bf16.mxu0 %v8970_v15  ;;  %3595 = vmatprep.subr.bf16.mxu1 %v8973_v38  ;;  %v2672_v15 = vrot.slane %v9741_v18, 5  ;;  %v9053_v38 = vld [vmem:[#allocation3 + $0x9ec] ss:$16 sps:$4 sm:$0xff]   ;;  %v9102_v18 = vld [vmem:[#allocation3 + $0xb00] ss:$16 sps:$4 sm:$0xff]  }
 0x18a   : > { %2525 = vmatmul.mubr.bf16.gmra.mrb[4].mxu0 %v7591_v40  ;;  %2631 = vmatmul.mubr.bf16.gmra.mrb[4].mxu1 %v7591_v40  ;;  %v2678_v53 = vrot.slane %v2672_v15, 4  ;;  %v9742_v40 = vld [vmem:[%s10133_s10 + $0x110] sm:$0x11] }
 0x18b   : > { %3490 = vmatpush1.bf16.msra.mxu0 %v8968_v52  ;;  %3596 = vmatpush1.bf16.msra.mxu1 %v8971_v46  ;;  %v7727_v52 = vrot.slane %v7723_v37, 9  ;;  %v2679_v46 = vrot.slane %v9742_v40, 5  ;;  %v9108_v37 = vld [vmem:[#allocation3 + $0xb20] ss:$16 sps:$4 sm:$0xff]   ;;  %v9117_v40 = vld [vmem:[#allocation3 + $0xb48] ss:$16 sps:$4 sm:$0xff]  }
 0x18c   : > { %3491 = vmatprep.subr.bf16.mxu0 %v8976_v47  ;;  %3597 = vmatprep.subr.bf16.mxu1 %v8979_v48  ;;  %v9048_v47 = vld [vmem:[#allocation3 + $0x9e0] ss:$16 sps:$4 sm:$0xff]   ;;  %v9051_v48 = vld [vmem:[#allocation3 + $0x9e8] ss:$16 sps:$4 sm:$0xff]  }
 0x18d   : > { %3517 = vmatprep.mubr.bf16.mxu0 %v7730_v49  ;;  %3623 = vmatprep.mubr.bf16.mxu1 %v7730_v49  ;;  %v9056_v49 = vld [vmem:[#allocation3 + $0xa04] ss:$16 sps:$4 sm:$0xff]  }
 0x18f   : > { %3492 = vmatpush1.bf16.msra.mxu0 %v8974_v50  ;;  %3598 = vmatpush1.bf16.msra.mxu1 %v8977_v51  ;;  %v9059_v50 = vld [vmem:[#allocation3 + $0xa0c] ss:$16 sps:$4 sm:$0xff]   ;;  %v9054_v51 = vld [vmem:[#allocation3 + $0xa00] ss:$16 sps:$4 sm:$0xff]  }
 0x190   : > { %3493 = vmatprep.subr.bf16.mxu0 %v8982_v54  ;;  %3599 = vmatprep.subr.bf16.mxu1 %v8985_v55  ;;  %v7729_v54 = vcombine.low %v10251_v42, %v10255_v43  ;;  %v2673_v55 = vsel %vm10240_vm5, %v7727_v52, %v2672_v15  ;;  %v9105_v15 = vld [vmem:[#allocation3 + $0xb08] ss:$16 sps:$4 sm:$0xff]   ;;  %v9119_v52 = vld [vmem:[#allocation3 + $0xb4c] ss:$16 sps:$4 sm:$0xff]  }
 0x193   : > { %3494 = vmatpush1.bf16.msra.mxu0 %v8980_v56  ;;  %3600 = vmatpush1.bf16.msra.mxu1 %v8983_v57  ;;  %v2680_v56 = vsel %vm10240_vm5, %v2678_v53, %v2679_v46  ;;  %v2662_v57 = vrot.slane %v10232_v30, 5  ;;  %v9068_v30 = vld [vmem:[#allocation3 + $0xa44] ss:$16 sps:$4 sm:$0xff]   ;;  %v9114_v53 = vld [vmem:[#allocation3 + $0xb40] ss:$16 sps:$4 sm:$0xff]  }
 0x194   : > { %3495 = vmatprep.subr.bf16.mxu0 %v8988_v58  ;;  %3601 = vmatprep.subr.bf16.mxu1 %v8991_v59  ;;  %v9057_v58 = vld [vmem:[#allocation3 + $0xa08] ss:$16 sps:$4 sm:$0xff]   ;;  %v9122_v46 = vld [vmem:[#allocation3 + $0xb64] ss:$16 sps:$4 sm:$0xff]  }
 0x195   : > { %v7722_v59 = vld [vmem:[%s10133_s10 + $0xc8] sm:$0xee]  ;;  %v2667_v43 = vrot.slane %v2662_v57, 4 }
 0x196   : > { %v7726_v42 = vrot.slane %v7722_v59, 9  ;;  %v9135_v59 = vld [vmem:[#allocation3 + $0xba8] ss:$16 sps:$4 sm:$0xff]  }
 0x197   : > { %3496 = vmatpush1.bf16.msra.mxu0 %v8986_v60  ;;  %3602 = vmatpush1.bf16.msra.mxu1 %v8989_v61  ;;  %v9062_v60 = vld [vmem:[#allocation3 + $0xa24] ss:$16 sps:$4 sm:$0xff]   ;;  %v9065_v61 = vld [vmem:[#allocation3 + $0xa2c] ss:$16 sps:$4 sm:$0xff]  }
 0x198   : > { %3497 = vmatprep.subr.bf16.mxu0 %v8994_v62  ;;  %3603 = vmatprep.subr.bf16.mxu1 %v8997_v63  ;;  %v7734_v62 = vcombine.high %v2673_v55, %v2680_v56  ;;  %v9743_v63 = vld [vmem:[%s10133_s10 + $0xe8] sm:$0x11] }
 0x19b   : > { %3498 = vmatpush1.bf16.msra.mxu0 %v8992_v0  ;;  %3604 = vmatpush1.bf16.msra.mxu1 %v8995_v1  ;;  %v2668_v0 = vrot.slane %v9743_v63, 5  ;;  %v9060_v1 = vld [vmem:[#allocation3 + $0xa20] ss:$16 sps:$4 sm:$0xff]   ;;  %v2676_v63 = vrot.slane %v10246_v39, 5 }
 0x19c   : > { %3499 = vmatprep.subr.bf16.mxu0 %v9000_v2  ;;  %3605 = vmatprep.subr.bf16.mxu1 %v9003_v3  ;;  %v9063_v2 = vld [vmem:[#allocation3 + $0xa28] ss:$16 sps:$4 sm:$0xff]   ;;  %v9071_v3 = vld [vmem:[#allocation3 + $0xa4c] ss:$16 sps:$4 sm:$0xff]  }
 0x19f   : > { %3500 = vmatpush1.bf16.msra.mxu0 %v8998_v4  ;;  %3606 = vmatpush1.bf16.msra.mxu1 %v9001_v5  ;;  %v7733_v4 = vcombine.low %v2673_v55, %v2680_v56  ;;  %v10273_v5 = vsel %vm10240_vm5, %v7726_v42, %v2662_v57  ;;  %v9129_v55 = vld [vmem:[#allocation3 + $0xb88] ss:$16 sps:$4 sm:$0xff]   ;;  %v9134_v56 = vld [vmem:[#allocation3 + $0xba4] ss:$16 sps:$4 sm:$0xff]   ;;  %v9137_v57 = vld [vmem:[#allocation3 + $0xbac] ss:$16 sps:$4 sm:$0xff]  }
 0x1a0   : > { %3501 = vmatprep.subr.bf16.mxu0 %v9006_v6  ;;  %3607 = vmatprep.subr.bf16.mxu1 %v9009_v7  ;;  %v10277_v6 = vsel %vm10240_vm5, %v2667_v43, %v2668_v0  ;;  %v9066_v7 = vld [vmem:[#allocation3 + $0xa40] ss:$16 sps:$4 sm:$0xff]   ;;  %v9143_v42 = vld [vmem:[#allocation3 + $0xbcc] ss:$16 sps:$4 sm:$0xff]  }
 0x1a1   : > { %v7724_v43 = vld [vmem:[%s10133_s10 + $0xf8] sm:$0xee] }
 0x1a3   : > { %3502 = vmatpush1.bf16.msra.mxu0 %v9004_v8  ;;  %3608 = vmatpush1.bf16.msra.mxu1 %v9007_v9  ;;  %v9069_v8 = vld [vmem:[#allocation3 + $0xa48] ss:$16 sps:$4 sm:$0xff]   ;;  %v9074_v9 = vld [vmem:[#allocation3 + $0xa64] ss:$16 sps:$4 sm:$0xff]  }
 0x1a4   : > { %3503 = vmatprep.subr.bf16.mxu0 %v9012_v10  ;;  %3609 = vmatprep.subr.bf16.mxu1 %v9015_v11  ;;  %v9077_v10 = vld [vmem:[#allocation3 + $0xa6c] ss:$16 sps:$4 sm:$0xff]   ;;  %v7732_v11 = vcombine.high %v10273_v5, %v10277_v6 }
 0x1a7   : > { %3504 = vmatpush1.bf16.msra.mxu0 %v9010_v12  ;;  %3610 = vmatpush1.bf16.msra.mxu1 %v9013_v13  ;;  %v9072_v12 = vld [vmem:[#allocation3 + $0xa60] ss:$16 sps:$4 sm:$0xff]   ;;  %v9075_v13 = vld [vmem:[#allocation3 + $0xa68] ss:$16 sps:$4 sm:$0xff]  }
 0x1a8   : > { %3505 = vmatprep.subr.bf16.mxu0 %v9018_v14  ;;  %3611 = vmatprep.subr.bf16.mxu1 %v9021_v16  ;;  %v9080_v14 = vld [vmem:[#allocation3 + $0xa84] ss:$16 sps:$4 sm:$0xff]   ;;  %v9083_v16 = vld [vmem:[#allocation3 + $0xa8c] ss:$16 sps:$4 sm:$0xff]  }
 0x1ab   : > { %3506 = vmatpush1.bf16.msra.mxu0 %v9016_v17  ;;  %3612 = vmatpush1.bf16.msra.mxu1 %v9019_v22  ;;  %v9078_v17 = vld [vmem:[#allocation3 + $0xa80] ss:$16 sps:$4 sm:$0xff]   ;;  %v9081_v22 = vld [vmem:[#allocation3 + $0xa88] ss:$16 sps:$4 sm:$0xff]  }
 0x1ac   : > { %3507 = vmatprep.subr.bf16.mxu0 %v9024_v23  ;;  %3613 = vmatprep.subr.bf16.mxu1 %v9027_v24  ;;  %v9086_v23 = vld [vmem:[#allocation3 + $0xaa4] ss:$16 sps:$4 sm:$0xff]   ;;  %v9089_v24 = vld [vmem:[#allocation3 + $0xaac] ss:$16 sps:$4 sm:$0xff]  }
 0x1af   : > { %3508 = vmatpush1.bf16.msra.mxu0 %v9022_v25  ;;  %3614 = vmatpush1.bf16.msra.mxu1 %v9025_v26  ;;  %v9084_v25 = vld [vmem:[#allocation3 + $0xaa0] ss:$16 sps:$4 sm:$0xff]   ;;  %v9087_v26 = vld [vmem:[#allocation3 + $0xaa8] ss:$16 sps:$4 sm:$0xff]  }
 0x1b0   : > { %3509 = vmatprep.subr.bf16.mxu0 %v9030_v27  ;;  %3615 = vmatprep.subr.bf16.mxu1 %v9033_v28  ;;  %v9092_v27 = vld [vmem:[#allocation3 + $0xac4] ss:$16 sps:$4 sm:$0xff]   ;;  %v9095_v28 = vld [vmem:[#allocation3 + $0xacc] ss:$16 sps:$4 sm:$0xff]  }
 0x1b3   : > { %3510 = vmatpush1.bf16.msra.mxu0 %v9028_v29  ;;  %3616 = vmatpush1.bf16.msra.mxu1 %v9031_v31  ;;  %v9090_v29 = vld [vmem:[#allocation3 + $0xac0] ss:$16 sps:$4 sm:$0xff]   ;;  %v9093_v31 = vld [vmem:[#allocation3 + $0xac8] ss:$16 sps:$4 sm:$0xff]  }
 0x1b4   : > { %3511 = vmatprep.subr.bf16.mxu0 %v9036_v32  ;;  %3617 = vmatprep.subr.bf16.mxu1 %v9039_v20  ;;  %v9098_v32 = vld [vmem:[#allocation3 + $0xae4] ss:$16 sps:$4 sm:$0xff]   ;;  %v9101_v20 = vld [vmem:[#allocation3 + $0xaec] ss:$16 sps:$4 sm:$0xff]  }
 0x1b7   : > { %3512 = vmatpush1.bf16.msra.mxu0 %v9034_v21  ;;  %3618 = vmatpush1.bf16.msra.mxu1 %v9037_v33  ;;  %v9096_v21 = vld [vmem:[#allocation3 + $0xae0] ss:$16 sps:$4 sm:$0xff]   ;;  %v9099_v33 = vld [vmem:[#allocation3 + $0xae8] ss:$16 sps:$4 sm:$0xff]  }
 0x1b8   : > { %3513 = vmatprep.subr.bf16.mxu0 %v9043_v34  ;;  %3619 = vmatprep.subr.bf16.mxu1 %v9046_v35  ;;  %v9104_v34 = vld [vmem:[#allocation3 + $0xb04] ss:$16 sps:$4 sm:$0xff]   ;;  %v9107_v35 = vld [vmem:[#allocation3 + $0xb0c] ss:$16 sps:$4 sm:$0xff]  }
 0x1bb   : > { %3514 = vmatpush1.bf16.msra.mxu0 %v9041_v19  ;;  %3620 = vmatpush1.bf16.msra.mxu1 %v9044_v36  ;;  %v9110_v19 = vld [vmem:[#allocation3 + $0xb24] ss:$16 sps:$4 sm:$0xff]   ;;  %v9113_v36 = vld [vmem:[#allocation3 + $0xb2c] ss:$16 sps:$4 sm:$0xff]  }
 0x1bc   : > { %3515 = vmatprep.subr.bf16.mxu0 %v9050_v44  ;;  %3621 = vmatprep.subr.bf16.mxu1 %v9053_v38  ;;  %v9111_v44 = vld [vmem:[#allocation3 + $0xb28] ss:$16 sps:$4 sm:$0xff]   ;;  %v9116_v38 = vld [vmem:[#allocation3 + $0xb44] ss:$16 sps:$4 sm:$0xff]  }
 0x1bf   : > { %3516 = vmatpush1.bf16.msra.mxu0 %v9048_v47  ;;  %3622 = vmatpush1.bf16.msra.mxu1 %v9051_v48  ;;  %v9125_v47 = vld [vmem:[#allocation3 + $0xb6c] ss:$16 sps:$4 sm:$0xff]   ;;  %v9120_v48 = vld [vmem:[#allocation3 + $0xb60] ss:$16 sps:$4 sm:$0xff]  }
 0x1c0   : > { %3538 = vmatprep.subr.bf16.mxu0 %v9056_v49  ;;  %3644 = vmatprep.subr.bf16.mxu1 %v9059_v50  ;;  %v9123_v49 = vld [vmem:[#allocation3 + $0xb68] ss:$16 sps:$4 sm:$0xff]   ;;  %v9128_v50 = vld [vmem:[#allocation3 + $0xb84] ss:$16 sps:$4 sm:$0xff]  }
 0x1c2   : > { %3518 = vmatmul.mubr.bf16.vlgmr.msra.gmra.mrb[0].mxu0 %v7729_v54  ;;  %3624 = vmatmul.mubr.bf16.vlgmr.msra.gmra.mrb[0].mxu1 %v7729_v54  ;;  %v9126_v54 = vld [vmem:[#allocation3 + $0xb80] ss:$16 sps:$4 sm:$0xff]  }
 0x1c3   : > { %3539 = vmatpush1.bf16.msra.mxu0 %v9054_v51  ;;  %3645 = vmatpush1.bf16.msra.mxu1 %v9057_v58  ;;  %v9131_v51 = vld [vmem:[#allocation3 + $0xb8c] ss:$16 sps:$4 sm:$0xff]   ;;  %v9132_v58 = vld [vmem:[#allocation3 + $0xba0] ss:$16 sps:$4 sm:$0xff]  }
 0x1c4   : > { %3540 = vmatprep.subr.bf16.mxu0 %v9062_v60  ;;  %3646 = vmatprep.subr.bf16.mxu1 %v9065_v61  ;;  %v9140_v60 = vld [vmem:[#allocation3 + $0xbc4] ss:$16 sps:$4 sm:$0xff]  }
 0x1c5   : > { %3527 = vmatprep.mubr.bf16.mxu0 %v7734_v62  ;;  %3633 = vmatprep.mubr.bf16.mxu1 %v7734_v62  ;;  %v7866_v61 = vld [vmem:[%s10133_s10 + $0x60] sm:$0xff]  ;;  %v7868_v62 = vld [vmem:[%s10133_s10 + $0x70] sm:$0xff] }
 0x1c6   : > { %v4107_v0 = vshrl.u32 %v7866_v61, 16 }
 0x1c7   : > { %3541 = vmatpush1.bf16.msra.mxu0 %v9060_v1  ;;  %3647 = vmatpush1.bf16.msra.mxu1 %v9063_v2  ;;  %v4110_v1 = vshll.u32 %v7866_v61, 16  ;;  %v4116_v2 = vshll.u32 %v7868_v62, 16  ;;  %v9188_v61 = vld [vmem:[#allocation3 + $0x10c4] ss:$16 sps:$4 sm:$0xff]  }
 0x1c8   : > { %3542 = vmatprep.subr.bf16.mxu0 %v9068_v30  ;;  %3648 = vmatprep.subr.bf16.mxu1 %v9071_v3  ;;  %v4134_v30 = vshrl.u32 %v7868_v62, 16  ;;  %v9138_v3 = vld [vmem:[#allocation3 + $0xbc0] ss:$16 sps:$4 sm:$0xff]   ;;  %v4109_v39 = vrot.slane %v4107_v0, 4  ;;  %v9191_v62 = vld [vmem:[#allocation3 + $0x10cc] ss:$16 sps:$4 sm:$0xff]  }
 0x1c9   : > { %v9197_v0 = vld [vmem:[#allocation3 + $0x10ec] ss:$16 sps:$4 sm:$0xff]  }
 0x1ca   : > { %3528 = vmatmul.mubr.bf16.gmra.mrb[4].mxu0 %v7733_v4  ;;  %3634 = vmatmul.mubr.bf16.gmra.mrb[4].mxu1 %v7733_v4  ;;  %v9141_v4 = vld [vmem:[#allocation3 + $0xbc8] ss:$16 sps:$4 sm:$0xff]  }
 0x1cb   : > { %3543 = vmatpush1.bf16.msra.mxu0 %v9066_v7  ;;  %3649 = vmatpush1.bf16.msra.mxu1 %v9069_v8  ;;  %v9146_v7 = vld [vmem:[#allocation3 + $0xbe4] ss:$16 sps:$4 sm:$0xff]   ;;  %v9149_v8 = vld [vmem:[#allocation3 + $0xbec] ss:$16 sps:$4 sm:$0xff]  }
 0x1cc   : > { %3544 = vmatprep.subr.bf16.mxu0 %v9074_v9  ;;  %3650 = vmatprep.subr.bf16.mxu1 %v9077_v10  ;;  %v9144_v9 = vld [vmem:[#allocation3 + $0xbe0] ss:$16 sps:$4 sm:$0xff]   ;;  %v7728_v10 = vrot.slane %v7724_v43, 9  ;;  %v9189_v43 = vld [vmem:[#allocation3 + $0x10c8] ss:$16 sps:$4 sm:$0xff]  }
 0x1cd   : > { %3570 = vmatprep.mubr.bf16.mxu0 %v7732_v11  ;;  %3676 = vmatprep.mubr.bf16.mxu1 %v7732_v11  ;;  %v2681_v11 = vrot.slane %v2676_v63, 4 }
 0x1cf   : > { %3545 = vmatpush1.bf16.msra.mxu0 %v9072_v12  ;;  %3651 = vmatpush1.bf16.msra.mxu1 %v9075_v13  ;;  %v9744_v12 = vld [vmem:[%s10133_s10 + $0x118] sm:$0x11] }
 0x1d0   : > { %3546 = vmatprep.subr.bf16.mxu0 %v9080_v14  ;;  %3652 = vmatprep.subr.bf16.mxu1 %v9083_v16  ;;  %v2682_v13 = vrot.slane %v9744_v12, 5  ;;  %v4112_v14 = vrot.slane %v4110_v1, 5  ;;  %v4118_v16 = vrot.slane %v4116_v2, 5  ;;  %v9192_v1 = vld [vmem:[#allocation3 + $0x10e0] ss:$16 sps:$4 sm:$0xff]  }
 0x1d1   : > { %v9195_v2 = vld [vmem:[#allocation3 + $0x10e8] ss:$16 sps:$4 sm:$0xff]   ;;  %v9212_v12 = vld [vmem:[#allocation3 + $0x1144] ss:$16 sps:$4 sm:$0xff]  }
 0x1d3   : > { %3547 = vmatpush1.bf16.msra.mxu0 %v9078_v17  ;;  %3653 = vmatpush1.bf16.msra.mxu1 %v9081_v22  ;;  %v4136_v17 = vrot.slane %v4134_v30, 4  ;;  %v9147_v22 = vld [vmem:[#allocation3 + $0xbe8] ss:$16 sps:$4 sm:$0xff]   ;;  %v9200_v30 = vld [vmem:[#allocation3 + $0x1104] ss:$16 sps:$4 sm:$0xff]  }
 0x1d4   : > { %3548 = vmatprep.subr.bf16.mxu0 %v9086_v23  ;;  %3654 = vmatprep.subr.bf16.mxu1 %v9089_v24  ;;  %v7874_v23 = vld [vmem:[%s10133_s10 + $0x80] sm:$0x11] }
 0x1d5   : > { %v9152_v24 = vld [vmem:[#allocation3 + $0x1004] ss:$16 sps:$4 sm:$0xff]  }
 0x1d7   : > { %3549 = vmatpush1.bf16.msra.mxu0 %v9084_v25  ;;  %3655 = vmatpush1.bf16.msra.mxu1 %v9087_v26  ;;  %v9155_v25 = vld [vmem:[#allocation3 + $0x100c] ss:$16 sps:$4 sm:$0xff]   ;;  %v7731_v26 = vcombine.low %v10273_v5, %v10277_v6 }
 0x1d8   : > { %3550 = vmatprep.subr.bf16.mxu0 %v9092_v27  ;;  %3656 = vmatprep.subr.bf16.mxu1 %v9095_v28  ;;  %v2683_v27 = vsel %vm10240_vm5, %v2681_v11, %v2682_v13  ;;  %v2677_v28 = vsel %vm10240_vm5, %v7728_v10, %v2676_v63  ;;  %v9194_v63 = vld [vmem:[#allocation3 + $0x10e4] ss:$16 sps:$4 sm:$0xff]   ;;  %v9204_v10 = vld [vmem:[#allocation3 + $0x1120] ss:$16 sps:$4 sm:$0xff]   ;;  %v9207_v11 = vld [vmem:[#allocation3 + $0x1128] ss:$16 sps:$4 sm:$0xff]  }
 0x1d9   : > { %v9215_v13 = vld [vmem:[#allocation3 + $0x114c] ss:$16 sps:$4 sm:$0xff]  }
 0x1db   : > { %3551 = vmatpush1.bf16.msra.mxu0 %v9090_v29  ;;  %3657 = vmatpush1.bf16.msra.mxu1 %v9093_v31  ;;  %v4113_v29 = vor.u32 %v4112_v14, %v4109_v39  ;;  %v4137_v31 = vor.u32 %v4136_v17, %v4118_v16  ;;  %v9210_v39 = vld [vmem:[#allocation3 + $0x1140] ss:$16 sps:$4 sm:$0xff]   ;;  %v9213_v14 = vld [vmem:[#allocation3 + $0x1148] ss:$16 sps:$4 sm:$0xff]   ;;  %v9221_v17 = vld [vmem:[#allocation3 + $0x116c] ss:$16 sps:$4 sm:$0xff]  }
 0x1dc   : > { %3552 = vmatprep.subr.bf16.mxu0 %v9098_v32  ;;  %3658 = vmatprep.subr.bf16.mxu1 %v9101_v20  ;;  %v4140_v32 = vshll.u32 %v7874_v23, 16  ;;  %v9150_v20 = vld [vmem:[#allocation3 + $0x1000] ss:$16 sps:$4 sm:$0xff]  }
 0x1dd   : > { %v4114_v5 = vrot.slane %v4113_v29, 4  ;;  %v4138_v6 = vrot.slane %v4137_v31, 4  ;;  %v10307_v23 = vld [vmem:[%s10133_s10 + $0xa0] sm:$0xff] }
 0x1de   : > { %v4164_v31 = vshll.u32 %v10307_v23, 16 }
 0x1df   : > { %3553 = vmatpush1.bf16.msra.mxu0 %v9096_v21  ;;  %3659 = vmatpush1.bf16.msra.mxu1 %v9099_v33  ;;  %v9153_v21 = vld [vmem:[#allocation3 + $0x1008] ss:$16 sps:$4 sm:$0xff]   ;;  %v9158_v33 = vld [vmem:[#allocation3 + $0x1024] ss:$16 sps:$4 sm:$0xff]  }
 0x1e0   : > { %3554 = vmatprep.subr.bf16.mxu0 %v9104_v34  ;;  %3660 = vmatprep.subr.bf16.mxu1 %v9107_v35  ;;  %v9161_v34 = vld [vmem:[#allocation3 + $0x102c] ss:$16 sps:$4 sm:$0xff]   ;;  %v7736_v35 = vcombine.high %v2677_v28, %v2683_v27 }
 0x1e3   : > { %3555 = vmatpush1.bf16.msra.mxu0 %v9102_v18  ;;  %3661 = vmatpush1.bf16.msra.mxu1 %v9105_v15  ;;  %v4142_v18 = vrot.slane %v4140_v32, 5  ;;  %v9156_v15 = vld [vmem:[#allocation3 + $0x1020] ss:$16 sps:$4 sm:$0xff]   ;;  %v4182_v32 = vshrl.u32 %v10307_v23, 16 }
 0x1e4   : > { %3556 = vmatprep.subr.bf16.mxu0 %v9110_v19  ;;  %3662 = vmatprep.subr.bf16.mxu1 %v9113_v36  ;;  %v9159_v19 = vld [vmem:[#allocation3 + $0x1028] ss:$16 sps:$4 sm:$0xff]   ;;  %v9164_v36 = vld [vmem:[#allocation3 + $0x1044] ss:$16 sps:$4 sm:$0xff]  }
 0x1e7   : > { %3557 = vmatpush1.bf16.msra.mxu0 %v9108_v37  ;;  %3663 = vmatpush1.bf16.msra.mxu1 %v9111_v44  ;;  %v9167_v37 = vld [vmem:[#allocation3 + $0x104c] ss:$16 sps:$4 sm:$0xff]   ;;  %v7735_v44 = vcombine.low %v2677_v28, %v2683_v27 }
 0x1e8   : > { %3558 = vmatprep.subr.bf16.mxu0 %v9116_v38  ;;  %3664 = vmatprep.subr.bf16.mxu1 %v9119_v52  ;;  %v10295_v38 = vsel %vm10160_vm2, %v4114_v5, %v4118_v16  ;;  %v10299_v52 = vsel %vm10160_vm2, %v4138_v6, %v4142_v18  ;;  %v9218_v16 = vld [vmem:[#allocation3 + $0x1164] ss:$16 sps:$4 sm:$0xff]   ;;  %v9227_v27 = vld [vmem:[#allocation3 + $0x118c] ss:$16 sps:$4 sm:$0xff]   ;;  %v9228_v18 = vld [vmem:[#allocation3 + $0x11a0] ss:$16 sps:$4 sm:$0xff]  }
 0x1eb   : > { %3559 = vmatpush1.bf16.msra.mxu0 %v9114_v53  ;;  %3665 = vmatpush1.bf16.msra.mxu1 %v9117_v40  ;;  %v9162_v53 = vld [vmem:[#allocation3 + $0x1040] ss:$16 sps:$4 sm:$0xff]   ;;  %v9165_v40 = vld [vmem:[#allocation3 + $0x1048] ss:$16 sps:$4 sm:$0xff]  }
 0x1ec   : > { %3560 = vmatprep.subr.bf16.mxu0 %v9122_v46  ;;  %3666 = vmatprep.subr.bf16.mxu1 %v9125_v47  ;;  %v9170_v46 = vld [vmem:[#allocation3 + $0x1064] ss:$16 sps:$4 sm:$0xff]   ;;  %v9173_v47 = vld [vmem:[#allocation3 + $0x106c] ss:$16 sps:$4 sm:$0xff]  }
 0x1ef   : > { %3561 = vmatpush1.bf16.msra.mxu0 %v9120_v48  ;;  %3667 = vmatpush1.bf16.msra.mxu1 %v9123_v49  ;;  %v7879_v48 = vcombine.high %v10295_v38, %v10299_v52  ;;  %v9168_v49 = vld [vmem:[#allocation3 + $0x1060] ss:$16 sps:$4 sm:$0xff]  }
 0x1f0   : > { %3562 = vmatprep.subr.bf16.mxu0 %v9128_v50  ;;  %3668 = vmatprep.subr.bf16.mxu1 %v9131_v51  ;;  %v9171_v50 = vld [vmem:[#allocation3 + $0x1068] ss:$16 sps:$4 sm:$0xff]   ;;  %v9176_v51 = vld [vmem:[#allocation3 + $0x1084] ss:$16 sps:$4 sm:$0xff]  }
 0x1f3   : > { %3563 = vmatpush1.bf16.msra.mxu0 %v9126_v54  ;;  %3669 = vmatpush1.bf16.msra.mxu1 %v9129_v55  ;;  %v9179_v54 = vld [vmem:[#allocation3 + $0x108c] ss:$16 sps:$4 sm:$0xff]   ;;  %v9174_v55 = vld [vmem:[#allocation3 + $0x1080] ss:$16 sps:$4 sm:$0xff]  }
 0x1f4   : > { %3564 = vmatprep.subr.bf16.mxu0 %v9134_v56  ;;  %3670 = vmatprep.subr.bf16.mxu1 %v9137_v57  ;;  %v9177_v56 = vld [vmem:[#allocation3 + $0x1088] ss:$16 sps:$4 sm:$0xff]   ;;  %v9182_v57 = vld [vmem:[#allocation3 + $0x10a4] ss:$16 sps:$4 sm:$0xff]  }
 0x1f7   : > { %3565 = vmatpush1.bf16.msra.mxu0 %v9132_v58  ;;  %3671 = vmatpush1.bf16.msra.mxu1 %v9135_v59  ;;  %v9185_v58 = vld [vmem:[#allocation3 + $0x10ac] ss:$16 sps:$4 sm:$0xff]   ;;  %v9180_v59 = vld [vmem:[#allocation3 + $0x10a0] ss:$16 sps:$4 sm:$0xff]  }
 0x1f8   : > { %3566 = vmatprep.subr.bf16.mxu0 %v9140_v60  ;;  %3672 = vmatprep.subr.bf16.mxu1 %v9143_v42  ;;  %v9183_v60 = vld [vmem:[#allocation3 + $0x10a8] ss:$16 sps:$4 sm:$0xff]   ;;  %v9186_v42 = vld [vmem:[#allocation3 + $0x10c0] ss:$16 sps:$4 sm:$0xff]  }
 0x1fb   : > { %3567 = vmatpush1.bf16.msra.mxu0 %v9138_v3  ;;  %3673 = vmatpush1.bf16.msra.mxu1 %v9141_v4  ;;  %v9203_v3 = vld [vmem:[#allocation3 + $0x110c] ss:$16 sps:$4 sm:$0xff]   ;;  %v9198_v4 = vld [vmem:[#allocation3 + $0x1100] ss:$16 sps:$4 sm:$0xff]  }
 0x1fc   : > { %3568 = vmatprep.subr.bf16.mxu0 %v9146_v7  ;;  %3674 = vmatprep.subr.bf16.mxu1 %v9149_v8  ;;  %v9201_v7 = vld [vmem:[#allocation3 + $0x1108] ss:$16 sps:$4 sm:$0xff]   ;;  %v9206_v8 = vld [vmem:[#allocation3 + $0x1124] ss:$16 sps:$4 sm:$0xff]  }
 0x1ff   : > { %3569 = vmatpush1.bf16.msra.mxu0 %v9144_v9  ;;  %3675 = vmatpush1.bf16.msra.mxu1 %v9147_v22  ;;  %v9209_v9 = vld [vmem:[#allocation3 + $0x112c] ss:$16 sps:$4 sm:$0xff]   ;;  %v10304_v22 = vld [vmem:[%s10133_s10 + $0x90] sm:$0xff] }
 0x200   : > { %5003 = vmatprep.subr.bf16.mxu0 %v9152_v24  ;;  %5109 = vmatprep.subr.bf16.mxu1 %v9155_v25  ;;  %v9216_v24 = vld [vmem:[#allocation3 + $0x1160] ss:$16 sps:$4 sm:$0xff]   ;;  %v9219_v25 = vld [vmem:[#allocation3 + $0x1168] ss:$16 sps:$4 sm:$0xff]   ;;  %v4155_v28 = vshrl.u32 %v10304_v22, 16  ;;  %v4158_v29 = vshll.u32 %v10304_v22, 16 }
 0x202   : > { %3571 = vmatmul.mubr.bf16.vlgmr.msra.gmra.mrb[0].mxu0 %v7731_v26  ;;  %3677 = vmatmul.mubr.bf16.vlgmr.msra.gmra.mrb[0].mxu1 %v7731_v26  ;;  %v9224_v26 = vld [vmem:[#allocation3 + $0x1184] ss:$16 sps:$4 sm:$0xff]   ;;  %v4157_v5 = vrot.slane %v4155_v28, 4  ;;  %v4160_v6 = vrot.slane %v4158_v29, 5 }
 0x203   : > { %5004 = vmatpush1.bf16.msra.mxu0 %v9150_v20  ;;  %5110 = vmatpush1.bf16.msra.mxu1 %v9153_v21  ;;  %v9222_v20 = vld [vmem:[#allocation3 + $0x1180] ss:$16 sps:$4 sm:$0xff]   ;;  %v9225_v21 = vld [vmem:[#allocation3 + $0x1188] ss:$16 sps:$4 sm:$0xff]  }
 0x204   : > { %5005 = vmatprep.subr.bf16.mxu0 %v9158_v33  ;;  %5111 = vmatprep.subr.bf16.mxu1 %v9161_v34  ;;  %v9230_v33 = vld [vmem:[#allocation3 + $0x11a4] ss:$16 sps:$4 sm:$0xff]   ;;  %v9233_v34 = vld [vmem:[#allocation3 + $0x11ac] ss:$16 sps:$4 sm:$0xff]  }
 0x205   : > { %3580 = vmatprep.mubr.bf16.mxu0 %v7736_v35  ;;  %3686 = vmatprep.mubr.bf16.mxu1 %v7736_v35  ;;  %v7876_v35 = vld [vmem:[%s10133_s10 + $0xb0] sm:$0x11] }
 0x207   : > { %5006 = vmatpush1.bf16.msra.mxu0 %v9156_v15  ;;  %5112 = vmatpush1.bf16.msra.mxu1 %v9159_v19  ;;  %v4166_v15 = vrot.slane %v4164_v31, 5  ;;  %v4184_v19 = vrot.slane %v4182_v32, 4  ;;  %v9258_v32 = vld [vmem:[#allocation3 + $0x1240] ss:$16 sps:$4 sm:$0xff]  }
 0x208   : > { %5007 = vmatprep.subr.bf16.mxu0 %v9164_v36  ;;  %5113 = vmatprep.subr.bf16.mxu1 %v9167_v37  ;;  %v10315_v36 = vld [vmem:[%s10133_s10 + $0x68] sm:$0xff] }
 0x209   : > { %v9231_v37 = vld [vmem:[#allocation3 + $0x11a8] ss:$16 sps:$4 sm:$0xff]  }
 0x20a   : > { %3581 = vmatmul.mubr.bf16.gmra.mrb[4].mxu0 %v7735_v44  ;;  %3687 = vmatmul.mubr.bf16.gmra.mrb[4].mxu1 %v7735_v44  ;;  %v10318_v44 = vld [vmem:[%s10133_s10 + $0x78] sm:$0xff] }
 0x20b   : > { %5008 = vmatpush1.bf16.msra.mxu0 %v9162_v53  ;;  %5114 = vmatpush1.bf16.msra.mxu1 %v9165_v40  ;;  %v9236_v53 = vld [vmem:[#allocation3 + $0x11c4] ss:$16 sps:$4 sm:$0xff]   ;;  %v9239_v40 = vld [vmem:[#allocation3 + $0x11cc] ss:$16 sps:$4 sm:$0xff]  }
 0x20c   : > { %5009 = vmatprep.subr.bf16.mxu0 %v9170_v46  ;;  %5115 = vmatprep.subr.bf16.mxu1 %v9173_v47  ;;  %v4161_v46 = vor.u32 %v4160_v6, %v4157_v5  ;;  %v4185_v47 = vor.u32 %v4184_v19, %v4166_v15  ;;  %v9267_v5 = vld [vmem:[#allocation3 + $0x1268] ss:$16 sps:$4 sm:$0xff]   ;;  %v9272_v6 = vld [vmem:[#allocation3 + $0x1284] ss:$16 sps:$4 sm:$0xff]  }
 0x20d   : > { %5035 = vmatprep.mubr.bf16.mxu0 %v7879_v48  ;;  %5141 = vmatprep.mubr.bf16.mxu1 %v7879_v48  ;;  %v4188_v48 = vshll.u32 %v7876_v35, 16  ;;  %v9264_v35 = vld [vmem:[#allocation3 + $0x1260] ss:$16 sps:$4 sm:$0xff]   ;;  %v9273_v19 = vld [vmem:[#allocation3 + $0x1288] ss:$16 sps:$4 sm:$0xff]  }
 0x20f   : > { %5010 = vmatpush1.bf16.msra.mxu0 %v9168_v49  ;;  %5116 = vmatpush1.bf16.msra.mxu1 %v9171_v50  ;;  %v4121_v49 = vshrl.u32 %v10315_v36, 16  ;;  %v4124_v50 = vshll.u32 %v10315_v36, 16 }
 0x210   : > { %5011 = vmatprep.subr.bf16.mxu0 %v9176_v51  ;;  %5117 = vmatprep.subr.bf16.mxu1 %v9179_v54  ;;  %v4130_v51 = vshll.u32 %v10318_v44, 16  ;;  %v4144_v54 = vshrl.u32 %v10318_v44, 16 }
 0x213   : > { %5012 = vmatpush1.bf16.msra.mxu0 %v9174_v55  ;;  %5118 = vmatpush1.bf16.msra.mxu1 %v9177_v56  ;;  %v9234_v55 = vld [vmem:[#allocation3 + $0x11c0] ss:$16 sps:$4 sm:$0xff]   ;;  %v9237_v56 = vld [vmem:[#allocation3 + $0x11c8] ss:$16 sps:$4 sm:$0xff]  }
 0x214   : > { %5013 = vmatprep.subr.bf16.mxu0 %v9182_v57  ;;  %5119 = vmatprep.subr.bf16.mxu1 %v9185_v58  ;;  %v9242_v57 = vld [vmem:[#allocation3 + $0x11e4] ss:$16 sps:$4 sm:$0xff]   ;;  %v9245_v58 = vld [vmem:[#allocation3 + $0x11ec] ss:$16 sps:$4 sm:$0xff]  }
 0x217   : > { %5014 = vmatpush1.bf16.msra.mxu0 %v9180_v59  ;;  %5120 = vmatpush1.bf16.msra.mxu1 %v9183_v60  ;;  %v4162_v59 = vrot.slane %v4161_v46, 4  ;;  %v9240_v60 = vld [vmem:[#allocation3 + $0x11e0] ss:$16 sps:$4 sm:$0xff]   ;;  %v9279_v46 = vld [vmem:[#allocation3 + $0x12a8] ss:$16 sps:$4 sm:$0xff]  }
 0x218   : > { %5015 = vmatprep.subr.bf16.mxu0 %v9188_v61  ;;  %5121 = vmatprep.subr.bf16.mxu1 %v9191_v62  ;;  %v10324_v61 = vrot.slane %v4185_v47, 4  ;;  %v4190_v62 = vrot.slane %v4188_v48, 5  ;;  %v9284_v47 = vld [vmem:[#allocation3 + $0x12c4] ss:$16 sps:$4 sm:$0xff]   ;;  %v9287_v48 = vld [vmem:[#allocation3 + $0x12cc] ss:$16 sps:$4 sm:$0xff]  }
 0x21b   : > { %5016 = vmatpush1.bf16.msra.mxu0 %v9186_v42  ;;  %5122 = vmatpush1.bf16.msra.mxu1 %v9189_v43  ;;  %v4123_v42 = vrot.slane %v4121_v49, 4  ;;  %v4126_v43 = vrot.slane %v4124_v50, 5  ;;  %v9282_v49 = vld [vmem:[#allocation3 + $0x12c0] ss:$16 sps:$4 sm:$0xff]   ;;  %v9285_v50 = vld [vmem:[#allocation3 + $0x12c8] ss:$16 sps:$4 sm:$0xff]  }
 0x21c   : > { %5017 = vmatprep.subr.bf16.mxu0 %v9194_v63  ;;  %5123 = vmatprep.subr.bf16.mxu1 %v9197_v0  ;;  %v4132_v63 = vrot.slane %v4130_v51, 5  ;;  %v4146_v0 = vrot.slane %v4144_v54, 4  ;;  %v9290_v51 = vld [vmem:[#allocation3 + $0x12e4] ss:$16 sps:$4 sm:$0xff]   ;;  %v9293_v54 = vld [vmem:[#allocation3 + $0x12ec] ss:$16 sps:$4 sm:$0xff]  }
 0x21f   : > { %5018 = vmatpush1.bf16.msra.mxu0 %v9192_v1  ;;  %5124 = vmatpush1.bf16.msra.mxu1 %v9195_v2  ;;  %v9243_v1 = vld [vmem:[#allocation3 + $0x11e8] ss:$16 sps:$4 sm:$0xff]  }
 0x220   : > { %5019 = vmatprep.subr.bf16.mxu0 %v9200_v30  ;;  %5125 = vmatprep.subr.bf16.mxu1 %v9203_v3  ;;  %v7875_v2 = vld [vmem:[%s10133_s10 + $0x88] sm:$0x11]  ;;  %v9248_v30 = vld [vmem:[#allocation3 + $0x1204] ss:$16 sps:$4 sm:$0xff]  }
 0x221   : > { %v9251_v3 = vld [vmem:[#allocation3 + $0x120c] ss:$16 sps:$4 sm:$0xff]  }
 0x223   : > { %5020 = vmatpush1.bf16.msra.mxu0 %v9198_v4  ;;  %5126 = vmatpush1.bf16.msra.mxu1 %v9201_v7  ;;  %v7878_v4 = vcombine.low %v10295_v38, %v10299_v52  ;;  %v10331_v7 = vsel %vm10160_vm2, %v4162_v59, %v4166_v15  ;;  %v9270_v15 = vld [vmem:[#allocation3 + $0x1280] ss:$16 sps:$4 sm:$0xff]  }
 0x224   : > { %5021 = vmatprep.subr.bf16.mxu0 %v9206_v8  ;;  %5127 = vmatprep.subr.bf16.mxu1 %v9209_v9  ;;  %v4191_v8 = vsel %vm10160_vm2, %v10324_v61, %v4190_v62  ;;  %v4127_v9 = vor.u32 %v4126_v43, %v4123_v42  ;;  %v9294_v59 = vld [vmem:[#allocation3 + $0x1300] ss:$16 sps:$4 sm:$0xff]   ;;  %v9302_v62 = vld [vmem:[#allocation3 + $0x1324] ss:$16 sps:$4 sm:$0xff]   ;;  %v9305_v42 = vld [vmem:[#allocation3 + $0x132c] ss:$16 sps:$4 sm:$0xff]  }
 0x225   : > { %v7883_v38 = vcombine.high %v10331_v7, %v4191_v8  ;;  %v7882_v28 = vcombine.low %v10331_v7, %v4191_v8  ;;  %v9300_v43 = vld [vmem:[#allocation3 + $0x1320] ss:$16 sps:$4 sm:$0xff]  }
 0x226   : > { %v4128_v52 = vrot.slane %v4127_v9, 4  ;;  %v9312_v8 = vld [vmem:[#allocation3 + $0x1360] ss:$16 sps:$4 sm:$0xff]   ;;  %v9315_v9 = vld [vmem:[#allocation3 + $0x1368] ss:$16 sps:$4 sm:$0xff]  }
 0x227   : > { %5022 = vmatpush1.bf16.msra.mxu0 %v9204_v10  ;;  %5128 = vmatpush1.bf16.msra.mxu1 %v9207_v11  ;;  %v4147_v10 = vor.u32 %v4146_v0, %v4132_v63  ;;  %v4150_v11 = vshll.u32 %v7875_v2, 16  ;;  %v9308_v0 = vld [vmem:[#allocation3 + $0x1344] ss:$16 sps:$4 sm:$0xff]   ;;  %v9306_v2 = vld [vmem:[#allocation3 + $0x1340] ss:$16 sps:$4 sm:$0xff]  }
 0x228   : > { %5023 = vmatprep.subr.bf16.mxu0 %v9212_v12  ;;  %5129 = vmatprep.subr.bf16.mxu1 %v9215_v13  ;;  %v9246_v12 = vld [vmem:[#allocation3 + $0x1200] ss:$16 sps:$4 sm:$0xff]   ;;  %v9249_v13 = vld [vmem:[#allocation3 + $0x1208] ss:$16 sps:$4 sm:$0xff]   ;;  %v10342_v29 = vsel %vm10160_vm2, %v4128_v52, %v4132_v63 }
 0x229   : > { %v9303_v63 = vld [vmem:[#allocation3 + $0x1328] ss:$16 sps:$4 sm:$0xff]  }
 0x22b   : > { %5024 = vmatpush1.bf16.msra.mxu0 %v9210_v39  ;;  %5130 = vmatpush1.bf16.msra.mxu1 %v9213_v14  ;;  %v9254_v39 = vld [vmem:[#allocation3 + $0x1224] ss:$16 sps:$4 sm:$0xff]   ;;  %v9257_v14 = vld [vmem:[#allocation3 + $0x122c] ss:$16 sps:$4 sm:$0xff]  }
 0x22c   : > { %5025 = vmatprep.subr.bf16.mxu0 %v9218_v16  ;;  %5131 = vmatprep.subr.bf16.mxu1 %v9221_v17  ;;  %v10337_v16 = vrot.slane %v4147_v10, 4  ;;  %v4152_v17 = vrot.slane %v4150_v11, 5  ;;  %v10352_v10 = vld [vmem:[%s10133_s10 + $0x98] sm:$0xff]  ;;  %v10355_v11 = vld [vmem:[%s10133_s10 + $0xa8] sm:$0xff] }
 0x22d   : > { %v4192_v52 = vshrl.u32 %v10355_v11, 16 }
 0x22e   : > { %v10347_v31 = vsel %vm10160_vm2, %v10337_v16, %v4152_v17  ;;  %v9318_v17 = vld [vmem:[#allocation3 + $0x1380] ss:$16 sps:$4 sm:$0xff]  }
 0x22f   : > { %5026 = vmatpush1.bf16.msra.mxu0 %v9216_v24  ;;  %5132 = vmatpush1.bf16.msra.mxu1 %v9219_v25  ;;  %v9252_v24 = vld [vmem:[#allocation3 + $0x1220] ss:$16 sps:$4 sm:$0xff]   ;;  %v9255_v25 = vld [vmem:[#allocation3 + $0x1228] ss:$16 sps:$4 sm:$0xff]  }
 0x230   : > { %5027 = vmatprep.subr.bf16.mxu0 %v9224_v26  ;;  %5133 = vmatprep.subr.bf16.mxu1 %v9227_v27  ;;  %v9260_v26 = vld [vmem:[#allocation3 + $0x1244] ss:$16 sps:$4 sm:$0xff]   ;;  %v9263_v27 = vld [vmem:[#allocation3 + $0x124c] ss:$16 sps:$4 sm:$0xff]  }
 0x233   : > { %5028 = vmatpush1.bf16.msra.mxu0 %v9222_v20  ;;  %5134 = vmatpush1.bf16.msra.mxu1 %v9225_v21  ;;  %v9261_v20 = vld [vmem:[#allocation3 + $0x1248] ss:$16 sps:$4 sm:$0xff]   ;;  %v9266_v21 = vld [vmem:[#allocation3 + $0x1264] ss:$16 sps:$4 sm:$0xff]  }
 0x234   : > { %5029 = vmatprep.subr.bf16.mxu0 %v9230_v33  ;;  %5135 = vmatprep.subr.bf16.mxu1 %v9233_v34  ;;  %v9269_v33 = vld [vmem:[#allocation3 + $0x126c] ss:$16 sps:$4 sm:$0xff]   ;;  %v7881_v34 = vcombine.high %v10342_v29, %v10347_v31 }
 0x237   : > { %5030 = vmatpush1.bf16.msra.mxu0 %v9228_v18  ;;  %5136 = vmatpush1.bf16.msra.mxu1 %v9231_v37  ;;  %v9275_v18 = vld [vmem:[#allocation3 + $0x128c] ss:$16 sps:$4 sm:$0xff]   ;;  %v9278_v37 = vld [vmem:[#allocation3 + $0x12a4] ss:$16 sps:$4 sm:$0xff]  }
 0x238   : > { %5031 = vmatprep.subr.bf16.mxu0 %v9236_v53  ;;  %5137 = vmatprep.subr.bf16.mxu1 %v9239_v40  ;;  %v9281_v53 = vld [vmem:[#allocation3 + $0x12ac] ss:$16 sps:$4 sm:$0xff]   ;;  %v9276_v40 = vld [vmem:[#allocation3 + $0x12a0] ss:$16 sps:$4 sm:$0xff]  }
 0x23b   : > { %5032 = vmatpush1.bf16.msra.mxu0 %v9234_v55  ;;  %5138 = vmatpush1.bf16.msra.mxu1 %v9237_v56  ;;  %v9288_v55 = vld [vmem:[#allocation3 + $0x12e0] ss:$16 sps:$4 sm:$0xff]   ;;  %v9291_v56 = vld [vmem:[#allocation3 + $0x12e8] ss:$16 sps:$4 sm:$0xff]  }
 0x23c   : > { %5033 = vmatprep.subr.bf16.mxu0 %v9242_v57  ;;  %5139 = vmatprep.subr.bf16.mxu1 %v9245_v58  ;;  %v9296_v57 = vld [vmem:[#allocation3 + $0x1304] ss:$16 sps:$4 sm:$0xff]   ;;  %v9299_v58 = vld [vmem:[#allocation3 + $0x130c] ss:$16 sps:$4 sm:$0xff]  }
 0x23f   : > { %5034 = vmatpush1.bf16.msra.mxu0 %v9240_v60  ;;  %5140 = vmatpush1.bf16.msra.mxu1 %v9243_v1  ;;  %v9297_v60 = vld [vmem:[#allocation3 + $0x1308] ss:$16 sps:$4 sm:$0xff]   ;;  %v9311_v1 = vld [vmem:[#allocation3 + $0x134c] ss:$16 sps:$4 sm:$0xff]  }
 0x240   : > { %5056 = vmatprep.subr.bf16.mxu0 %v9248_v30  ;;  %5162 = vmatprep.subr.bf16.mxu1 %v9251_v3  ;;  %v9309_v30 = vld [vmem:[#allocation3 + $0x1348] ss:$16 sps:$4 sm:$0xff]   ;;  %v9314_v3 = vld [vmem:[#allocation3 + $0x1364] ss:$16 sps:$4 sm:$0xff]  }
 0x242   : > { %5036 = vmatmul.mubr.bf16.vlgmr.msra.gmra.mrb[8].mxu0 %v7878_v4  ;;  %5142 = vmatmul.mubr.bf16.vlgmr.msra.gmra.mrb[8].mxu1 %v7878_v4  ;;  %v9317_v4 = vld [vmem:[#allocation3 + $0x136c] ss:$16 sps:$4 sm:$0xff]  }
 0x243   : > { %5057 = vmatpush1.bf16.msra.mxu0 %v9246_v12  ;;  %5163 = vmatpush1.bf16.msra.mxu1 %v9249_v13  ;;  %v9320_v12 = vld [vmem:[#allocation3 + $0x1384] ss:$16 sps:$4 sm:$0xff]   ;;  %v9323_v13 = vld [vmem:[#allocation3 + $0x138c] ss:$16 sps:$4 sm:$0xff]  }
 0x244   : > { %5058 = vmatprep.subr.bf16.mxu0 %v9254_v39  ;;  %5164 = vmatprep.subr.bf16.mxu1 %v9257_v14  ;;  %v4169_v39 = vshrl.u32 %v10352_v10, 16  ;;  %v4172_v14 = vshll.u32 %v10352_v10, 16 }
 0x245   : > { %5045 = vmatprep.mubr.bf16.mxu0 %v7883_v38  ;;  %5151 = vmatprep.mubr.bf16.mxu1 %v7883_v38  ;;  %v4178_v38 = vshll.u32 %v10355_v11, 16 }
 0x247   : > { %5059 = vmatpush1.bf16.msra.mxu0 %v9252_v24  ;;  %5165 = vmatpush1.bf16.msra.mxu1 %v9255_v25  ;;  %v9321_v24 = vld [vmem:[#allocation3 + $0x1388] ss:$16 sps:$4 sm:$0xff]   ;;  %v9326_v25 = vld [vmem:[#allocation3 + $0x13a4] ss:$16 sps:$4 sm:$0xff]  }
 0x248   : > { %5060 = vmatprep.subr.bf16.mxu0 %v9260_v26  ;;  %5166 = vmatprep.subr.bf16.mxu1 %v9263_v27  ;;  %v9329_v26 = vld [vmem:[#allocation3 + $0x13ac] ss:$16 sps:$4 sm:$0xff]   ;;  %v4171_v27 = vrot.slane %v4169_v39, 4  ;;  %v9363_v39 = vld [vmem:[#allocation3 + $0xc68] ss:$16 sps:$4 sm:$0xff]  }
 0x24a   : > { %5046 = vmatmul.mubr.bf16.gmra.mrb[12].mxu0 %v7882_v28  ;;  %5152 = vmatmul.mubr.bf16.gmra.mrb[12].mxu1 %v7882_v28  ;;  %v4174_v28 = vrot.slane %v4172_v14, 5  ;;  %v9368_v14 = vld [vmem:[#allocation3 + $0xc84] ss:$16 sps:$4 sm:$0xff]  }
 0x24b   : > { %5061 = vmatpush1.bf16.msra.mxu0 %v9258_v32  ;;  %5167 = vmatpush1.bf16.msra.mxu1 %v9261_v20  ;;  %v4180_v32 = vrot.slane %v4178_v38, 5  ;;  %v4194_v20 = vrot.slane %v4192_v52, 4  ;;  %v9371_v38 = vld [vmem:[#allocation3 + $0xc8c] ss:$16 sps:$4 sm:$0xff]   ;;  %v9366_v52 = vld [vmem:[#allocation3 + $0xc80] ss:$16 sps:$4 sm:$0xff]  }
 0x24c   : > { %5062 = vmatprep.subr.bf16.mxu0 %v9266_v21  ;;  %5168 = vmatprep.subr.bf16.mxu1 %v9269_v33  ;;  %v9324_v21 = vld [vmem:[#allocation3 + $0x13a0] ss:$16 sps:$4 sm:$0xff]   ;;  %v9327_v33 = vld [vmem:[#allocation3 + $0x13a8] ss:$16 sps:$4 sm:$0xff]  }
 0x24d   : > { %5088 = vmatprep.mubr.bf16.mxu0 %v7881_v34  ;;  %5194 = vmatprep.mubr.bf16.mxu1 %v7881_v34  ;;  %v7877_v34 = vld [vmem:[%s10133_s10 + $0xb8] sm:$0x11] }
 0x24f   : > { %5063 = vmatpush1.bf16.msra.mxu0 %v9264_v35  ;;  %5169 = vmatpush1.bf16.msra.mxu1 %v9267_v5  ;;  %v9332_v35 = vld [vmem:[#allocation3 + $0x13c4] ss:$16 sps:$4 sm:$0xff]   ;;  %v9335_v5 = vld [vmem:[#allocation3 + $0x13cc] ss:$16 sps:$4 sm:$0xff]  }
 0x250   : > { %5064 = vmatprep.subr.bf16.mxu0 %v9272_v6  ;;  %5170 = vmatprep.subr.bf16.mxu1 %v9275_v18  ;;  %v4175_v6 = vor.u32 %v4174_v28, %v4171_v27  ;;  %v4195_v18 = vor.u32 %v4194_v20, %v4180_v32  ;;  %v9375_v27 = vld [vmem:[#allocation3 + $0xca8] ss:$16 sps:$4 sm:$0xff]   ;;  %v9380_v28 = vld [vmem:[#allocation3 + $0xcc4] ss:$16 sps:$4 sm:$0xff]   ;;  %v9378_v20 = vld [vmem:[#allocation3 + $0xcc0] ss:$16 sps:$4 sm:$0xff]  }
 0x253   : > { %5065 = vmatpush1.bf16.msra.mxu0 %v9270_v15  ;;  %5171 = vmatpush1.bf16.msra.mxu1 %v9273_v19  ;;  %v4198_v15 = vshll.u32 %v7877_v34, 16  ;;  %v9330_v19 = vld [vmem:[#allocation3 + $0x13c0] ss:$16 sps:$4 sm:$0xff]   ;;  %v9389_v34 = vld [vmem:[#allocation3 + $0xcec] ss:$16 sps:$4 sm:$0xff]  }
 0x254   : > { %5066 = vmatprep.subr.bf16.mxu0 %v9278_v37  ;;  %5172 = vmatprep.subr.bf16.mxu1 %v9281_v53  ;;  %v9333_v37 = vld [vmem:[#allocation3 + $0x13c8] ss:$16 sps:$4 sm:$0xff]   ;;  %v9338_v53 = vld [vmem:[#allocation3 + $0x13e4] ss:$16 sps:$4 sm:$0xff]  }
 0x257   : > { %5067 = vmatpush1.bf16.msra.mxu0 %v9276_v40  ;;  %5173 = vmatpush1.bf16.msra.mxu1 %v9279_v46  ;;  %v9341_v40 = vld [vmem:[#allocation3 + $0x13ec] ss:$16 sps:$4 sm:$0xff]   ;;  %v4176_v46 = vrot.slane %v4175_v6, 4  ;;  %v9392_v6 = vld [vmem:[#allocation3 + $0xd04] ss:$16 sps:$4 sm:$0xff]  }
 0x258   : > { %5068 = vmatprep.subr.bf16.mxu0 %v9284_v47  ;;  %5174 = vmatprep.subr.bf16.mxu1 %v9287_v48  ;;  %v10362_v47 = vrot.slane %v4195_v18, 4  ;;  %v4200_v48 = vrot.slane %v4198_v15, 5  ;;  %v9395_v18 = vld [vmem:[#allocation3 + $0xd0c] ss:$16 sps:$4 sm:$0xff]   ;;  %v9390_v15 = vld [vmem:[#allocation3 + $0xd00] ss:$16 sps:$4 sm:$0xff]  }
 0x25b   : > { %5069 = vmatpush1.bf16.msra.mxu0 %v9282_v49  ;;  %5175 = vmatpush1.bf16.msra.mxu1 %v9285_v50  ;;  %v9336_v49 = vld [vmem:[#allocation3 + $0x13e0] ss:$16 sps:$4 sm:$0xff]   ;;  %v9339_v50 = vld [vmem:[#allocation3 + $0x13e8] ss:$16 sps:$4 sm:$0xff]  }
 0x25c   : > { %5070 = vmatprep.subr.bf16.mxu0 %v9290_v51  ;;  %5176 = vmatprep.subr.bf16.mxu1 %v9293_v54  ;;  %v9344_v51 = vld [vmem:[#allocation3 + $0xc04] ss:$16 sps:$4 sm:$0xff]   ;;  %v9347_v54 = vld [vmem:[#allocation3 + $0xc0c] ss:$16 sps:$4 sm:$0xff]  }
 0x25f   : > { %5071 = vmatpush1.bf16.msra.mxu0 %v9288_v55  ;;  %5177 = vmatpush1.bf16.msra.mxu1 %v9291_v56  ;;  %v7880_v55 = vcombine.low %v10342_v29, %v10347_v31  ;;  %v10368_v56 = vsel %vm10160_vm2, %v4176_v46, %v4180_v32  ;;  %v9348_v31 = vld [vmem:[#allocation3 + $0xc20] ss:$16 sps:$4 sm:$0xff]   ;;  %v9383_v32 = vld [vmem:[#allocation3 + $0xccc] ss:$16 sps:$4 sm:$0xff]   ;;  %v9399_v46 = vld [vmem:[#allocation3 + $0xd28] ss:$16 sps:$4 sm:$0xff]  }
 0x260   : > { %5072 = vmatprep.subr.bf16.mxu0 %v9296_v57  ;;  %5178 = vmatprep.subr.bf16.mxu1 %v9299_v58  ;;  %v4201_v57 = vsel %vm10160_vm2, %v10362_v47, %v4200_v48  ;;  %v9342_v58 = vld [vmem:[#allocation3 + $0xc00] ss:$16 sps:$4 sm:$0xff]   ;;  %v9404_v48 = vld [vmem:[#allocation3 + $0xd44] ss:$16 sps:$4 sm:$0xff]  }
 0x263   : > { %5073 = vmatpush1.bf16.msra.mxu0 %v9294_v59  ;;  %5179 = vmatpush1.bf16.msra.mxu1 %v9297_v60  ;;  %v9345_v59 = vld [vmem:[#allocation3 + $0xc08] ss:$16 sps:$4 sm:$0xff]   ;;  %v9350_v60 = vld [vmem:[#allocation3 + $0xc24] ss:$16 sps:$4 sm:$0xff]  }
 0x264   : > { %5074 = vmatprep.subr.bf16.mxu0 %v9302_v62  ;;  %5180 = vmatprep.subr.bf16.mxu1 %v9305_v42  ;;  %v9353_v62 = vld [vmem:[#allocation3 + $0xc2c] ss:$16 sps:$4 sm:$0xff]   ;;  %v7885_v42 = vcombine.high %v10368_v56, %v4201_v57 }
 0x267   : > { %5075 = vmatpush1.bf16.msra.mxu0 %v9300_v43  ;;  %5181 = vmatpush1.bf16.msra.mxu1 %v9303_v63  ;;  %v9351_v43 = vld [vmem:[#allocation3 + $0xc28] ss:$16 sps:$4 sm:$0xff]   ;;  %v9356_v63 = vld [vmem:[#allocation3 + $0xc44] ss:$16 sps:$4 sm:$0xff]  }
 0x268   : > { %5076 = vmatprep.subr.bf16.mxu0 %v9308_v0  ;;  %5182 = vmatprep.subr.bf16.mxu1 %v9311_v1  ;;  %v9359_v0 = vld [vmem:[#allocation3 + $0xc4c] ss:$16 sps:$4 sm:$0xff]   ;;  %v7884_v1 = vcombine.low %v10368_v56, %v4201_v57  ;;  %v9408_v57 = vld [vmem:[#allocation3 + $0xd60] ss:$16 sps:$4 sm:$0xff]  }
 0x26b   : > { %5077 = vmatpush1.bf16.msra.mxu0 %v9306_v2  ;;  %5183 = vmatpush1.bf16.msra.mxu1 %v9309_v30  ;;  %v9354_v2 = vld [vmem:[#allocation3 + $0xc40] ss:$16 sps:$4 sm:$0xff]   ;;  %v9357_v30 = vld [vmem:[#allocation3 + $0xc48] ss:$16 sps:$4 sm:$0xff]  }
 0x26c   : > { %5078 = vmatprep.subr.bf16.mxu0 %v9314_v3  ;;  %5184 = vmatprep.subr.bf16.mxu1 %v9317_v4  ;;  %v9362_v3 = vld [vmem:[#allocation3 + $0xc64] ss:$16 sps:$4 sm:$0xff]   ;;  %v9365_v4 = vld [vmem:[#allocation3 + $0xc6c] ss:$16 sps:$4 sm:$0xff]  }
 0x26f   : > { %5079 = vmatpush1.bf16.msra.mxu0 %v9312_v8  ;;  %5185 = vmatpush1.bf16.msra.mxu1 %v9315_v9  ;;  %v10376_v8 = vld [vmem:[%s10133_s10 + $0x60] sm:$0xff]  ;;  %v10379_v9 = vld [vmem:[%s10133_s10 + $0x70] sm:$0xff] }
 0x270   : > { %5080 = vmatprep.subr.bf16.mxu0 %v9320_v12  ;;  %5186 = vmatprep.subr.bf16.mxu1 %v9323_v13  ;;  %v8015_v12 = vcombine.high %v10376_v8, %v10379_v9  ;;  %v9360_v13 = vld [vmem:[#allocation3 + $0xc60] ss:$16 sps:$4 sm:$0xff]  }
 0x273   : > { %5081 = vmatpush1.bf16.msra.mxu0 %v9318_v17  ;;  %5187 = vmatpush1.bf16.msra.mxu1 %v9321_v24  ;;  %v9369_v17 = vld [vmem:[#allocation3 + $0xc88] ss:$16 sps:$4 sm:$0xff]   ;;  %v9374_v24 = vld [vmem:[#allocation3 + $0xca4] ss:$16 sps:$4 sm:$0xff]  }
 0x274   : > { %5082 = vmatprep.subr.bf16.mxu0 %v9326_v25  ;;  %5188 = vmatprep.subr.bf16.mxu1 %v9329_v26  ;;  %v9377_v25 = vld [vmem:[#allocation3 + $0xcac] ss:$16 sps:$4 sm:$0xff]   ;;  %v9372_v26 = vld [vmem:[#allocation3 + $0xca0] ss:$16 sps:$4 sm:$0xff]  }
 0x277   : > { %5083 = vmatpush1.bf16.msra.mxu0 %v9324_v21  ;;  %5189 = vmatpush1.bf16.msra.mxu1 %v9327_v33  ;;  %v9381_v21 = vld [vmem:[#allocation3 + $0xcc8] ss:$16 sps:$4 sm:$0xff]   ;;  %v9386_v33 = vld [vmem:[#allocation3 + $0xce4] ss:$16 sps:$4 sm:$0xff]  }
 0x278   : > { %5084 = vmatprep.subr.bf16.mxu0 %v9332_v35  ;;  %5190 = vmatprep.subr.bf16.mxu1 %v9335_v5  ;;  %v9384_v35 = vld [vmem:[#allocation3 + $0xce0] ss:$16 sps:$4 sm:$0xff]   ;;  %v9387_v5 = vld [vmem:[#allocation3 + $0xce8] ss:$16 sps:$4 sm:$0xff]  }
 0x27b   : > { %5085 = vmatpush1.bf16.msra.mxu0 %v9330_v19  ;;  %5191 = vmatpush1.bf16.msra.mxu1 %v9333_v37  ;;  %v9393_v19 = vld [vmem:[#allocation3 + $0xd08] ss:$16 sps:$4 sm:$0xff]   ;;  %v9398_v37 = vld [vmem:[#allocation3 + $0xd24] ss:$16 sps:$4 sm:$0xff]  }
 0x27c   : > { %5086 = vmatprep.subr.bf16.mxu0 %v9338_v53  ;;  %5192 = vmatprep.subr.bf16.mxu1 %v9341_v40  ;;  %v9401_v53 = vld [vmem:[#allocation3 + $0xd2c] ss:$16 sps:$4 sm:$0xff]   ;;  %v9396_v40 = vld [vmem:[#allocation3 + $0xd20] ss:$16 sps:$4 sm:$0xff]  }
 0x27f   : > { %5087 = vmatpush1.bf16.msra.mxu0 %v9336_v49  ;;  %5193 = vmatpush1.bf16.msra.mxu1 %v9339_v50  ;;  %v9407_v49 = vld [vmem:[#allocation3 + $0xd4c] ss:$16 sps:$4 sm:$0xff]   ;;  %v9402_v50 = vld [vmem:[#allocation3 + $0xd40] ss:$16 sps:$4 sm:$0xff]  }
 0x280   : > { %5895 = vmatprep.subr.bf16.mxu0 %v9344_v51  ;;  %6001 = vmatprep.subr.bf16.mxu1 %v9347_v54  ;;  %v9405_v51 = vld [vmem:[#allocation3 + $0xd48] ss:$16 sps:$4 sm:$0xff]   ;;  %v9410_v54 = vld [vmem:[#allocation3 + $0xd64] ss:$16 sps:$4 sm:$0xff]  }
 0x282   : > { %5089 = vmatmul.mubr.bf16.vlgmr.msra.gmra.mrb[8].mxu0 %v7880_v55  ;;  %5195 = vmatmul.mubr.bf16.vlgmr.msra.gmra.mrb[8].mxu1 %v7880_v55  ;;  %v9413_v55 = vld [vmem:[#allocation3 + $0xd6c] ss:$16 sps:$4 sm:$0xff]  }
 0x283   : > { %5896 = vmatpush1.bf16.msra.mxu0 %v9342_v58  ;;  %6002 = vmatpush1.bf16.msra.mxu1 %v9345_v59  ;;  %v9411_v58 = vld [vmem:[#allocation3 + $0xd68] ss:$16 sps:$4 sm:$0xff]   ;;  %v9416_v59 = vld [vmem:[#allocation3 + $0xd84] ss:$16 sps:$4 sm:$0xff]  }
 0x284   : > { %5897 = vmatprep.subr.bf16.mxu0 %v9350_v60  ;;  %6003 = vmatprep.subr.bf16.mxu1 %v9353_v62  ;;  %v9419_v60 = vld [vmem:[#allocation3 + $0xd8c] ss:$16 sps:$4 sm:$0xff]   ;;  %v9414_v62 = vld [vmem:[#allocation3 + $0xd80] ss:$16 sps:$4 sm:$0xff]  }
 0x285   : > { %5098 = vmatprep.mubr.bf16.mxu0 %v7885_v42  ;;  %5204 = vmatprep.mubr.bf16.mxu1 %v7885_v42  ;;  %v9417_v42 = vld [vmem:[#allocation3 + $0xd88] ss:$16 sps:$4 sm:$0xff]  }
 0x287   : > { %5898 = vmatpush1.bf16.msra.mxu0 %v9348_v31  ;;  %6004 = vmatpush1.bf16.msra.mxu1 %v9351_v43  ;;  %v9422_v31 = vld [vmem:[#allocation3 + $0xda4] ss:$16 sps:$4 sm:$0xff]   ;;  %v9425_v43 = vld [vmem:[#allocation3 + $0xdac] ss:$16 sps:$4 sm:$0xff]  }
 0x288   : > { %5899 = vmatprep.subr.bf16.mxu0 %v9356_v63  ;;  %6005 = vmatprep.subr.bf16.mxu1 %v9359_v0  ;;  %v9420_v63 = vld [vmem:[#allocation3 + $0xda0] ss:$16 sps:$4 sm:$0xff]   ;;  %v9423_v0 = vld [vmem:[#allocation3 + $0xda8] ss:$16 sps:$4 sm:$0xff]  }
 0x28a   : > { %5099 = vmatmul.mubr.bf16.gmra.mrb[12].mxu0 %v7884_v1  ;;  %5205 = vmatmul.mubr.bf16.gmra.mrb[12].mxu1 %v7884_v1  ;;  %v9428_v1 = vld [vmem:[#allocation3 + $0xdc4] ss:$16 sps:$4 sm:$0xff]  }
 0x28b   : > { %5900 = vmatpush1.bf16.msra.mxu0 %v9354_v2  ;;  %6006 = vmatpush1.bf16.msra.mxu1 %v9357_v30  ;;  %v9431_v2 = vld [vmem:[#allocation3 + $0xdcc] ss:$16 sps:$4 sm:$0xff]   ;;  %v9426_v30 = vld [vmem:[#allocation3 + $0xdc0] ss:$16 sps:$4 sm:$0xff]  }
 0x28c   : > { %5901 = vmatprep.subr.bf16.mxu0 %v9362_v3  ;;  %6007 = vmatprep.subr.bf16.mxu1 %v9365_v4  ;;  %v9429_v3 = vld [vmem:[#allocation3 + $0xdc8] ss:$16 sps:$4 sm:$0xff]   ;;  %v7424_v4 = vld [vmem:[%s10133_s10 + $0x60] sm:$0xff] }
 0x28d   : > { %5927 = vmatprep.mubr.bf16.mxu0 %v8015_v12  ;;  %6033 = vmatprep.mubr.bf16.mxu1 %v8015_v12  ;;  %v9434_v12 = vld [vmem:[#allocation3 + $0xde4] ss:$16 sps:$4 sm:$0xff]  }
 0x28f   : > { %5902 = vmatpush1.bf16.msra.mxu0 %v9360_v13  ;;  %6008 = vmatpush1.bf16.msra.mxu1 %v9363_v39  ;;  %v9437_v13 = vld [vmem:[#allocation3 + $0xdec] ss:$16 sps:$4 sm:$0xff]   ;;  %v7426_v39 = vld [vmem:[%s10133_s10 + $0x70] sm:$0xff] }
 0x290   : > { %5903 = vmatprep.subr.bf16.mxu0 %v9368_v14  ;;  %6009 = vmatprep.subr.bf16.mxu1 %v9371_v38  ;;  %v346_v14 = vshrl.u32 %v7424_v4, 16  ;;  %v349_v38 = vshll.u32 %v7424_v4, 16  ;;  %v9466_v4 = vld [vmem:[#allocation3 + $0xe84] ss:$16 sps:$4 sm:$0xff]  }
 0x293   : > { %5904 = vmatpush1.bf16.msra.mxu0 %v9366_v52  ;;  %6010 = vmatpush1.bf16.msra.mxu1 %v9369_v17  ;;  %v9432_v52 = vld [vmem:[#allocation3 + $0xde0] ss:$16 sps:$4 sm:$0xff]   ;;  %v9435_v17 = vld [vmem:[#allocation3 + $0xde8] ss:$16 sps:$4 sm:$0xff]  }
 0x294   : > { %5905 = vmatprep.subr.bf16.mxu0 %v9374_v24  ;;  %6011 = vmatprep.subr.bf16.mxu1 %v9377_v25  ;;  %v9441_v24 = vld [vmem:[#allocation3 + $0xe04] ss:$16 sps:$4 sm:$0xff]   ;;  %v9444_v25 = vld [vmem:[#allocation3 + $0xe0c] ss:$16 sps:$4 sm:$0xff]  }
 0x297   : > { %5906 = vmatpush1.bf16.msra.mxu0 %v9372_v26  ;;  %6012 = vmatpush1.bf16.msra.mxu1 %v9375_v27  ;;  %v355_v26 = vshll.u32 %v7426_v39, 16  ;;  %v373_v27 = vshrl.u32 %v7426_v39, 16 }
 0x298   : > { %5907 = vmatprep.subr.bf16.mxu0 %v9380_v28  ;;  %6013 = vmatprep.subr.bf16.mxu1 %v9383_v32  ;;  %v8014_v28 = vcombine.low %v10376_v8, %v10379_v9  ;;  %v348_v32 = vrot.slane %v346_v14, 4 }
 0x29b   : > { %5908 = vmatpush1.bf16.msra.mxu0 %v9378_v20  ;;  %6014 = vmatpush1.bf16.msra.mxu1 %v9381_v21  ;;  %v351_v20 = vrot.slane %v349_v38, 5  ;;  %v9439_v21 = vld [vmem:[#allocation3 + $0xe00] ss:$16 sps:$4 sm:$0xff]  }
 0x29c   : > { %5909 = vmatprep.subr.bf16.mxu0 %v9386_v33  ;;  %6015 = vmatprep.subr.bf16.mxu1 %v9389_v34  ;;  %v9442_v33 = vld [vmem:[#allocation3 + $0xe08] ss:$16 sps:$4 sm:$0xff]   ;;  %v9448_v34 = vld [vmem:[#allocation3 + $0xe24] ss:$16 sps:$4 sm:$0xff]  }
 0x29d   : > { %v352_v8 = vor.u32 %v351_v20, %v348_v32  ;;  %v9467_v32 = vld [vmem:[#allocation3 + $0xe88] ss:$16 sps:$4 sm:$0xff]   ;;  %v453_v20 = vunpack.c.h.bf16 %v10342_v29 }
 0x29f   : > { %5910 = vmatpush1.bf16.msra.mxu0 %v9384_v35  ;;  %6016 = vmatpush1.bf16.msra.mxu1 %v9387_v5  ;;  %v9451_v35 = vld [vmem:[#allocation3 + $0xe2c] ss:$16 sps:$4 sm:$0xff]   ;;  %v357_v5 = vrot.slane %v355_v26, 5 }
 0x2a0   : > { %5911 = vmatprep.subr.bf16.mxu0 %v9392_v6  ;;  %6017 = vmatprep.subr.bf16.mxu1 %v9395_v18  ;;  %v375_v6 = vrot.slane %v373_v27, 4  ;;  %v3715_v18 = vlaneseq }
 0x2a3   : > { %5912 = vmatpush1.bf16.msra.mxu0 %v9390_v15  ;;  %6018 = vmatpush1.bf16.msra.mxu1 %v9393_v19  ;;  %v7428_v15 = vld [vmem:[%s10133_s10 + $0x80] sm:$0x11]  ;;  %v8019_v19 = vcombine.high %v10304_v22, %v10307_v23 }
 0x2a4   : > { %5913 = vmatprep.subr.bf16.mxu0 %v9398_v37  ;;  %6019 = vmatprep.subr.bf16.mxu1 %v9401_v53  ;;  %v9446_v37 = vld [vmem:[#allocation3 + $0xe20] ss:$16 sps:$4 sm:$0xff]   ;;  %v9449_v53 = vld [vmem:[#allocation3 + $0xe28] ss:$16 sps:$4 sm:$0xff]  }
 0x2a7   : > { %5914 = vmatpush1.bf16.msra.mxu0 %v9396_v40  ;;  %6020 = vmatpush1.bf16.msra.mxu1 %v9399_v46  ;;  %v7429_v40 = vld [vmem:[%s10133_s10 + $0x88] sm:$0x11]  ;;  %v9454_v46 = vld [vmem:[#allocation3 + $0xe44] ss:$16 sps:$4 sm:$0xff]  }
 0x2a8   : > { %5915 = vmatprep.subr.bf16.mxu0 %v9404_v48  ;;  %6021 = vmatprep.subr.bf16.mxu1 %v9407_v49  ;;  %v9457_v48 = vld [vmem:[#allocation3 + $0xe4c] ss:$16 sps:$4 sm:$0xff]   ;;  %v376_v49 = vor.u32 %v375_v6, %v357_v5 }
 0x2ab   : > { %5916 = vmatpush1.bf16.msra.mxu0 %v9402_v50  ;;  %6022 = vmatpush1.bf16.msra.mxu1 %v9405_v51  ;;  %v379_v50 = vshll.u32 %v7428_v15, 16  ;;  %v10391_v51 = vshrl.u32 %v3715_v18, 7 }
 0x2ac   : > { %5917 = vmatprep.subr.bf16.mxu0 %v9410_v54  ;;  %6023 = vmatprep.subr.bf16.mxu1 %v9413_v55  ;;  %v9452_v54 = vld [vmem:[#allocation3 + $0xe40] ss:$16 sps:$4 sm:$0xff]   ;;  %v353_v55 = vrot.slane %v352_v8, 4  ;;  %v460_v8 = vunpack.c.l.bf16 %v10368_v56 }
 0x2ad   : > { %v3725_v39 = vsub.s32 2, %v10391_v51 }
 0x2af   : > { %5918 = vmatpush1.bf16.msra.mxu0 %v9408_v57  ;;  %6024 = vmatpush1.bf16.msra.mxu1 %v9411_v58  ;;  %v389_v57 = vshll.u32 %v7429_v40, 16  ;;  %v8018_v58 = vcombine.low %v10304_v22, %v10307_v23  ;;  %v358_v22 = vsel %vm10160_vm2, %v353_v55, %v357_v5  ;;  %v3713_v23 = vld [vmem:[#allocation7] ss:$2 sm:$0xf] }
 0x2b0   : > { %5919 = vmatprep.subr.bf16.mxu0 %v9416_v59  ;;  %6025 = vmatprep.subr.bf16.mxu1 %v9419_v60  ;;  %v9455_v59 = vld [vmem:[#allocation3 + $0xe48] ss:$16 sps:$4 sm:$0xff]   ;;  %v9460_v60 = vld [vmem:[#allocation3 + $0xe64] ss:$16 sps:$4 sm:$0xff]   ;;  %v450_v38 = vunpack.c.l.bf16 %v358_v22  ;;  %v451_v26 = vunpack.c.h.bf16 %v358_v22 }
 0x2b1   : > { %v9472_v5 = vld [vmem:[#allocation3 + $0xea4] ss:$16 sps:$4 sm:$0xff]  }
 0x2b3   : > { %5920 = vmatpush1.bf16.msra.mxu0 %v9414_v62  ;;  %6026 = vmatpush1.bf16.msra.mxu1 %v9417_v42  ;;  %v9463_v62 = vld [vmem:[#allocation3 + $0xe6c] ss:$16 sps:$4 sm:$0xff]   ;;  %v377_v42 = vrot.slane %v376_v49, 4  ;;  %v9470_v49 = vld [vmem:[#allocation3 + $0xea0] ss:$16 sps:$4 sm:$0xff]  }
 0x2b4   : > { %5921 = vmatprep.subr.bf16.mxu0 %v9422_v31  ;;  %6027 = vmatprep.subr.bf16.mxu1 %v9425_v43  ;;  %v381_v31 = vrot.slane %v379_v50, 5  ;;  %v7434_v43 = vld [vmem:[%s10133_s10 + $0xb0] sm:$0x11]  ;;  %v9473_v50 = vld [vmem:[#allocation3 + $0xea8] ss:$16 sps:$4 sm:$0xff]  }
 0x2b7   : > { %5922 = vmatpush1.bf16.msra.mxu0 %v9420_v63  ;;  %6028 = vmatpush1.bf16.msra.mxu1 %v9423_v0  ;;  %v3717_v63 = vsub.s32 0, %v10391_v51  ;;  %v7435_v0 = vld [vmem:[%s10133_s10 + $0xb8] sm:$0x11] }
 0x2b8   : > { %5923 = vmatprep.subr.bf16.mxu0 %v9428_v1  ;;  %6029 = vmatprep.subr.bf16.mxu1 %v9431_v2  ;;  %v8017_v1 = vcombine.high %v10315_v36, %v10318_v44  ;;  %v9458_v2 = vld [vmem:[#allocation3 + $0xe60] ss:$16 sps:$4 sm:$0xff]   ;;  %v3721_v36 = vsub.s32 1, %v10391_v51  ;;  %v382_v44 = vsel %vm10160_vm2, %v377_v42, %v381_v31  ;;  %v437_v14 = vshll.u32 %v7435_v0, 16 }
 0x2b9   : > { %v455_v6 = vunpack.c.h.bf16 %v382_v44 }
 0x2ba   : > { %v439_v18 = vrot.slane %v437_v14, 5 }
 0x2bb   : > { %5924 = vmatpush1.bf16.msra.mxu0 %v9426_v30  ;;  %6030 = vmatpush1.bf16.msra.mxu1 %v9429_v3  ;;  %v391_v30 = vrot.slane %v389_v57, 5  ;;  %v9461_v3 = vld [vmem:[#allocation3 + $0xe68] ss:$16 sps:$4 sm:$0xff]  }
 0x2bc   : > { %5925 = vmatprep.subr.bf16.mxu0 %v9434_v12  ;;  %6031 = vmatprep.subr.bf16.mxu1 %v9437_v13  ;;  %v427_v12 = vshll.u32 %v7434_v43, 16  ;;  %v9469_v13 = vld [vmem:[#allocation3 + $0xe8c] ss:$16 sps:$4 sm:$0xff]   ;;  %v10453_v42 = vsel %vm10160_vm2, %v10362_v47, %v439_v18 }
 0x2bd   : > { %v392_v27 = vsel %vm10160_vm2, %v10337_v16, %v391_v30  ;;  %v9475_v16 = vld [vmem:[#allocation3 + $0xeac] ss:$16 sps:$4 sm:$0xff]   ;;  %v9476_v30 = vld [vmem:[#allocation3 + $0xec0] ss:$16 sps:$4 sm:$0xff]  }
 0x2be   : > { %v456_v15 = vunpack.c.l.bf16 %v392_v27 }
 0x2bf   : > { %5926 = vmatpush1.bf16.msra.mxu0 %v9432_v52  ;;  %6032 = vmatpush1.bf16.msra.mxu1 %v9435_v17  ;;  %v10410_v52 = vrot.slane %v3713_v23, %v3717_v63  ;;  %v3729_v17 = vsub.s32 3, %v10391_v51 }
 0x2c0   : > { %5948 = vmatprep.subr.bf16.mxu0 %v9441_v24  ;;  %6054 = vmatprep.subr.bf16.mxu1 %v9444_v25  ;;  %v10414_v24 = vstv %s10393_s28  ;;  %v452_v25 = vunpack.c.l.bf16 %v10342_v29  ;;  %v458_v29 = vunpack.c.l.bf16 %v10331_v7 }
 0x2c1   : > { %v468_v40 = vmul.f32 %v10414_v24, %v451_v26  ;;  %v10446_v57 = vmul.f32 %v10414_v24, %v455_v6  ;;  %v464_v26 = vunpack.c.l.bf16 %v10453_v42 }
 0x2c2   : > { %5928 = vmatmul.mubr.bf16.vlgmr.msra.gmra.mrb[8].mxu0 %v8014_v28  ;;  %6034 = vmatmul.mubr.bf16.vlgmr.msra.gmra.mrb[8].mxu1 %v8014_v28  ;;  %v9464_v28 = vld [vmem:[#allocation3 + $0xe80] ss:$16 sps:$4 sm:$0xff]  }
 0x2c3   : > { %5949 = vmatpush1.bf16.msra.mxu0 %v9439_v21  ;;  %6055 = vmatpush1.bf16.msra.mxu1 %v9442_v33  ;;  %v454_v21 = vunpack.c.l.bf16 %v382_v44  ;;  %v429_v33 = vrot.slane %v427_v12, 5 }
 0x2c4   : > { %5950 = vmatprep.subr.bf16.mxu0 %v9448_v34  ;;  %6056 = vmatprep.subr.bf16.mxu1 %v9451_v35  ;;  %v10423_v34 = vrot.slane %v3713_v23, %v3725_v39  ;;  %v10427_v35 = vrot.slane %v3713_v23, %v3721_v36 }
 0x2c5   : > { %5937 = vmatprep.mubr.bf16.mxu0 %v8019_v19  ;;  %6043 = vmatprep.mubr.bf16.mxu1 %v8019_v19  ;;  %v457_v19 = vunpack.c.h.bf16 %v392_v27  ;;  %v10443_v55 = vsel %vm10160_vm2, %v10324_v61, %v429_v33  ;;  %v473_v61 = vmul.f32 %v10414_v24, %v456_v15  ;;  %v465_v27 = vunpack.c.h.bf16 %v10453_v42 }
 0x2c7   : > { %5951 = vmatpush1.bf16.msra.mxu0 %v9446_v37  ;;  %6057 = vmatpush1.bf16.msra.mxu1 %v9449_v53  ;;  %v467_v37 = vmul.f32 %v10414_v24, %v450_v38  ;;  %v469_v53 = vmul.f32 %v10414_v24, %v452_v25  ;;  %v474_v0 = vmul.f32 %v10414_v24, %v457_v19  ;;  %v9479_v38 = vld [vmem:[#allocation3 + $0xec8] ss:$16 sps:$4 sm:$0xff]   ;;  %v9484_v25 = vld [vmem:[#allocation3 + $0xee4] ss:$16 sps:$4 sm:$0xff]  }
 0x2c8   : > { %5952 = vmatprep.subr.bf16.mxu0 %v9454_v46  ;;  %6058 = vmatprep.subr.bf16.mxu1 %v9457_v48  ;;  %v10436_v46 = vrot.slane %v3713_v23, %v3729_v17  ;;  %v470_v48 = vmul.f32 %v10414_v24, %v453_v20 }
 0x2ca   : > { %5938 = vmatmul.mubr.bf16.gmra.mrb[12].mxu0 %v8018_v58  ;;  %6044 = vmatmul.mubr.bf16.gmra.mrb[12].mxu1 %v8018_v58  ;;  %v9478_v58 = vld [vmem:[#allocation3 + $0xec4] ss:$16 sps:$4 sm:$0xff]  }
 0x2cb   : > { %5953 = vmatpush1.bf16.msra.mxu0 %v9452_v54  ;;  %6059 = vmatpush1.bf16.msra.mxu1 %v9455_v59  ;;  %v471_v54 = vmul.f32 %v10414_v24, %v454_v21  ;;  %v9481_v59 = vld [vmem:[#allocation3 + $0xecc] ss:$16 sps:$4 sm:$0xff]  }
 0x2cc   : > { %5954 = vmatprep.subr.bf16.mxu0 %v9460_v60  ;;  %6060 = vmatprep.subr.bf16.mxu1 %v9463_v62  ;;  %v459_v60 = vunpack.c.h.bf16 %v10331_v7  ;;  %v461_v62 = vunpack.c.h.bf16 %v10368_v56 }
 0x2cd   : > { %5980 = vmatprep.mubr.bf16.mxu0 %v8017_v1  ;;  %6086 = vmatprep.mubr.bf16.mxu1 %v8017_v1  ;;  %v10458_v1 = vmul.f32 %v10414_v24, %v458_v29 }
 0x2cf   : > { %5955 = vmatpush1.bf16.msra.mxu0 %v9458_v2  ;;  %6061 = vmatpush1.bf16.msra.mxu1 %v9461_v3  ;;  %v10461_v2 = vmul.f32 %v10414_v24, %v460_v8  ;;  %v462_v3 = vunpack.c.l.bf16 %v10443_v55 }
 0x2d0   : > { %5956 = vmatprep.subr.bf16.mxu0 %v9466_v4  ;;  %6062 = vmatprep.subr.bf16.mxu1 %v9469_v13  ;;  %v463_v4 = vunpack.c.h.bf16 %v10443_v55 }
 0x2d3   : > { %5957 = vmatpush1.bf16.msra.mxu0 %v9464_v28  ;;  %6063 = vmatpush1.bf16.msra.mxu1 %v9467_v32 }
 0x2d4   : > { %5958 = vmatprep.subr.bf16.mxu0 %v9472_v5  ;;  %6064 = vmatprep.subr.bf16.mxu1 %v9475_v16  ;;  %v9487_v16 = vld [vmem:[#allocation3 + $0xeec] ss:$16 sps:$4 sm:$0xff]  }
 0x2d5   : > { %v3572_v31 = vpop.f32.mrb[0].mxu0  ;;  %v3678_v43 = vpop.f32.mrb[0].mxu1 }
 0x2d6   : > { %v3735_v7 = vadd.f32 %v10410_v52, %v3572_v31  ;;  %v3737_v22 = vadd.f32 %v10423_v34, %v3678_v43  ;;  %v3574_v23 = vpop.f32.mrb[1].mxu0  ;;  %v3680_v47 = vpop.f32.mrb[1].mxu1 }
 0x2d7   : > { %v3736_v12 = vadd.f32 %v10427_v35, %v3574_v23  ;;  %v3738_v13 = vadd.f32 %v10436_v46, %v3680_v47  ;;  %v3576_v44 = vpop.f32.mrb[2].mxu0  ;;  %v3682_v14 = vpop.f32.mrb[2].mxu1  ;;  %5959 = vmatpush1.bf16.msra.mxu0 %v9470_v49  ;;  %6065 = vmatpush1.bf16.msra.mxu1 %v9473_v50 }
 0x2d8   : > { %v3751_v28 = vmax.f32 %v3735_v7, 0.0  ;;  %v3753_v32 = vmax.f32 %v3737_v22, 0.0  ;;  %v3739_v20 = vadd.f32 %v10410_v52, %v3576_v44  ;;  %v3741_v21 = vadd.f32 %v10423_v34, %v3682_v14  ;;  %v3578_v33 = vpop.f32.mrb[3].mxu0  ;;  %v3684_v5 = vpop.f32.mrb[3].mxu1  ;;  %5960 = vmatprep.subr.bf16.mxu0 %v9478_v58  ;;  %6066 = vmatprep.subr.bf16.mxu1 %v9481_v59  ;;  %v9482_v58 = vld [vmem:[#allocation3 + $0xee0] ss:$16 sps:$4 sm:$0xff]  }
 0x2d9   : > { %v3752_v6 = vmax.f32 %v3736_v12, 0.0  ;;  %v3754_v18 = vmax.f32 %v3738_v13, 0.0  ;;  %v3740_v15 = vadd.f32 %v10427_v35, %v3578_v33  ;;  %v3742_v19 = vadd.f32 %v10436_v46, %v3684_v5  ;;  %v9485_v59 = vld [vmem:[#allocation3 + $0xee8] ss:$16 sps:$4 sm:$0xff]   ;;  %v9493_v7 = vld [vmem:[#allocation3 + $0xf0c] ss:$16 sps:$4 sm:$0xff]  }
 0x2da   : > { %v3767_v29 = vadd.f32 %v3751_v28, %v467_v37  ;;  %v3769_v8 = vadd.f32 %v3753_v32, %v469_v53  ;;  %v3755_v49 = vmax.f32 %v3739_v20, 0.0  ;;  %v3757_v50 = vmax.f32 %v3741_v21, 0.0  ;;  %v9488_v14 = vld [vmem:[#allocation3 + $0xf00] ss:$16 sps:$4 sm:$0xff]   ;;  %v9491_v28 = vld [vmem:[#allocation3 + $0xf08] ss:$16 sps:$4 sm:$0xff]  }
 0x2db   : > { %v3768_v55 = vadd.f32 %v3752_v6, %v468_v40  ;;  %v3770_v42 = vadd.f32 %v3754_v18, %v470_v48  ;;  %v3756_v31 = vmax.f32 %v3740_v15, 0.0  ;;  %v3758_v43 = vmax.f32 %v3742_v19, 0.0  ;;  %5961 = vmatpush1.bf16.msra.mxu0 %v9476_v30  ;;  %6067 = vmatpush1.bf16.msra.mxu1 %v9479_v38  ;;  %v9490_v48 = vld [vmem:[#allocation3 + $0xf04] ss:$16 sps:$4 sm:$0xff]  }
 0x2dc   : > { %3783 = vst [vmem:[%s10478_s12] sm:$0xff] %v3767_v29  ;;  %3785 = vst [vmem:[%s10478_s12 + $0x10] sm:$0xff] %v3769_v8  ;;  %v3771_v37 = vadd.f32 %v3755_v49, %v471_v54  ;;  %v3773_v53 = vadd.f32 %v3757_v50, %v473_v61  ;;  %v476_v40 = vmul.f32 %v10414_v24, %v459_v60  ;;  %5962 = vmatprep.subr.bf16.mxu0 %v9484_v25  ;;  %v9496_v32 = vld [vmem:[#allocation3 + $0xf24] ss:$16 sps:$4 sm:$0xff]  }
 0x2dd   : > { %6068 = vmatprep.subr.bf16.mxu1 %v9487_v16  ;;  %3784 = vst [vmem:[%s10478_s12 + $0x8] sm:$0xff] %v3768_v55  ;;  %3786 = vst [vmem:[%s10478_s12 + $0x18] sm:$0xff] %v3770_v42  ;;  %v3772_v22 = vadd.f32 %v3756_v31, %v10446_v57  ;;  %v3774_v23 = vadd.f32 %v3758_v43, %v474_v0  ;;  %v3582_v47 = vpop.f32.mrb[4].mxu0  ;;  %v3688_v30 = vpop.f32.mrb[4].mxu1  ;;  %v478_v54 = vmul.f32 %v10414_v24, %v461_v62  ;;  %v9499_v16 = vld [vmem:[#allocation3 + $0xf2c] ss:$16 sps:$4 sm:$0xff]  }
 0x2de   : > { %v479_v61 = vmul.f32 %v10414_v24, %v462_v3  ;;  %3787 = vst [vmem:[%s10478_s12 + $0x20] sm:$0xff] %v3771_v37  ;;  %3789 = vst [vmem:[%s10478_s12 + $0x30] sm:$0xff] %v3773_v53  ;;  %v3743_v60 = vadd.f32 %v10410_v52, %v3582_v47  ;;  %v3745_v12 = vadd.f32 %v10423_v34, %v3688_v30  ;;  %v3584_v13 = vpop.f32.mrb[5].mxu0  ;;  %v3690_v44 = vpop.f32.mrb[5].mxu1  ;;  %v9494_v55 = vld [vmem:[#allocation3 + $0xf20] ss:$16 sps:$4 sm:$0xff]  }
 0x2df   : > { %v481_v57 = vmul.f32 %v10414_v24, %v464_v26  ;;  %v480_v0 = vmul.f32 %v10414_v24, %v463_v4  ;;  %3788 = vst [vmem:[%s10478_s12 + $0x28] sm:$0xff] %v3772_v22  ;;  %3790 = vst [vmem:[%s10478_s12 + $0x38] sm:$0xff] %v3774_v23  ;;  %v3744_v56 = vadd.f32 %v10427_v35, %v3584_v13  ;;  %v3586_v3 = vpop.f32.mrb[6].mxu0  ;;  %v3692_v38 = vpop.f32.mrb[6].mxu1  ;;  %5963 = vmatpush1.bf16.msra.mxu0 %v9482_v58  ;;  %v9505_v42 = vld [vmem:[#allocation3 + $0xf4c] ss:$16 sps:$4 sm:$0xff]  }
 0x2e0   : > { %v3746_v62 = vadd.f32 %v10436_v46, %v3690_v44  ;;  %6069 = vmatpush1.bf16.msra.mxu1 %v9485_v59  ;;  %v482_v25 = vmul.f32 %v10414_v24, %v465_v27  ;;  %v3759_v20 = vmax.f32 %v3743_v60, 0.0  ;;  %v3761_v21 = vmax.f32 %v3745_v12, 0.0  ;;  %v3588_v33 = vpop.f32.mrb[7].mxu0  ;;  %v3694_v5 = vpop.f32.mrb[7].mxu1  ;;  %5964 = vmatprep.subr.bf16.mxu0 %v9490_v48  ;;  %v9500_v58 = vld [vmem:[#allocation3 + $0xf40] ss:$16 sps:$4 sm:$0xff]  }
 0x2e1   : > { %v3747_v26 = vadd.f32 %v10410_v52, %v3586_v3  ;;  %v3749_v4 = vadd.f32 %v10423_v34, %v3692_v38  ;;  %6070 = vmatprep.subr.bf16.mxu1 %v9493_v7  ;;  %v3760_v6 = vmax.f32 %v3744_v56, 0.0  ;;  %v3748_v15 = vadd.f32 %v10427_v35, %v3588_v33  ;;  %v9497_v35 = vld [vmem:[#allocation3 + $0xf28] ss:$16 sps:$4 sm:$0xff]   ;;  %v9508_v37 = vld [vmem:[#allocation3 + $0xf64] ss:$16 sps:$4 sm:$0xff]  }
 0x2e2   : > { %v3762_v18 = vmax.f32 %v3746_v62, 0.0  ;;  %v3750_v24 = vadd.f32 %v10436_v46, %v3694_v5  ;;  %v3775_v27 = vadd.f32 %v3759_v20, %v10458_v1  ;;  %v3777_v19 = vadd.f32 %v3761_v21, %v10461_v2  ;;  %v9502_v2 = vld [vmem:[#allocation3 + $0xf44] ss:$16 sps:$4 sm:$0xff]   ;;  %v9503_v59 = vld [vmem:[#allocation3 + $0xf48] ss:$16 sps:$4 sm:$0xff]  }
 0x2e3   : > { %v3763_v52 = vmax.f32 %v3747_v26, 0.0  ;;  %v3765_v29 = vmax.f32 %v3749_v4, 0.0  ;;  %v3776_v34 = vadd.f32 %v3760_v6, %v476_v40  ;;  %v3764_v49 = vmax.f32 %v3748_v15, 0.0  ;;  %5965 = vmatpush1.bf16.msra.mxu0 %v9488_v14  ;;  %v9511_v53 = vld [vmem:[#allocation3 + $0xf6c] ss:$16 sps:$4 sm:$0xff]  }
 0x2e4   : > { %v3778_v8 = vadd.f32 %v3762_v18, %v478_v54  ;;  %v3766_v50 = vmax.f32 %v3750_v24, 0.0  ;;  %6071 = vmatpush1.bf16.msra.mxu1 %v9491_v28  ;;  %3791 = vst [vmem:[%s10478_s12 + $0x40] sm:$0xff] %v3775_v27  ;;  %3793 = vst [vmem:[%s10478_s12 + $0x50] sm:$0xff] %v3777_v19  ;;  %5966 = vmatprep.subr.bf16.mxu0 %v9496_v32  ;;  %v9506_v40 = vld [vmem:[#allocation3 + $0xf60] ss:$16 sps:$4 sm:$0xff]   ;;  %v10517_v28 = vld [vmem:[%s10133_s10 + $0x78] sm:$0xff] }
 0x2e5   : > { %v3779_v46 = vadd.f32 %v3763_v52, %v479_v61  ;;  %v3781_v1 = vadd.f32 %v3765_v29, %v481_v57  ;;  %6072 = vmatprep.subr.bf16.mxu1 %v9499_v16  ;;  %3792 = vst [vmem:[%s10478_s12 + $0x48] sm:$0xff] %v3776_v34  ;;  %v3780_v31 = vadd.f32 %v3764_v49, %v480_v0  ;;  %v9509_v48 = vld [vmem:[#allocation3 + $0xf68] ss:$16 sps:$4 sm:$0xff]   ;;  %v9514_v7 = vld [vmem:[#allocation3 + $0xf84] ss:$16 sps:$4 sm:$0xff]   ;;  %v6121_v20 = vrot.slane %v10379_v9, 5 }
 0x2e6   : > { %3794 = vst [vmem:[%s10478_s12 + $0x58] sm:$0xff] %v3778_v8  ;;  %v3782_v43 = vadd.f32 %v3766_v50, %v482_v25  ;;  %v9517_v22 = vld [vmem:[#allocation3 + $0xf8c] ss:$16 sps:$4 sm:$0xff]   ;;  %v9512_v23 = vld [vmem:[#allocation3 + $0xf80] ss:$16 sps:$4 sm:$0xff]   ;;  %v8021_v16 = vcombine.high %v10352_v10, %v10355_v11 }
 0x2e7   : > { %3795 = vst [vmem:[%s10478_s12 + $0x60] sm:$0xff] %v3779_v46  ;;  %3797 = vst [vmem:[%s10478_s12 + $0x70] sm:$0xff] %v3781_v1  ;;  %5967 = vmatpush1.bf16.msra.mxu0 %v9494_v55  ;;  %v9515_v47 = vld [vmem:[#allocation3 + $0xf88] ss:$16 sps:$4 sm:$0xff]   ;;  %v9520_v30 = vld [vmem:[#allocation3 + $0xfa4] ss:$16 sps:$4 sm:$0xff]  }
 0x2e8   : > { %3796 = vst [vmem:[%s10478_s12 + $0x68] sm:$0xff] %v3780_v31  ;;  %3798 = vst [vmem:[%s10478_s12 + $0x78] sm:$0xff] %v3782_v43  ;;  %6073 = vmatpush1.bf16.msra.mxu1 %v9497_v35  ;;  %5968 = vmatprep.subr.bf16.mxu0 %v9502_v2  ;;  %v9523_v54 = vld [vmem:[#allocation3 + $0xfac] ss:$16 sps:$4 sm:$0xff]   ;;  %v9518_v61 = vld [vmem:[#allocation3 + $0xfa0] ss:$16 sps:$4 sm:$0xff]  }
 0x2e9   : > { %6074 = vmatprep.subr.bf16.mxu1 %v9505_v42  ;;  %v9521_v60 = vld [vmem:[#allocation3 + $0xfa8] ss:$16 sps:$4 sm:$0xff]   ;;  %v9527_v12 = vld [vmem:[#allocation3 + $0xfc4] ss:$16 sps:$4 sm:$0xff]   ;;  %v9530_v13 = vld [vmem:[#allocation3 + $0xfcc] ss:$16 sps:$4 sm:$0xff]  }
 0x2ea   : > { %v9525_v44 = vld [vmem:[#allocation3 + $0xfc0] ss:$16 sps:$4 sm:$0xff]   ;;  %v9528_v57 = vld [vmem:[#allocation3 + $0xfc8] ss:$16 sps:$4 sm:$0xff]   ;;  %v9534_v0 = vld [vmem:[#allocation3 + $0xfe4] ss:$16 sps:$4 sm:$0xff]  }
 0x2eb   : > { %5969 = vmatpush1.bf16.msra.mxu0 %v9500_v58  ;;  %v9537_v14 = vld [vmem:[#allocation3 + $0xfec] ss:$16 sps:$4 sm:$0xff]   ;;  %v9532_v56 = vld [vmem:[#allocation3 + $0xfe0] ss:$16 sps:$4 sm:$0xff]   ;;  %v9535_v62 = vld [vmem:[#allocation3 + $0xfe8] ss:$16 sps:$4 sm:$0xff]  }
 0x2ec   : > { %6075 = vmatpush1.bf16.msra.mxu1 %v9503_v59  ;;  %5970 = vmatprep.subr.bf16.mxu0 %v9508_v37  ;;  %v9541_v3 = vld [vmem:[#allocation3 + $0x1404] ss:$16 sps:$4 sm:$0xff]   ;;  %v9544_v38 = vld [vmem:[#allocation3 + $0x140c] ss:$16 sps:$4 sm:$0xff]   ;;  %v9539_v21 = vld [vmem:[#allocation3 + $0x1400] ss:$16 sps:$4 sm:$0xff]  }
 0x2ed   : > { %6076 = vmatprep.subr.bf16.mxu1 %v9511_v53  ;;  %v9747_v25 = vld [vmem:[%s10133_s10 + $0x68] sm:$0xff]  ;;  %v8150_v4 = vld [vmem:[%s10133_s10 + $0x60] sm:$0xee]  ;;  %v6127_v18 = vrot.slane %v6121_v20, 4  ;;  %v9749_v15 = vld [vmem:[%s10133_s10 + $0x80] sm:$0x11] }
 0x2ee   : > { %v8016_v32 = vcombine.low %v9747_v25, %v10517_v28  ;;  %v9542_v26 = vld [vmem:[#allocation3 + $0x1408] ss:$16 sps:$4 sm:$0xff]   ;;  %v9548_v33 = vld [vmem:[#allocation3 + $0x1424] ss:$16 sps:$4 sm:$0xff]   ;;  %v9551_v5 = vld [vmem:[#allocation3 + $0x142c] ss:$16 sps:$4 sm:$0xff]  }
 0x2ef   : > { %5971 = vmatpush1.bf16.msra.mxu0 %v9506_v40  ;;  %v8154_v6 = vrot.slane %v8150_v4, 9  ;;  %v6128_v9 = vrot.slane %v9749_v15, 5  ;;  %v9546_v24 = vld [vmem:[#allocation3 + $0x1420] ss:$16 sps:$4 sm:$0xff]   ;;  %v9549_v27 = vld [vmem:[#allocation3 + $0x1428] ss:$16 sps:$4 sm:$0xff]  }
 0x2f0   : > { %6077 = vmatpush1.bf16.msra.mxu1 %v9509_v48  ;;  %5972 = vmatprep.subr.bf16.mxu0 %v9514_v7  ;;  %v9554_v19 = vld [vmem:[#allocation3 + $0x1444] ss:$16 sps:$4 sm:$0xff]   ;;  %v9557_v52 = vld [vmem:[#allocation3 + $0x144c] ss:$16 sps:$4 sm:$0xff]   ;;  %v9552_v49 = vld [vmem:[#allocation3 + $0x1440] ss:$16 sps:$4 sm:$0xff]  }
 0x2f1   : > { %6078 = vmatprep.subr.bf16.mxu1 %v9517_v22  ;;  %v9750_v29 = vld [vmem:[%s10133_s10 + $0x98] sm:$0xff]  ;;  %v10527_v10 = vld [vmem:[%s10133_s10 + $0xa8] sm:$0xff]  ;;  %v10532_v34 = vsel %vm10240_vm5, %v8154_v6, %v6121_v20  ;;  %v10536_v8 = vsel %vm10240_vm5, %v6127_v18, %v6128_v9  ;;  %v9560_v55 = vld [vmem:[#allocation3 + $0x1464] ss:$16 sps:$4 sm:$0xff]  }
 0x2f2   : > { %v8020_v11 = vcombine.low %v9750_v29, %v10527_v10  ;;  %v9555_v50 = vld [vmem:[#allocation3 + $0x1448] ss:$16 sps:$4 sm:$0xff]   ;;  %v9563_v35 = vld [vmem:[#allocation3 + $0x146c] ss:$16 sps:$4 sm:$0xff]   ;;  %v8159_v46 = vcombine.high %v10532_v34, %v10536_v8  ;;  %v9558_v1 = vld [vmem:[#allocation3 + $0x1460] ss:$16 sps:$4 sm:$0xff]  }
 0x2f3   : > { %5973 = vmatpush1.bf16.msra.mxu0 %v9512_v23  ;;  %v9561_v2 = vld [vmem:[#allocation3 + $0x1468] ss:$16 sps:$4 sm:$0xff]   ;;  %v9566_v42 = vld [vmem:[#allocation3 + $0x1484] ss:$16 sps:$4 sm:$0xff]   ;;  %v9569_v31 = vld [vmem:[#allocation3 + $0x148c] ss:$16 sps:$4 sm:$0xff]  }
 0x2f4   : > { %6079 = vmatpush1.bf16.msra.mxu1 %v9515_v47  ;;  %5974 = vmatprep.subr.bf16.mxu0 %v9520_v30  ;;  %v9564_v43 = vld [vmem:[#allocation3 + $0x1480] ss:$16 sps:$4 sm:$0xff]   ;;  %v9567_v58 = vld [vmem:[#allocation3 + $0x1488] ss:$16 sps:$4 sm:$0xff]   ;;  %v9572_v59 = vld [vmem:[#allocation3 + $0x14a4] ss:$16 sps:$4 sm:$0xff]  }
 0x2f5   : > { %6080 = vmatprep.subr.bf16.mxu1 %v9523_v54  ;;  %v9575_v37 = vld [vmem:[#allocation3 + $0x14ac] ss:$16 sps:$4 sm:$0xff]   ;;  %v9570_v53 = vld [vmem:[#allocation3 + $0x14a0] ss:$16 sps:$4 sm:$0xff]   ;;  %v9573_v40 = vld [vmem:[#allocation3 + $0x14a8] ss:$16 sps:$4 sm:$0xff]  }
 0x2f6   : > { %v9578_v48 = vld [vmem:[#allocation3 + $0x14c4] ss:$16 sps:$4 sm:$0xff]   ;;  %v9581_v7 = vld [vmem:[#allocation3 + $0x14cc] ss:$16 sps:$4 sm:$0xff]   ;;  %v9576_v22 = vld [vmem:[#allocation3 + $0x14c0] ss:$16 sps:$4 sm:$0xff]  }
 0x2f7   : > { %5975 = vmatpush1.bf16.msra.mxu0 %v9518_v61  ;;  %v9579_v23 = vld [vmem:[#allocation3 + $0x14c8] ss:$16 sps:$4 sm:$0xff]   ;;  %v9584_v47 = vld [vmem:[#allocation3 + $0x14e4] ss:$16 sps:$4 sm:$0xff]   ;;  %v9587_v30 = vld [vmem:[#allocation3 + $0x14ec] ss:$16 sps:$4 sm:$0xff]  }
 0x2f8   : > { %6081 = vmatpush1.bf16.msra.mxu1 %v9521_v60  ;;  %5976 = vmatprep.subr.bf16.mxu0 %v9527_v12  ;;  %v9582_v54 = vld [vmem:[#allocation3 + $0x14e0] ss:$16 sps:$4 sm:$0xff]   ;;  %v9585_v61 = vld [vmem:[#allocation3 + $0x14e8] ss:$16 sps:$4 sm:$0xff]   ;;  %v9590_v60 = vld [vmem:[#allocation3 + $0x1504] ss:$16 sps:$4 sm:$0xff]  }
 0x2f9   : > { %6082 = vmatprep.subr.bf16.mxu1 %v9530_v13  ;;  %v9593_v12 = vld [vmem:[#allocation3 + $0x150c] ss:$16 sps:$4 sm:$0xff]   ;;  %v9588_v13 = vld [vmem:[#allocation3 + $0x1500] ss:$16 sps:$4 sm:$0xff]   ;;  %v9603_v25 = vld [vmem:[#allocation3 + $0x1548] ss:$16 sps:$4 sm:$0xff]  }
 0x2fa   : > { %v9611_v20 = vld [vmem:[#allocation3 + $0x156c] ss:$16 sps:$4 sm:$0xff]   ;;  %v9614_v4 = vld [vmem:[#allocation3 + $0x1584] ss:$16 sps:$4 sm:$0xff]   ;;  %v9618_v15 = vld [vmem:[#allocation3 + $0x15a0] ss:$16 sps:$4 sm:$0xff]  }
 0x2fb   : > { %5977 = vmatpush1.bf16.msra.mxu0 %v9525_v44  ;;  %v9591_v44 = vld [vmem:[#allocation3 + $0x1508] ss:$16 sps:$4 sm:$0xff]   ;;  %v9620_v6 = vld [vmem:[#allocation3 + $0x15a4] ss:$16 sps:$4 sm:$0xff]   ;;  %v9623_v18 = vld [vmem:[#allocation3 + $0x15ac] ss:$16 sps:$4 sm:$0xff]  }
 0x2fc   : > { %6083 = vmatpush1.bf16.msra.mxu1 %v9528_v57  ;;  %5978 = vmatprep.subr.bf16.mxu0 %v9534_v0  ;;  %v9596_v57 = vld [vmem:[#allocation3 + $0x1524] ss:$16 sps:$4 sm:$0xff]   ;;  %v9599_v0 = vld [vmem:[#allocation3 + $0x152c] ss:$16 sps:$4 sm:$0xff]   ;;  %v9621_v9 = vld [vmem:[#allocation3 + $0x15a8] ss:$16 sps:$4 sm:$0xff]  }
 0x2fd   : > { %6084 = vmatprep.subr.bf16.mxu1 %v9537_v14  ;;  %v9594_v14 = vld [vmem:[#allocation3 + $0x1520] ss:$16 sps:$4 sm:$0xff]  }
 0x2fe   : > { %v9625_v29 = vld [vmem:[#allocation3 + $0x15c0] ss:$16 sps:$4 sm:$0xff]  }
 0x2ff   : > { %5979 = vmatpush1.bf16.msra.mxu0 %v9532_v56  ;;  %v9597_v56 = vld [vmem:[#allocation3 + $0x1528] ss:$16 sps:$4 sm:$0xff]  }
 0x300   : > { %6085 = vmatpush1.bf16.msra.mxu1 %v9535_v62  ;;  %6948 = vmatprep.subr.bf16.mxu0 %v9541_v3  ;;  %v9602_v62 = vld [vmem:[#allocation3 + $0x1544] ss:$16 sps:$4 sm:$0xff]   ;;  %v9605_v3 = vld [vmem:[#allocation3 + $0x154c] ss:$16 sps:$4 sm:$0xff]  }
 0x301   : > { %7054 = vmatprep.subr.bf16.mxu1 %v9544_v38  ;;  %v9600_v38 = vld [vmem:[#allocation3 + $0x1540] ss:$16 sps:$4 sm:$0xff]  }
 0x302   : > { %5981 = vmatmul.mubr.bf16.vlgmr.msra.gmra.mrb[8].mxu0 %v8016_v32 }
 0x303   : > { %6087 = vmatmul.mubr.bf16.vlgmr.msra.gmra.mrb[8].mxu1 %v8016_v32  ;;  %6949 = vmatpush1.bf16.msra.mxu0 %v9539_v21  ;;  %v9608_v32 = vld [vmem:[#allocation3 + $0x1564] ss:$16 sps:$4 sm:$0xff]   ;;  %v9606_v21 = vld [vmem:[#allocation3 + $0x1560] ss:$16 sps:$4 sm:$0xff]  }
 0x304   : > { %7055 = vmatpush1.bf16.msra.mxu1 %v9542_v26  ;;  %6950 = vmatprep.subr.bf16.mxu0 %v9548_v33  ;;  %v9609_v26 = vld [vmem:[#allocation3 + $0x1568] ss:$16 sps:$4 sm:$0xff]   ;;  %v9617_v33 = vld [vmem:[#allocation3 + $0x158c] ss:$16 sps:$4 sm:$0xff]  }
 0x305   : > { %7056 = vmatprep.subr.bf16.mxu1 %v9551_v5  ;;  %5990 = vmatprep.mubr.bf16.mxu0 %v8021_v16  ;;  %v9612_v5 = vld [vmem:[#allocation3 + $0x1580] ss:$16 sps:$4 sm:$0xff]  }
 0x306   : > { %6096 = vmatprep.mubr.bf16.mxu1 %v8021_v16  ;;  %v9615_v16 = vld [vmem:[#allocation3 + $0x1588] ss:$16 sps:$4 sm:$0xff]  }
 0x307   : > { %6951 = vmatpush1.bf16.msra.mxu0 %v9546_v24  ;;  %v9627_v24 = vld [vmem:[#allocation3 + $0x15c4] ss:$16 sps:$4 sm:$0xff]  }
 0x308   : > { %7057 = vmatpush1.bf16.msra.mxu1 %v9549_v27  ;;  %6952 = vmatprep.subr.bf16.mxu0 %v9554_v19  ;;  %v9630_v27 = vld [vmem:[#allocation3 + $0x15cc] ss:$16 sps:$4 sm:$0xff]   ;;  %v9752_v19 = vld [vmem:[%s10133_s10 + $0xa0] sm:$0xff] }
 0x309   : > { %7058 = vmatprep.subr.bf16.mxu1 %v9557_v52  ;;  %v6135_v52 = vrot.slane %v9752_v19, 5  ;;  %v9685_v19 = vld [vmem:[#allocation3 + $0x16ec] ss:$16 sps:$4 sm:$0xff]  }
 0x30a   : > { %5991 = vmatmul.mubr.bf16.gmra.mrb[12].mxu0 %v8020_v11 }
 0x30b   : > { %6097 = vmatmul.mubr.bf16.gmra.mrb[12].mxu1 %v8020_v11  ;;  %6953 = vmatpush1.bf16.msra.mxu0 %v9552_v49  ;;  %v9628_v11 = vld [vmem:[#allocation3 + $0x15c8] ss:$16 sps:$4 sm:$0xff]   ;;  %v8152_v49 = vld [vmem:[%s10133_s10 + $0x90] sm:$0xee] }
 0x30c   : > { %7059 = vmatpush1.bf16.msra.mxu1 %v9555_v50  ;;  %6954 = vmatprep.subr.bf16.mxu0 %v9560_v55  ;;  %v9634_v50 = vld [vmem:[#allocation3 + $0x15e4] ss:$16 sps:$4 sm:$0xff]   ;;  %v9637_v55 = vld [vmem:[#allocation3 + $0x15ec] ss:$16 sps:$4 sm:$0xff]  }
 0x30d   : > { %7060 = vmatprep.subr.bf16.mxu1 %v9563_v35  ;;  %6980 = vmatprep.mubr.bf16.mxu0 %v8159_v46  ;;  %v8156_v35 = vrot.slane %v8152_v49, 9  ;;  %v9691_v49 = vld [vmem:[#allocation3 + $0x170c] ss:$16 sps:$4 sm:$0xff]  }
 0x30e   : > { %7086 = vmatprep.mubr.bf16.mxu1 %v8159_v46  ;;  %v6141_v46 = vrot.slane %v6135_v52, 4 }
 0x30f   : > { %6955 = vmatpush1.bf16.msra.mxu0 %v9558_v1  ;;  %v9753_v1 = vld [vmem:[%s10133_s10 + $0xb0] sm:$0x11] }
 0x310   : > { %7061 = vmatpush1.bf16.msra.mxu1 %v9561_v2  ;;  %6956 = vmatprep.subr.bf16.mxu0 %v9566_v42  ;;  %v6142_v2 = vrot.slane %v9753_v1, 5  ;;  %v9632_v42 = vld [vmem:[#allocation3 + $0x15e0] ss:$16 sps:$4 sm:$0xff]  }
 0x311   : > { %7062 = vmatprep.subr.bf16.mxu1 %v9569_v31  ;;  %v9635_v31 = vld [vmem:[#allocation3 + $0x15e8] ss:$16 sps:$4 sm:$0xff]   ;;  %v9692_v1 = vld [vmem:[#allocation3 + $0x1720] ss:$16 sps:$4 sm:$0xff]  }
 0x313   : > { %6957 = vmatpush1.bf16.msra.mxu0 %v9564_v43  ;;  %v9640_v43 = vld [vmem:[#allocation3 + $0x1604] ss:$16 sps:$4 sm:$0xff]  }
 0x314   : > { %7063 = vmatpush1.bf16.msra.mxu1 %v9567_v58  ;;  %6958 = vmatprep.subr.bf16.mxu0 %v9572_v59  ;;  %v9643_v58 = vld [vmem:[#allocation3 + $0x160c] ss:$16 sps:$4 sm:$0xff]   ;;  %v8158_v59 = vcombine.low %v10532_v34, %v10536_v8 }
 0x315   : > { %7064 = vmatprep.subr.bf16.mxu1 %v9575_v37  ;;  %v6136_v37 = vsel %vm10240_vm5, %v8156_v35, %v6135_v52  ;;  %v9680_v52 = vld [vmem:[#allocation3 + $0x16e0] ss:$16 sps:$4 sm:$0xff]   ;;  %v9694_v35 = vld [vmem:[#allocation3 + $0x1724] ss:$16 sps:$4 sm:$0xff]  }
 0x317   : > { %6959 = vmatpush1.bf16.msra.mxu0 %v9570_v53  ;;  %v6143_v53 = vsel %vm10240_vm5, %v6141_v46, %v6142_v2  ;;  %v9697_v46 = vld [vmem:[#allocation3 + $0x172c] ss:$16 sps:$4 sm:$0xff]   ;;  %v9695_v2 = vld [vmem:[#allocation3 + $0x1728] ss:$16 sps:$4 sm:$0xff]  }
 0x318   : > { %7065 = vmatpush1.bf16.msra.mxu1 %v9573_v40  ;;  %6960 = vmatprep.subr.bf16.mxu0 %v9578_v48  ;;  %v6125_v40 = vrot.slane %v10517_v28, 5  ;;  %v9638_v48 = vld [vmem:[#allocation3 + $0x1600] ss:$16 sps:$4 sm:$0xff]   ;;  %v9647_v28 = vld [vmem:[#allocation3 + $0x1628] ss:$16 sps:$4 sm:$0xff]  }
 0x319   : > { %7066 = vmatprep.subr.bf16.mxu1 %v9581_v7  ;;  %v9641_v7 = vld [vmem:[#allocation3 + $0x1608] ss:$16 sps:$4 sm:$0xff]  }
 0x31a   : > { %v6130_v8 = vrot.slane %v6125_v40, 4 }
 0x31b   : > { %6961 = vmatpush1.bf16.msra.mxu0 %v9576_v22  ;;  %v8151_v22 = vld [vmem:[%s10133_s10 + $0x68] sm:$0xee] }
 0x31c   : > { %7067 = vmatpush1.bf16.msra.mxu1 %v9579_v23  ;;  %6962 = vmatprep.subr.bf16.mxu0 %v9584_v47  ;;  %v9646_v23 = vld [vmem:[#allocation3 + $0x1624] ss:$16 sps:$4 sm:$0xff]   ;;  %v9649_v47 = vld [vmem:[#allocation3 + $0x162c] ss:$16 sps:$4 sm:$0xff]   ;;  %v8155_v34 = vrot.slane %v8151_v22, 9 }
 0x31d   : > { %7068 = vmatprep.subr.bf16.mxu1 %v9587_v30  ;;  %v8163_v30 = vcombine.high %v6136_v37, %v6143_v53  ;;  %v9710_v22 = vld [vmem:[#allocation3 + $0x1780] ss:$16 sps:$4 sm:$0xff]  }
 0x31f   : > { %6963 = vmatpush1.bf16.msra.mxu0 %v9582_v54  ;;  %v9754_v54 = vld [vmem:[%s10133_s10 + $0x88] sm:$0x11] }
 0x320   : > { %7069 = vmatpush1.bf16.msra.mxu1 %v9585_v61  ;;  %6964 = vmatprep.subr.bf16.mxu0 %v9590_v60  ;;  %v6131_v61 = vrot.slane %v9754_v54, 5  ;;  %v9644_v60 = vld [vmem:[#allocation3 + $0x1620] ss:$16 sps:$4 sm:$0xff]   ;;  %v9724_v54 = vld [vmem:[#allocation3 + $0x17c4] ss:$16 sps:$4 sm:$0xff]  }
 0x321   : > { %7070 = vmatprep.subr.bf16.mxu1 %v9593_v12  ;;  %v9652_v12 = vld [vmem:[#allocation3 + $0x1644] ss:$16 sps:$4 sm:$0xff]  }
 0x323   : > { %6965 = vmatpush1.bf16.msra.mxu0 %v9588_v13  ;;  %v9655_v13 = vld [vmem:[#allocation3 + $0x164c] ss:$16 sps:$4 sm:$0xff]  }
 0x324   : > { %7071 = vmatpush1.bf16.msra.mxu1 %v9591_v44  ;;  %6966 = vmatprep.subr.bf16.mxu0 %v9596_v57  ;;  %v8162_v44 = vcombine.low %v6136_v37, %v6143_v53  ;;  %v10554_v57 = vsel %vm10240_vm5, %v8155_v34, %v6125_v40  ;;  %v9709_v37 = vld [vmem:[#allocation3 + $0x176c] ss:$16 sps:$4 sm:$0xff]   ;;  %v9704_v53 = vld [vmem:[#allocation3 + $0x1760] ss:$16 sps:$4 sm:$0xff]   ;;  %v9707_v40 = vld [vmem:[#allocation3 + $0x1768] ss:$16 sps:$4 sm:$0xff]  }
 0x325   : > { %7072 = vmatprep.subr.bf16.mxu1 %v9599_v0  ;;  %v10558_v0 = vsel %vm10240_vm5, %v6130_v8, %v6131_v61  ;;  %v9716_v34 = vld [vmem:[#allocation3 + $0x17a0] ss:$16 sps:$4 sm:$0xff]   ;;  %v9719_v8 = vld [vmem:[#allocation3 + $0x17a8] ss:$16 sps:$4 sm:$0xff]   ;;  %v9727_v61 = vld [vmem:[#allocation3 + $0x17cc] ss:$16 sps:$4 sm:$0xff]  }
 0x327   : > { %6967 = vmatpush1.bf16.msra.mxu0 %v9594_v14  ;;  %v9650_v14 = vld [vmem:[#allocation3 + $0x1640] ss:$16 sps:$4 sm:$0xff]  }
 0x328   : > { %7073 = vmatpush1.bf16.msra.mxu1 %v9597_v56  ;;  %6968 = vmatprep.subr.bf16.mxu0 %v9602_v62  ;;  %v9653_v56 = vld [vmem:[#allocation3 + $0x1648] ss:$16 sps:$4 sm:$0xff]   ;;  %v9658_v62 = vld [vmem:[#allocation3 + $0x1664] ss:$16 sps:$4 sm:$0xff]  }
 0x329   : > { %7074 = vmatprep.subr.bf16.mxu1 %v9605_v3  ;;  %v9661_v3 = vld [vmem:[#allocation3 + $0x166c] ss:$16 sps:$4 sm:$0xff]  }
 0x32b   : > { %6969 = vmatpush1.bf16.msra.mxu0 %v9600_v38  ;;  %v8161_v38 = vcombine.high %v10554_v57, %v10558_v0 }
 0x32c   : > { %7075 = vmatpush1.bf16.msra.mxu1 %v9603_v25  ;;  %6970 = vmatprep.subr.bf16.mxu0 %v9608_v32  ;;  %v9656_v25 = vld [vmem:[#allocation3 + $0x1660] ss:$16 sps:$4 sm:$0xff]   ;;  %v9659_v32 = vld [vmem:[#allocation3 + $0x1668] ss:$16 sps:$4 sm:$0xff]  }
 0x32d   : > { %7076 = vmatprep.subr.bf16.mxu1 %v9611_v20  ;;  %v9664_v20 = vld [vmem:[#allocation3 + $0x1684] ss:$16 sps:$4 sm:$0xff]  }
 0x32f   : > { %6971 = vmatpush1.bf16.msra.mxu0 %v9606_v21  ;;  %v9667_v21 = vld [vmem:[#allocation3 + $0x168c] ss:$16 sps:$4 sm:$0xff]  }
 0x330   : > { %7077 = vmatpush1.bf16.msra.mxu1 %v9609_v26  ;;  %6972 = vmatprep.subr.bf16.mxu0 %v9614_v4  ;;  %v9662_v26 = vld [vmem:[#allocation3 + $0x1680] ss:$16 sps:$4 sm:$0xff]   ;;  %v9665_v4 = vld [vmem:[#allocation3 + $0x1688] ss:$16 sps:$4 sm:$0xff]  }
 0x331   : > { %7078 = vmatprep.subr.bf16.mxu1 %v9617_v33  ;;  %v9670_v33 = vld [vmem:[#allocation3 + $0x16a4] ss:$16 sps:$4 sm:$0xff]  }
 0x333   : > { %6973 = vmatpush1.bf16.msra.mxu0 %v9612_v5  ;;  %v9673_v5 = vld [vmem:[#allocation3 + $0x16ac] ss:$16 sps:$4 sm:$0xff]  }
 0x334   : > { %7079 = vmatpush1.bf16.msra.mxu1 %v9615_v16  ;;  %6974 = vmatprep.subr.bf16.mxu0 %v9620_v6  ;;  %v9668_v16 = vld [vmem:[#allocation3 + $0x16a0] ss:$16 sps:$4 sm:$0xff]   ;;  %v9671_v6 = vld [vmem:[#allocation3 + $0x16a8] ss:$16 sps:$4 sm:$0xff]  }
 0x335   : > { %7080 = vmatprep.subr.bf16.mxu1 %v9623_v18  ;;  %v9676_v18 = vld [vmem:[#allocation3 + $0x16c4] ss:$16 sps:$4 sm:$0xff]  }
 0x337   : > { %6975 = vmatpush1.bf16.msra.mxu0 %v9618_v15  ;;  %v9679_v15 = vld [vmem:[#allocation3 + $0x16cc] ss:$16 sps:$4 sm:$0xff]  }
 0x338   : > { %7081 = vmatpush1.bf16.msra.mxu1 %v9621_v9  ;;  %6976 = vmatprep.subr.bf16.mxu0 %v9627_v24  ;;  %v9674_v9 = vld [vmem:[#allocation3 + $0x16c0] ss:$16 sps:$4 sm:$0xff]   ;;  %v9677_v24 = vld [vmem:[#allocation3 + $0x16c8] ss:$16 sps:$4 sm:$0xff]  }
 0x339   : > { %7082 = vmatprep.subr.bf16.mxu1 %v9630_v27  ;;  %v9682_v27 = vld [vmem:[#allocation3 + $0x16e4] ss:$16 sps:$4 sm:$0xff]  }
 0x33b   : > { %6977 = vmatpush1.bf16.msra.mxu0 %v9625_v29  ;;  %v9683_v29 = vld [vmem:[#allocation3 + $0x16e8] ss:$16 sps:$4 sm:$0xff]  }
 0x33c   : > { %7083 = vmatpush1.bf16.msra.mxu1 %v9628_v11  ;;  %6978 = vmatprep.subr.bf16.mxu0 %v9634_v50  ;;  %v9688_v11 = vld [vmem:[#allocation3 + $0x1704] ss:$16 sps:$4 sm:$0xff]   ;;  %v9686_v50 = vld [vmem:[#allocation3 + $0x1700] ss:$16 sps:$4 sm:$0xff]  }
 0x33d   : > { %7084 = vmatprep.subr.bf16.mxu1 %v9637_v55  ;;  %v9689_v55 = vld [vmem:[#allocation3 + $0x1708] ss:$16 sps:$4 sm:$0xff]  }
 0x33f   : > { %6979 = vmatpush1.bf16.msra.mxu0 %v9632_v42  ;;  %v9700_v42 = vld [vmem:[#allocation3 + $0x1744] ss:$16 sps:$4 sm:$0xff]  }
 0x340   : > { %7085 = vmatpush1.bf16.msra.mxu1 %v9635_v31  ;;  %7001 = vmatprep.subr.bf16.mxu0 %v9640_v43  ;;  %v9703_v31 = vld [vmem:[#allocation3 + $0x174c] ss:$16 sps:$4 sm:$0xff]   ;;  %v9698_v43 = vld [vmem:[#allocation3 + $0x1740] ss:$16 sps:$4 sm:$0xff]  }
 0x341   : > { %7107 = vmatprep.subr.bf16.mxu1 %v9643_v58  ;;  %v9701_v58 = vld [vmem:[#allocation3 + $0x1748] ss:$16 sps:$4 sm:$0xff]  }
 0x342   : > { %6981 = vmatmul.mubr.bf16.vlgmr.msra.gmra.mrb[8].mxu0 %v8158_v59 }
 0x343   : > { %7087 = vmatmul.mubr.bf16.vlgmr.msra.gmra.mrb[8].mxu1 %v8158_v59  ;;  %7002 = vmatpush1.bf16.msra.mxu0 %v9638_v48  ;;  %v9706_v59 = vld [vmem:[#allocation3 + $0x1764] ss:$16 sps:$4 sm:$0xff]  }
 0x344   : > { %7108 = vmatpush1.bf16.msra.mxu1 %v9641_v7  ;;  %7003 = vmatprep.subr.bf16.mxu0 %v9646_v23  ;;  %v9712_v48 = vld [vmem:[#allocation3 + $0x1784] ss:$16 sps:$4 sm:$0xff]   ;;  %v9715_v7 = vld [vmem:[#allocation3 + $0x178c] ss:$16 sps:$4 sm:$0xff]   ;;  %v9713_v23 = vld [vmem:[#allocation3 + $0x1788] ss:$16 sps:$4 sm:$0xff]  }
 0x345   : > { %7109 = vmatprep.subr.bf16.mxu1 %v9649_v47  ;;  %6990 = vmatprep.mubr.bf16.mxu0 %v8163_v30  ;;  %v9718_v47 = vld [vmem:[#allocation3 + $0x17a4] ss:$16 sps:$4 sm:$0xff]  }
 0x346   : > { %7096 = vmatprep.mubr.bf16.mxu1 %v8163_v30  ;;  %v9721_v30 = vld [vmem:[#allocation3 + $0x17ac] ss:$16 sps:$4 sm:$0xff]  }
 0x347   : > { %7004 = vmatpush1.bf16.msra.mxu0 %v9644_v60  ;;  %v6139_v60 = vrot.slane %v10527_v10, 5 }
 0x348   : > { %7110 = vmatpush1.bf16.msra.mxu1 %v9647_v28  ;;  %7005 = vmatprep.subr.bf16.mxu0 %v9652_v12  ;;  %v8153_v28 = vld [vmem:[%s10133_s10 + $0x98] sm:$0xee]  ;;  %v9722_v12 = vld [vmem:[#allocation3 + $0x17c0] ss:$16 sps:$4 sm:$0xff]  }
 0x349   : > { %7111 = vmatprep.subr.bf16.mxu1 %v9655_v13  ;;  %v9725_v13 = vld [vmem:[#allocation3 + $0x17c8] ss:$16 sps:$4 sm:$0xff]  }
 0x34a   : > { %6991 = vmatmul.mubr.bf16.gmra.mrb[12].mxu0 %v8162_v44 }
 0x34b   : > { %7097 = vmatmul.mubr.bf16.gmra.mrb[12].mxu1 %v8162_v44  ;;  %7006 = vmatpush1.bf16.msra.mxu0 %v9650_v14  ;;  %v9730_v44 = vld [vmem:[#allocation3 + $0x17e4] ss:$16 sps:$4 sm:$0xff]   ;;  %v9733_v14 = vld [vmem:[#allocation3 + $0x17ec] ss:$16 sps:$4 sm:$0xff]  }
 0x34c   : > { %7112 = vmatpush1.bf16.msra.mxu1 %v9653_v56  ;;  %7007 = vmatprep.subr.bf16.mxu0 %v9658_v62  ;;  %v8157_v56 = vrot.slane %v8153_v28, 9  ;;  %v6144_v62 = vrot.slane %v6139_v60, 4 }
 0x34d   : > { %7113 = vmatprep.subr.bf16.mxu1 %v9661_v3  ;;  %7033 = vmatprep.mubr.bf16.mxu0 %v8161_v38  ;;  %v9755_v3 = vld [vmem:[%s10133_s10 + $0xb8] sm:$0x11] }
 0x34e   : > { %7139 = vmatprep.mubr.bf16.mxu1 %v8161_v38  ;;  %v6145_v38 = vrot.slane %v9755_v3, 5  ;;  %v6140_v10 = vsel %vm10240_vm5, %v8157_v56, %v6139_v60 }
 0x34f   : > { %7008 = vmatpush1.bf16.msra.mxu0 %v9656_v25  ;;  %v9728_v25 = vld [vmem:[#allocation3 + $0x17e0] ss:$16 sps:$4 sm:$0xff]  }
 0x350   : > { %7114 = vmatpush1.bf16.msra.mxu1 %v9659_v32  ;;  %7009 = vmatprep.subr.bf16.mxu0 %v9664_v20  ;;  %v9731_v32 = vld [vmem:[#allocation3 + $0x17e8] ss:$16 sps:$4 sm:$0xff]   ;;  %v6146_v20 = vsel %vm10240_vm5, %v6144_v62, %v6145_v38  ;;  %v3809_v38 = vld [vmem:[%s10133_s10 + $0x50] sm:$0x11] }
 0x351   : > { %7115 = vmatprep.subr.bf16.mxu1 %v9667_v21  ;;  %v8160_v21 = vcombine.low %v10554_v57, %v10558_v0 }
 0x353   : > { %7010 = vmatpush1.bf16.msra.mxu0 %v9662_v26  ;;  %v8165_v26 = vcombine.high %v6140_v10, %v6146_v20 }
 0x354   : > { %7116 = vmatpush1.bf16.msra.mxu1 %v9665_v4  ;;  %7011 = vmatprep.subr.bf16.mxu0 %v9670_v33  ;;  %v8164_v4 = vcombine.low %v6140_v10, %v6146_v20  ;;  %v3799_v33 = vld [vmem:[%s10133_s10] sm:$0xff] }
 0x355   : > { %7117 = vmatprep.subr.bf16.mxu1 %v9673_v5  ;;  %v3800_v5 = vld [vmem:[%s10133_s10 + $0x8] sm:$0xff]  ;;  %v3812_v45 = vshrl.u32 %v3799_v33, 16 }
 0x356   : > { %v3826_v57 = vshrl.u32 %v3800_v5, 16  ;;  %v3829_v0 = vshll.u32 %v3800_v5, 16 }
 0x357   : > { %7012 = vmatpush1.bf16.msra.mxu0 %v9668_v16  ;;  %v3801_v16 = vld [vmem:[%s10133_s10 + $0x10] sm:$0xff] }
 0x358   : > { %7118 = vmatpush1.bf16.msra.mxu1 %v9671_v6  ;;  %7013 = vmatprep.subr.bf16.mxu0 %v9676_v18  ;;  %v3815_v6 = vshll.u32 %v3799_v33, 16  ;;  %v3802_v18 = vld [vmem:[%s10133_s10 + $0x18] sm:$0xff] }
 0x359   : > { %7119 = vmatprep.subr.bf16.mxu1 %v9679_v15  ;;  %v3821_v15 = vshll.u32 %v3801_v16, 16 }
 0x35b   : > { %7014 = vmatpush1.bf16.msra.mxu0 %v9674_v9  ;;  %v3839_v9 = vshrl.u32 %v3801_v16, 16  ;;  %v3893_v16 = vshll.u32 %v3809_v38, 16 }
 0x35c   : > { %7120 = vmatpush1.bf16.msra.mxu1 %v9677_v24  ;;  %7015 = vmatprep.subr.bf16.mxu0 %v9682_v27  ;;  %v3835_v24 = vshll.u32 %v3802_v18, 16  ;;  %v3849_v27 = vshrl.u32 %v3802_v18, 16 }
 0x35d   : > { %7121 = vmatprep.subr.bf16.mxu1 %v9685_v19  ;;  %v3814_v19 = vrot.slane %v3812_v45, 4 }
 0x35f   : > { %7016 = vmatpush1.bf16.msra.mxu0 %v9680_v52  ;;  %v3817_v52 = vrot.slane %v3815_v6, 5 }
 0x360   : > { %7122 = vmatpush1.bf16.msra.mxu1 %v9683_v29  ;;  %7017 = vmatprep.subr.bf16.mxu0 %v9688_v11  ;;  %v3828_v29 = vrot.slane %v3826_v57, 4  ;;  %v3831_v11 = vrot.slane %v3829_v0, 5 }
 0x361   : > { %7123 = vmatprep.subr.bf16.mxu1 %v9691_v49  ;;  %v3823_v49 = vrot.slane %v3821_v15, 5 }
 0x363   : > { %7018 = vmatpush1.bf16.msra.mxu0 %v9686_v50  ;;  %v3841_v50 = vrot.slane %v3839_v9, 4  ;;  %v10591_v9 = vstv %s7865_s14 }
 0x364   : > { %7124 = vmatpush1.bf16.msra.mxu1 %v9689_v55  ;;  %7019 = vmatprep.subr.bf16.mxu0 %v9694_v35  ;;  %v3805_v55 = vld [vmem:[%s10133_s10 + $0x30] sm:$0xff]  ;;  %v3807_v35 = vld [vmem:[%s10133_s10 + $0x40] sm:$0xff] }
 0x365   : > { %7125 = vmatprep.subr.bf16.mxu1 %v9697_v46  ;;  %v3837_v46 = vrot.slane %v3835_v24, 5 }
 0x367   : > { %7020 = vmatpush1.bf16.msra.mxu0 %v9692_v1  ;;  %v3803_v1 = vld [vmem:[%s10133_s10 + $0x20] sm:$0x11] }
 0x368   : > { %7126 = vmatpush1.bf16.msra.mxu1 %v9695_v2  ;;  %7021 = vmatprep.subr.bf16.mxu0 %v9700_v42  ;;  %v3851_v2 = vrot.slane %v3849_v27, 4  ;;  %v3806_v42 = vld [vmem:[%s10133_s10 + $0x38] sm:$0xff]  ;;  %v7177_v27 = vld [vmem:[#allocation7 + $0x1] ss:$2 sm:$0xf] }
 0x369   : > { %7127 = vmatprep.subr.bf16.mxu1 %v9703_v31  ;;  %v3818_v31 = vor.u32 %v3817_v52, %v3814_v19 }
 0x36b   : > { %7022 = vmatpush1.bf16.msra.mxu0 %v9698_v43  ;;  %v3832_v43 = vor.u32 %v3831_v11, %v3828_v29  ;;  %v3895_v11 = vrot.slane %v3893_v16, 5 }
 0x36c   : > { %7128 = vmatpush1.bf16.msra.mxu1 %v9701_v58  ;;  %7023 = vmatprep.subr.bf16.mxu0 %v9706_v59  ;;  %v3804_v58 = vld [vmem:[%s10133_s10 + $0x28] sm:$0x11] }
 0x36d   : > { %7129 = vmatprep.subr.bf16.mxu1 %v9709_v37  ;;  %v3808_v59 = vld [vmem:[%s10133_s10 + $0x48] sm:$0xff]  ;;  %v3860_v37 = vshrl.u32 %v3805_v55, 16  ;;  %v3833_v60 = vrot.slane %v3832_v43, 4  ;;  %v10596_v43 = vrot.slane %v7177_v27, %v3717_v63 }
 0x36f   : > { %7024 = vmatpush1.bf16.msra.mxu0 %v9704_v53  ;;  %v3863_v53 = vshll.u32 %v3805_v55, 16  ;;  %v3862_v28 = vrot.slane %v3860_v37, 4 }
 0x370   : > { %7130 = vmatpush1.bf16.msra.mxu1 %v9707_v40  ;;  %7025 = vmatprep.subr.bf16.mxu0 %v9712_v48  ;;  %v3869_v40 = vshll.u32 %v3807_v35, 16  ;;  %v3887_v48 = vshrl.u32 %v3807_v35, 16 }
 0x371   : > { %7131 = vmatprep.subr.bf16.mxu1 %v9715_v7  ;;  %v3842_v7 = vor.u32 %v3841_v50, %v3823_v49 }
 0x373   : > { %7026 = vmatpush1.bf16.msra.mxu0 %v9710_v22  ;;  %v3845_v22 = vshll.u32 %v3803_v1, 16 }
 0x374   : > { %7132 = vmatpush1.bf16.msra.mxu1 %v9713_v23  ;;  %7027 = vmatprep.subr.bf16.mxu0 %v9718_v47  ;;  %v3874_v23 = vshrl.u32 %v3806_v42, 16  ;;  %v3877_v47 = vshll.u32 %v3806_v42, 16 }
 0x375   : > { %7133 = vmatprep.subr.bf16.mxu1 %v9721_v30  ;;  %v3852_v30 = vor.u32 %v3851_v2, %v3837_v46  ;;  %v3847_v56 = vrot.slane %v3845_v22, 5 }
 0x376   : > { %v3876_v62 = vrot.slane %v3874_v23, 4  ;;  %v3879_v3 = vrot.slane %v3877_v47, 5 }
 0x377   : > { %7028 = vmatpush1.bf16.msra.mxu0 %v9716_v34  ;;  %v3855_v34 = vshll.u32 %v3804_v58, 16  ;;  %v10600_v58 = vrot.slane %v7177_v27, %v3725_v39 }
 0x378   : > { %7134 = vmatpush1.bf16.msra.mxu1 %v9719_v8  ;;  %7029 = vmatprep.subr.bf16.mxu0 %v9724_v54  ;;  %v3883_v8 = vshll.u32 %v3808_v59, 16  ;;  %v3897_v54 = vshrl.u32 %v3808_v59, 16  ;;  %v3880_v45 = vor.u32 %v3879_v3, %v3876_v62  ;;  %v10604_v59 = vrot.slane %v7177_v27, %v3721_v36 }
 0x379   : > { %7135 = vmatprep.subr.bf16.mxu1 %v9727_v61  ;;  %v3819_v61 = vrot.slane %v3818_v31, 4 }
 0x37a   : > { %v3885_v10 = vrot.slane %v3883_v8, 5  ;;  %v3899_v20 = vrot.slane %v3897_v54, 4  ;;  %v3881_v35 = vrot.slane %v3880_v45, 4 }
 0x37b   : > { %7030 = vmatpush1.bf16.msra.mxu0 %v9722_v12  ;;  %v3865_v12 = vrot.slane %v3863_v53, 5  ;;  %v10609_v53 = vrot.slane %v7177_v27, %v3729_v17 }
 0x37c   : > { %7136 = vmatpush1.bf16.msra.mxu1 %v9725_v13  ;;  %7031 = vmatprep.subr.bf16.mxu0 %v9730_v44  ;;  %v3871_v13 = vrot.slane %v3869_v40, 5  ;;  %v3889_v44 = vrot.slane %v3887_v48, 4  ;;  %v3900_v57 = vor.u32 %v3899_v20, %v3885_v10  ;;  %v3886_v36 = vsel %vm10160_vm2, %v3881_v35, %v3885_v10 }
 0x37d   : > { %7137 = vmatprep.subr.bf16.mxu1 %v9733_v14  ;;  %v3843_v14 = vrot.slane %v3842_v7, 4  ;;  %v3866_v33 = vor.u32 %v3865_v12, %v3862_v28 }
 0x37e   : > { %v3890_v5 = vor.u32 %v3889_v44, %v3871_v13  ;;  %v3901_v2 = vrot.slane %v3900_v57, 4  ;;  %v3926_v44 = vunpack.c.l.bf16 %v3886_v36 }
 0x37f   : > { %7032 = vmatpush1.bf16.msra.mxu0 %v9728_v25  ;;  %v3853_v25 = vrot.slane %v3852_v30, 4  ;;  %v3848_v6 = vsel %vm10160_vm2, %v3843_v14, %v3847_v56  ;;  %v3867_v52 = vrot.slane %v3866_v33, 4  ;;  %v3927_v14 = vunpack.c.h.bf16 %v3886_v36 }
 0x380   : > { %7138 = vmatpush1.bf16.msra.mxu1 %v9731_v32  ;;  %v3857_v32 = vrot.slane %v3855_v34, 5  ;;  %v3891_v29 = vrot.slane %v3890_v5, 4  ;;  %v3920_v50 = vunpack.c.l.bf16 %v3848_v6 }
 0x381   : > { %v3872_v40 = vsel %vm10160_vm2, %v3867_v52, %v3871_v13 }
 0x382   : > { %7034 = vmatmul.mubr.bf16.vlgmr.msra.gmra.mrb[8].mxu0 %v8160_v21  ;;  %v3858_v18 = vsel %vm10160_vm2, %v3853_v25, %v3857_v32  ;;  %v3896_v63 = vsel %vm10160_vm2, %v3891_v29, %v3895_v11  ;;  %v3937_v7 = vmul.f32 %v10591_v9, %v3920_v50  ;;  %v3924_v34 = vunpack.c.l.bf16 %v3872_v40 }
 0x383   : > { %7140 = vmatmul.mubr.bf16.vlgmr.msra.gmra.mrb[8].mxu1 %v8160_v21  ;;  %7043 = vmatprep.mubr.bf16.mxu0 %v8165_v26  ;;  %v3824_v21 = vsel %vm10160_vm2, %v3819_v61, %v3823_v49  ;;  %v3922_v55 = vunpack.c.l.bf16 %v3858_v18  ;;  %v3923_v1 = vunpack.c.h.bf16 %v3858_v18  ;;  %v3925_v8 = vunpack.c.h.bf16 %v3872_v40 }
 0x384   : > { %7149 = vmatprep.mubr.bf16.mxu1 %v8165_v26  ;;  %v3810_v26 = vld [vmem:[%s10133_s10 + $0x58] sm:$0x11]  ;;  %v3916_v15 = vunpack.c.l.bf16 %v3824_v21  ;;  %v3917_v19 = vunpack.c.h.bf16 %v3824_v21  ;;  %v3928_v54 = vunpack.c.l.bf16 %v3896_v63  ;;  %v3929_v61 = vunpack.c.h.bf16 %v3896_v63 }
 0x385   : > { %v3903_v0 = vshll.u32 %v3810_v26, 16  ;;  %v3939_v22 = vmul.f32 %v10591_v9, %v3922_v55  ;;  %v3940_v17 = vmul.f32 %v10591_v9, %v3923_v1  ;;  %v3941_v11 = vmul.f32 %v10591_v9, %v3924_v34 }
 0x386   : > { %v3933_v31 = vmul.f32 %v10591_v9, %v3916_v15  ;;  %v3934_v48 = vmul.f32 %v10591_v9, %v3917_v19  ;;  %v3945_v1 = vmul.f32 %v10591_v9, %v3928_v54  ;;  %v3944_v63 = vmul.f32 %v10591_v9, %v3927_v14 }
 0x387   : > { %v3905_v42 = vrot.slane %v3903_v0, 5 }
 0x389   : > { %v10625_v23 = vsel %vm10160_vm2, %v3901_v2, %v3905_v42  ;;  %v3946_v2 = vmul.f32 %v10591_v9, %v3929_v61 }
 0x38a   : > { %7044 = vmatmul.mubr.bf16.gmra.mrb[12].mxu0 %v8164_v4  ;;  %v3930_v38 = vunpack.c.l.bf16 %v10625_v23  ;;  %v3931_v25 = vunpack.c.h.bf16 %v10625_v23 }
 0x38b   : > { %7150 = vmatmul.mubr.bf16.gmra.mrb[12].mxu1 %v8164_v4  ;;  %v3838_v4 = vsel %vm10160_vm2, %v3833_v60, %v3837_v46  ;;  %v3921_v46 = vunpack.c.h.bf16 %v3848_v6 }
 0x38c   : > { %v3918_v24 = vunpack.c.l.bf16 %v3838_v4  ;;  %v3919_v49 = vunpack.c.h.bf16 %v3838_v4 }
 0x38d   : > { %v3938_v51 = vmul.f32 %v10591_v9, %v3921_v46 }
 0x38e   : > { %v3935_v37 = vmul.f32 %v10591_v9, %v3918_v24  ;;  %v3936_v39 = vmul.f32 %v10591_v9, %v3919_v49  ;;  %v3942_v49 = vmul.f32 %v10591_v9, %v3925_v8 }
 0x455   : > { %v7035_v47 = vpop.f32.mrb[8].mxu0 }
 0x456   : > { %v7141_v30 = vpop.f32.mrb[8].mxu1  ;;  %v7199_v60 = vadd.f32 %v10596_v43, %v7035_v47  ;;  %v7037_v12 = vpop.f32.mrb[9].mxu0 }
 0x457   : > { %v7201_v28 = vadd.f32 %v10600_v58, %v7141_v30  ;;  %v7143_v13 = vpop.f32.mrb[9].mxu1  ;;  %v7200_v56 = vadd.f32 %v10604_v59, %v7037_v12  ;;  %v7039_v62 = vpop.f32.mrb[10].mxu0 }
 0x458   : > { %v7202_v41 = vadd.f32 %v10609_v53, %v7143_v13  ;;  %v7145_v3 = vpop.f32.mrb[10].mxu1  ;;  %v7215_v32 = vmax.f32 %v7199_v60, 0.0  ;;  %v7203_v20 = vadd.f32 %v10596_v43, %v7039_v62  ;;  %v7041_v26 = vpop.f32.mrb[11].mxu0 }
 0x459   : > { %v7217_v10 = vmax.f32 %v7201_v28, 0.0  ;;  %v7205_v21 = vadd.f32 %v10600_v58, %v7145_v3  ;;  %v7147_v4 = vpop.f32.mrb[11].mxu1  ;;  %v7216_v33 = vmax.f32 %v7200_v56, 0.0  ;;  %v7204_v16 = vadd.f32 %v10604_v59, %v7041_v26 }
 0x45a   : > { %v7218_v5 = vmax.f32 %v7202_v41, 0.0  ;;  %v7206_v45 = vadd.f32 %v10609_v53, %v7147_v4  ;;  %v7231_v6 = vadd.f32 %v7215_v32, %v3933_v31  ;;  %v7219_v57 = vmax.f32 %v7203_v20, 0.0 }
 0x45b   : > { %v7233_v18 = vadd.f32 %v7217_v10, %v3935_v37  ;;  %v7221_v0 = vmax.f32 %v7205_v21, 0.0  ;;  %v7232_v15 = vadd.f32 %v7216_v33, %v3934_v48  ;;  %v7220_v27 = vmax.f32 %v7204_v16, 0.0 }
 0x45c   : > { %v7234_v24 = vadd.f32 %v7218_v5, %v3936_v39  ;;  %v7222_v19 = vmax.f32 %v7206_v45, 0.0  ;;  %8294 = vst [vmem:[%s10478_s12 + $0x80] sm:$0xff] %v7231_v6  ;;  %v7235_v52 = vadd.f32 %v7219_v57, %v3937_v7  ;;  %v3943_v31 = vmul.f32 %v10591_v9, %v3926_v44 }
 0x45d   : > { %8296 = vst [vmem:[%s10478_s12 + $0x90] sm:$0xff] %v7233_v18  ;;  %v7237_v29 = vadd.f32 %v7221_v0, %v3939_v22  ;;  %8295 = vst [vmem:[%s10478_s12 + $0x88] sm:$0xff] %v7232_v15  ;;  %v7236_v50 = vadd.f32 %v7220_v27, %v3938_v51  ;;  %v7045_v35 = vpop.f32.mrb[12].mxu0  ;;  %v3947_v22 = vmul.f32 %v10591_v9, %v3930_v38 }
 0x45e   : > { %8297 = vst [vmem:[%s10478_s12 + $0x98] sm:$0xff] %v7234_v24  ;;  %v7238_v55 = vadd.f32 %v7222_v19, %v3940_v17  ;;  %v7151_v46 = vpop.f32.mrb[12].mxu1  ;;  %8298 = vst [vmem:[%s10478_s12 + $0xa0] sm:$0xff] %v7235_v52  ;;  %v7207_v42 = vadd.f32 %v10596_v43, %v7045_v35  ;;  %v7047_v40 = vpop.f32.mrb[13].mxu0  ;;  %v3948_v17 = vmul.f32 %v10591_v9, %v3931_v25 }
 0x45f   : > { %8300 = vst [vmem:[%s10478_s12 + $0xb0] sm:$0xff] %v7237_v29  ;;  %v7209_v37 = vadd.f32 %v10600_v58, %v7151_v46  ;;  %v7153_v48 = vpop.f32.mrb[13].mxu1  ;;  %8299 = vst [vmem:[%s10478_s12 + $0xa8] sm:$0xff] %v7236_v50  ;;  %v7208_v39 = vadd.f32 %v10604_v59, %v7047_v40  ;;  %v7049_v36 = vpop.f32.mrb[14].mxu0 }
 0x460   : > { %8301 = vst [vmem:[%s10478_s12 + $0xb8] sm:$0xff] %v7238_v55  ;;  %v7210_v7 = vadd.f32 %v10609_v53, %v7153_v48  ;;  %v7155_v51 = vpop.f32.mrb[14].mxu1  ;;  %v7223_v23 = vmax.f32 %v7207_v42, 0.0  ;;  %v7211_v30 = vadd.f32 %v10596_v43, %v7049_v36  ;;  %v7051_v8 = vpop.f32.mrb[15].mxu0 }
 0x461   : > { %v7225_v47 = vmax.f32 %v7209_v37, 0.0  ;;  %v7213_v34 = vadd.f32 %v10600_v58, %v7155_v51  ;;  %v7157_v54 = vpop.f32.mrb[15].mxu1  ;;  %v7224_v61 = vmax.f32 %v7208_v39, 0.0  ;;  %v7212_v28 = vadd.f32 %v10604_v59, %v7051_v8 }
 0x462   : > { %v7226_v60 = vmax.f32 %v7210_v7, 0.0  ;;  %v7214_v12 = vadd.f32 %v10609_v53, %v7157_v54  ;;  %v7239_v13 = vadd.f32 %v7223_v23, %v3941_v11  ;;  %v7227_v44 = vmax.f32 %v7211_v30, 0.0 }
 0x463   : > { %v7241_v9 = vadd.f32 %v7225_v47, %v3943_v31  ;;  %v7229_v43 = vmax.f32 %v7213_v34, 0.0  ;;  %v7240_v58 = vadd.f32 %v7224_v61, %v3942_v49  ;;  %v7228_v56 = vmax.f32 %v7212_v28, 0.0 }
 0x464   : > { %v7242_v14 = vadd.f32 %v7226_v60, %v3944_v63  ;;  %v7230_v41 = vmax.f32 %v7214_v12, 0.0  ;;  %8302 = vst [vmem:[%s10478_s12 + $0xc0] sm:$0xff] %v7239_v13  ;;  %v7243_v62 = vadd.f32 %v7227_v44, %v3945_v1 }
 0x465   : > { %8304 = vst [vmem:[%s10478_s12 + $0xd0] sm:$0xff] %v7241_v9  ;;  %v7245_v3 = vadd.f32 %v7229_v43, %v3947_v22  ;;  %8303 = vst [vmem:[%s10478_s12 + $0xc8] sm:$0xff] %v7240_v58  ;;  %v7244_v59 = vadd.f32 %v7228_v56, %v3946_v2 }
 0x466   : > { %8305 = vst [vmem:[%s10478_s12 + $0xd8] sm:$0xff] %v7242_v14  ;;  %v7246_v53 = vadd.f32 %v7230_v41, %v3948_v17  ;;  %8306 = vst [vmem:[%s10478_s12 + $0xe0] sm:$0xff] %v7243_v62 }
 0x467   : > { %8308 = vst [vmem:[%s10478_s12 + $0xf0] sm:$0xff] %v7245_v3  ;;  %8307 = vst [vmem:[%s10478_s12 + $0xe8] sm:$0xff] %v7244_v59 }
 0x468   : > { %8309 = vst [vmem:[%s10478_s12 + $0xf8] sm:$0xff] %v7246_v53 }
 0x469   : > { %s8317_s7 = sshll.u32 %s9931_s19, 11  ;;  %s7295_s22 = sshll.u32 %s10478_s12, 4  ;;  %s7296_s22 = int_to_ptr.vmem [resolvable:$true] %s7295_s22 }
 0x46a   : > { %s7278_s23 = scalar_lea.hbm %s10711_s4, %s8317_s7  ;;  %s9878_s29 = smov 2048  }
 0x46b   : > { %p10733_p1 = scmp.ne.s32.totalorder %s10716_s26, 0  ;;  %s9879_s6 = smov 4096  }
 0x46c   : > { %s9880_s5 = smov 4   ;;  %s9881_s25 = smov 512  }
 0x46d   : > { %8493 = sst [smem:[#allocation12]] (%p10733_p1), %s9878_s29  ;;  %s9882_s19 = smov 32  }
 0x46e   : > { %8494 = sst [smem:[#allocation12 + $0x1]] (%p10733_p1), %s9879_s6  ;;  %s9883_s8 = smov [#allocation11]  }
 0x46f   : > { %8495 = sst [smem:[#allocation12 + $0x2]] (%p10733_p1), %s9880_s5  ;;  %s9884_s9 = smov 0  }
 0x470   : > { %8496 = sst [smem:[#allocation12 + $0x3]] (%p10733_p1), %s9881_s25 }
 0x471   : > { %8497 = sst [smem:[#allocation12 + $0x4]] (%p10733_p1), %s9881_s25 }
 0x472   : > { %8498 = sst [smem:[#allocation12 + $0x5]] (%p10733_p1), %s9882_s19 }
 0x473   : > { %8499 = dma.general (%p10733_p1), %s7296_s22, 4096, %s7278_s23, %s7265_s20, %s9883_s8, [#allocation12], %s9884_s9, 0  }
 0x474 PF: > { %s7323_s10 = sand.u32 1, %s9859_s15   ;;  %p10734_p6 = scmp.ne.s32.totalorder %s10717_s27, 0 }
 0x475   : > { %s7324_s28 = scalar_lea.sflag [#allocation5], %s7323_s10 }
 0x476   : > { %p8512_p5 = pnand %p7415_p12, %p10734_p6 }
 0x478   : > { %9854 = dma.done.wait (!%p8512_p5), %s7324_s28, 4096  }
 0x479   : > { %9856 = vsyncadd (!%p8512_p5), %s7324_s28, 4294963200  ;;  %p17_p10 = scmp.ge.s32.totalorder %s9935_s21, 4   ;;  %s10735_s15 = smov %s9863_s16 }
 0x47a   : > { %s10736_s16 = smov %s9867_s17  ;;  %s10737_s17 = smov %s9947_s24 }
 0x47b   : > { %s10738_s18 = smov %s9935_s21  ;;  %19 = sbr.rel (!%p17_p10) target bundleno = 6 (0x6), region = 127 }
 0x482   :  { %7329 = vsyncpa [#allocation4], 1 }
 0x483   :  { %7331 = vsyncpa [#allocation4 + $0x1], 1 }
 0x484   :  { %7332 = vsyncpa [#allocation8], 1 }
 0x485   :  { %7333 = vsyncpa [#allocation5], 1 }
 0x486   :  { %7335 = vsyncpa [#allocation5 + $0x1], 1 }
 0x487   :  { %7336 = vsyncpa [#allocation6], 1 }
 0x488   :  { %7338 = vsyncpa [#allocation6 + $0x1], 1 }

</bundles_post_ra>
